<compile_context>
chip_gen: v6e
topology: v6e:2x2x1
jax: 0.10.0
libtpu: 0.0.40
codegen_flags: <defaults>
</compile_context>

<pallas_src>
import math
from functools import lru_cache, partial

import jax
import jax.numpy as jnp
from jax.experimental import pallas as pl
from jax.experimental.pallas import tpu as pltpu

ACT_DTYPE = jnp.bfloat16      # activations / weights streamed through the MXU
LN_EPS = 1e-12


# ----------------------------------------------------------------------------
# Generation-aware budgets & tiling helpers
# ----------------------------------------------------------------------------
@lru_cache(maxsize=None)
def _vmem_limit_bytes():
    cap = 64 << 20
    try:
        info = pltpu.get_tpu_info()
        cap = int(getattr(info, "vmem_capacity_bytes", 0)) or cap
    except Exception:
        pass
    # ~75% of physical VMEM, capped at 100 MB:
    #   v5e/v6e (128 MiB physical) -> ~96 MB; v7x (64 MiB) -> ~48 MB.
    return min((cap * 3) // 4, 100 << 20)


@lru_cache(maxsize=None)
def _row_pref():
    # Bigger row tiles on 128-MiB-VMEM chips (v5e/v6e), smaller on v7x.
    return 512 if _vmem_limit_bytes() >= (64 << 20) else 256


def _row_tile(M, pref=None):
    """Largest 16-aligned (bf16 sublane) tile <= pref dividing M, else M."""
    pref = pref or _row_pref()
    if M <= pref:
        return M
    for align in (16, 8):
        t = (pref // align) * align
        while t >= align:
            if M % t == 0:
                return t
            t -= align
    return M


def _seq_tile(S):
    if S <= 512:
        return S
    for t in (512, 256, 128):
        if S % t == 0:
            return t
    # TODO(synk): pad S to a multiple of 128 with a -inf key bias instead of
    # falling back to one full-S score block for ragged long sequences.
    return S


def _head_group(H, Dh):
    """Heads processed together per attention grid step (lane/step amortization)."""
    for g in range(H, 0, -1):
        if H % g == 0 and g * Dh <= 256:
            return g
    return 1


def _mosaic_params(dimension_semantics):
    return pltpu.CompilerParams(
        dimension_semantics=dimension_semantics,
        vmem_limit_bytes=_vmem_limit_bytes(),
    )


def _ln_rows(x_f32, gamma, beta, eps):
    mu = jnp.mean(x_f32, axis=-1, keepdims=True)
    var = jnp.mean((x_f32 - mu) ** 2, axis=-1, keepdims=True)
    return ((x_f32 - mu) * jax.lax.rsqrt(var + eps)
            * gamma.astype(jnp.float32) + beta.astype(jnp.float32))


# ----------------------------------------------------------------------------
# Embedding LayerNorm (residual-free)
# ----------------------------------------------------------------------------
def _layernorm_kernel(x_ref, g_ref, b_ref, o_ref, *, eps):
    x = x_ref[...].astype(jnp.float32)
    o_ref[...] = _ln_rows(x, g_ref[...], b_ref[...], eps).astype(o_ref.dtype)


def layernorm(x, gamma, beta, eps=LN_EPS, out_dtype=ACT_DTYPE):
    M, E = x.shape
    tm = _row_tile(M)
    return pl.pallas_call(
        partial(_layernorm_kernel, eps=eps),
        out_shape=jax.ShapeDtypeStruct((M, E), out_dtype),
        grid_spec=pltpu.PrefetchScalarGridSpec(
            num_scalar_prefetch=0,
            grid=(M // tm,),
            in_specs=[
                pl.BlockSpec((tm, E), lambda i: (i, 0)),
                pl.BlockSpec((1, E), lambda i: (0, 0)),
                pl.BlockSpec((1, E), lambda i: (0, 0)),
            ],
            out_specs=pl.BlockSpec((tm, E), lambda i: (i, 0)),
        ),
        compiler_params=_mosaic_params(("parallel",)),
    )(x, gamma, beta)


# ----------------------------------------------------------------------------
# Fused QKV projection: hs (M, E) -> head-major (3H, M, Dh), q pre-scaled
# ----------------------------------------------------------------------------
def _qkv_kernel(x_ref, w_ref, b_ref, o_ref, *, n_slices, n_q_slices, q_scale):
    x = x_ref[...]
    for s in range(n_slices):
        y = jnp.dot(x, w_ref[s], preferred_element_type=jnp.float32)
        y = y + b_ref[s].astype(jnp.float32)
        if s < n_q_slices:
            y = y * q_scale          # fold 1/sqrt(Dh) into q in f32 (free epilogue)
        o_ref[s] = y.astype(o_ref.dtype)


def qkv_project(x, w_qkv, b_qkv, num_heads, q_scale, out_dtype=ACT_DTYPE):
    M, E = x.shape
    n_slices, _, Dh = w_qkv.shape          # n_slices = 3 * H
    tm = _row_tile(M)
    return pl.pallas_call(
        partial(_qkv_kernel, n_slices=n_slices, n_q_slices=num_heads,
                q_scale=q_scale),
        out_shape=jax.ShapeDtypeStruct((n_slices, M, Dh), out_dtype),
        grid_spec=pltpu.PrefetchScalarGridSpec(
            num_scalar_prefetch=0,
            grid=(M // tm,),
            in_specs=[
                pl.BlockSpec((tm, E), lambda i: (i, 0)),
                pl.BlockSpec((n_slices, E, Dh), lambda i: (0, 0, 0)),   # resident
                pl.BlockSpec((n_slices, 1, Dh), lambda i: (0, 0, 0)),
            ],
            out_specs=pl.BlockSpec((n_slices, tm, Dh), lambda i: (0, i, 0)),
        ),
        compiler_params=_mosaic_params(("parallel",)),
    )(x, w_qkv, b_qkv)


# ----------------------------------------------------------------------------
# Flash attention (online softmax) reading/writing head-major layouts directly
# ----------------------------------------------------------------------------
def _flash_kernel(q_ref, k_ref, v_ref, o_ref, m_sc, l_sc, acc_sc):
    ki = pl.program_id(3)

    @pl.when(ki == 0)
    def _():
        m_sc[...] = jnp.full_like(m_sc, -jnp.inf)
        l_sc[...] = jnp.zeros_like(l_sc)
        acc_sc[...] = jnp.zeros_like(acc_sc)

    q = q_ref[...]                         # (G, tq, Dh) bf16, already scaled
    k = k_ref[...]                         # (G, tk, Dh)
    v = v_ref[...]                         # (G, tk, Dh)
    s = jnp.einsum("gqd,gkd->gqk", q, k, preferred_element_type=jnp.float32)
    m_prev = m_sc[...]
    m_new = jnp.maximum(m_prev, jnp.max(s, axis=-1, keepdims=True))
    alpha = jnp.exp(m_prev - m_new)
    p = jnp.exp(s - m_new)
    l_sc[...] = alpha * l_sc[...] + jnp.sum(p, axis=-1, keepdims=True)
    acc_sc[...] = alpha * acc_sc[...] + jnp.einsum(
        "gqk,gkd->gqd", p.astype(v.dtype), v, preferred_element_type=jnp.float32)
    m_sc[...] = m_new

    @pl.when(ki == pl.num_programs(3) - 1)
    def _():
        # exact normalization (no approx reciprocal) for final probabilities
        o_ref[...] = (acc_sc[...] / l_sc[...]).astype(o_ref.dtype)


def flash_attention(qkv, B, S, H, Dh, out_dtype=ACT_DTYPE):
    """Full (unmasked) attention, mirroring `self.encoder(text)[0]` with no mask.

    qkv: (3H, B*S, Dh) head-major; returns (H, B*S, Dh) head-major.
    """
    G = _head_group(H, Dh)
    HG = H // G
    tq = _seq_tile(S)
    tk = tq
    qt = S // tq
    kt = S // tk

    q_map = lambda b, hg, qi, ki: (hg, b * qt + qi, 0)
    k_map = lambda b, hg, qi, ki: (HG + hg, b * kt + ki, 0)
    v_map = lambda b, hg, qi, ki: (2 * HG + hg, b * kt + ki, 0)
    o_map = lambda b, hg, qi, ki: (hg, b * qt + qi, 0)

    return pl.pallas_call(
        _flash_kernel,
        out_shape=jax.ShapeDtypeStruct((H, B * S, Dh), out_dtype),
        grid_spec=pltpu.PrefetchScalarGridSpec(
            num_scalar_prefetch=0,
            grid=(B, HG, qt, kt),
            in_specs=[
                pl.BlockSpec((G, tq, Dh), q_map),
                pl.BlockSpec((G, tk, Dh), k_map),
                pl.BlockSpec((G, tk, Dh), v_map),
            ],
            out_specs=pl.BlockSpec((G, tq, Dh), o_map),
            scratch_shapes=[
                pltpu.VMEM((G, tq, 1), jnp.float32),    # running max
                pltpu.VMEM((G, tq, 1), jnp.float32),    # running denom
                pltpu.VMEM((G, tq, Dh), jnp.float32),   # output accumulator
            ],
        ),
        compiler_params=_mosaic_params(
            ("parallel", "parallel", "parallel", "arbitrary")),
    )(qkv, qkv, qkv)


# ----------------------------------------------------------------------------
# Attention-out projection + residual + LayerNorm (reduction over heads)
# ----------------------------------------------------------------------------
def _attn_out_res_ln_kernel(attn_ref, wo_ref, bo_ref, r_ref, g_ref, bln_ref,
                            o_ref, *, n_heads, eps):
    acc = jnp.dot(attn_ref[0], wo_ref[0], preferred_element_type=jnp.float32)
    for h in range(1, n_heads):
        acc = acc + jnp.dot(attn_ref[h], wo_ref[h],
                            preferred_element_type=jnp.float32)
    h_res = acc + bo_ref[...].astype(jnp.float32) + r_ref[...].astype(jnp.float32)
    o_ref[...] = _ln_rows(h_res, g_ref[...], bln_ref[...], eps).astype(o_ref.dtype)


def attn_out_residual_ln(attn, wo, bo, residual, gamma, beta,
                         eps=LN_EPS, out_dtype=ACT_DTYPE):
    H, M, Dh = attn.shape
    E = wo.shape[2]
    tm = _row_tile(M)
    return pl.pallas_call(
        partial(_attn_out_res_ln_kernel, n_heads=H, eps=eps),
        out_shape=jax.ShapeDtypeStruct((M, E), out_dtype),
        grid_spec=pltpu.PrefetchScalarGridSpec(
            num_scalar_prefetch=0,
            grid=(M // tm,),
            in_specs=[
                pl.BlockSpec((H, tm, Dh), lambda i: (0, i, 0)),
                pl.BlockSpec((H, Dh, E), lambda i: (0, 0, 0)),   # resident
                pl.BlockSpec((1, E), lambda i: (0, 0)),
                pl.BlockSpec((tm, E), lambda i: (i, 0)),
                pl.BlockSpec((1, E), lambda i: (0, 0)),
                pl.BlockSpec((1, E), lambda i: (0, 0)),
            ],
            out_specs=pl.BlockSpec((tm, E), lambda i: (i, 0)),
        ),
        compiler_params=_mosaic_params(("parallel",)),
    )(attn, wo, bo, residual, gamma, beta)


# ----------------------------------------------------------------------------
# Fully fused FFN: up-proj + GELU + down-proj + residual + LayerNorm
# ----------------------------------------------------------------------------
def _ffn_res_ln_kernel(x_ref, w1_ref, b1_ref, w2_ref, b2_ref, g_ref, bln_ref,
                       o_ref, *, f_chunk, eps):
    x = x_ref[...]
    F = w1_ref.shape[1]
    acc = jnp.zeros((x.shape[0], w2_ref.shape[1]), jnp.float32)
    for c in range(0, F, f_chunk):
        u = jnp.dot(x, w1_ref[:, c:c + f_chunk],
                    preferred_element_type=jnp.float32)
        u = u + b1_ref[:, c:c + f_chunk].astype(jnp.float32)
        # TODO(synk): switch to exact erf-GELU (HF BERT) once erf reliably
        # lowers in Mosaic; tanh approximation kept for compile robustness.
        u = jax.nn.gelu(u)
        acc = acc + jnp.dot(u.astype(x.dtype), w2_ref[c:c + f_chunk, :],
                            preferred_element_type=jnp.float32)
    h_res = acc + b2_ref[...].astype(jnp.float32) + x.astype(jnp.float32)
    o_ref[...] = _ln_rows(h_res, g_ref[...], bln_ref[...], eps).astype(o_ref.dtype)


def ffn_residual_ln(x, w1, b1, w2, b2, gamma, beta,
                    eps=LN_EPS, out_dtype=ACT_DTYPE):
    M, E = x.shape
    F = w1.shape[1]
    if F <= 1024:
        f_chunk = F
    else:
        f_chunk = next((c for c in (1024, 512, 256, 128) if F % c == 0), F)
    tm = _row_tile(M)
    return pl.pallas_call(
        partial(_ffn_res_ln_kernel, f_chunk=f_chunk, eps=eps),
        out_shape=jax.ShapeDtypeStruct((M, E), out_dtype),
        grid_spec=pltpu.PrefetchScalarGridSpec(
            num_scalar_prefetch=0,
            grid=(M // tm,),
            in_specs=[
                pl.BlockSpec((tm, E), lambda i: (i, 0)),          # x & residual
                pl.BlockSpec((E, F), lambda i: (0, 0)),           # w1 resident
                pl.BlockSpec((1, F), lambda i: (0, 0)),
                pl.BlockSpec((F, E), lambda i: (0, 0)),           # w2 resident
                pl.BlockSpec((1, E), lambda i: (0, 0)),
                pl.BlockSpec((1, E), lambda i: (0, 0)),
                pl.BlockSpec((1, E), lambda i: (0, 0)),
            ],
            out_specs=pl.BlockSpec((tm, E), lambda i: (i, 0)),
        ),
        compiler_params=_mosaic_params(("parallel",)),
    )(x, w1, b1, w2, b2, gamma, beta)


# ----------------------------------------------------------------------------
# Fused MLP head: whole Linear+ReLU chain in one pallas_call
# ----------------------------------------------------------------------------
def _mlp_kernel(x_ref, *refs, n_layers):
    o_ref = refs[-1]
    h = x_ref[...]
    for i in range(n_layers):
        w = refs[2 * i][...]
        b = refs[2 * i + 1][...]
        y = jnp.dot(h, w, preferred_element_type=jnp.float32) + b.astype(jnp.float32)
        if i < n_layers - 1:
            h = jnp.maximum(y, 0.0).astype(x_ref.dtype)   # back to bf16 for MXU
        else:
            h = y
    o_ref[...] = h.astype(o_ref.dtype)


def mlp_head(x, layers, out_dim):
    """Entire MLP (Dropout(p=0) is identity) fused in one pallas_call.

    Rows are padded to a multiple of 16 (bf16 sublane packing), weights are
    resident in VMEM, and the final projection is a lane-dense 128-wide bf16
    slab; valid rows/cols are sliced (and cast to f32) in the JAX wrapper.
    """
    M0, E = x.shape
    M = ((M0 + 15) // 16) * 16
    if M != M0:
        x = jnp.pad(x, ((0, M - M0), (0, 0)))

    n_pad = max(128, ((out_dim + 127) // 128) * 128)
    w_last, b_last = layers[-1]
    w_last = jnp.pad(w_last, ((0, 0), (0, n_pad - out_dim)))
    b_last = jnp.pad(b_last, ((0, 0), (0, n_pad - out_dim)))
    all_layers = list(layers[:-1]) + [(w_last, b_last)]

    tm = _row_tile(M)
    in_specs = [pl.BlockSpec((tm, E), lambda i: (i, 0))]
    args = [x]
    for w, b in all_layers:
        din, dout = w.shape
        in_specs.append(pl.BlockSpec((din, dout), lambda i: (0, 0)))
        in_specs.append(pl.BlockSpec((1, dout), lambda i: (0, 0)))
        args.append(w)
        args.append(b)

    out = pl.pallas_call(
        partial(_mlp_kernel, n_layers=len(all_layers)),
        out_shape=jax.ShapeDtypeStruct((M, n_pad), ACT_DTYPE),
        grid_spec=pltpu.PrefetchScalarGridSpec(
            num_scalar_prefetch=0,
            grid=(M // tm,),
            in_specs=in_specs,
            out_specs=pl.BlockSpec((tm, n_pad), lambda i: (i, 0)),
        ),
        compiler_params=_mosaic_params(("parallel",)),
    )(*args)
    return out[:M0, :out_dim].astype(jnp.float32)


# ----------------------------------------------------------------------------
# Softmax (only used when apply_softmax=True)
# ----------------------------------------------------------------------------
def _softmax_kernel(x_ref, o_ref):
    x = x_ref[...].astype(jnp.float32)
    x = x - jnp.max(x, axis=-1, keepdims=True)
    e = jnp.exp(x)
    o_ref[...] = (e / jnp.sum(e, axis=-1, keepdims=True)).astype(o_ref.dtype)


def softmax2d(x):
    M, N = x.shape
    tm = _row_tile(M)
    return pl.pallas_call(
        _softmax_kernel,
        out_shape=jax.ShapeDtypeStruct((M, N), x.dtype),
        grid_spec=pltpu.PrefetchScalarGridSpec(
            num_scalar_prefetch=0,
            grid=(M // tm,),
            in_specs=[pl.BlockSpec((tm, N), lambda i: (i, 0))],
            out_specs=pl.BlockSpec((tm, N), lambda i: (i, 0)),
        ),
        compiler_params=_mosaic_params(("parallel",)),
    )(x)


# ----------------------------------------------------------------------------
# Parameter construction (deterministic, synthetic "pretrained" weights)
# ----------------------------------------------------------------------------
def make_params(key, *, vocab, max_pos, type_vocab, E, H, ffn, n_enc_layers,
                mlp_hidden, label_vocab, intent_vocab, n_hidden_layers):
    Dh = E // H
    keys = iter(jax.random.split(key, 1024))

    def dense(shape, std=0.02):
        return (jax.random.normal(next(keys), shape, jnp.float32) * std
                ).astype(ACT_DTYPE)

    p = {
        "word_emb": jax.random.normal(next(keys), (vocab, E), jnp.float32) * 0.02,
        "pos_emb": jax.random.normal(next(keys), (max_pos, E), jnp.float32) * 0.02,
        "type_emb": jax.random.normal(next(keys), (type_vocab, E), jnp.float32) * 0.02,
        "emb_ln_g": jnp.ones((1, E), jnp.float32),
        "emb_ln_b": jnp.zeros((1, E), jnp.float32),
        "layers": [],
    }
    for _ in range(n_enc_layers):
        layer = {
            # head-major QKV: slices [0:H)=Q heads, [H:2H)=K heads, [2H:3H)=V heads
            "w_qkv": dense((3 * H, E, Dh)),
            "b_qkv": jnp.zeros((3 * H, 1, Dh), ACT_DTYPE),
            "wo": dense((H, Dh, E)),          # head-major output projection
            "bo": jnp.zeros((1, E), ACT_DTYPE),
            "ln1_g": jnp.ones((1, E), jnp.float32),
            "ln1_b": jnp.zeros((1, E), jnp.float32),
            "w1": dense((E, ffn)),
            "b1": jnp.zeros((1, ffn), ACT_DTYPE),
            "w2": dense((ffn, E)),
            "b2": jnp.zeros((1, E), ACT_DTYPE),
            "ln2_g": jnp.ones((1, E), jnp.float32),
            "ln2_b": jnp.zeros((1, E), jnp.float32),
        }
        p["layers"].append(layer)

    def make_mlp(out_size):
        # Linear(E,h)+ReLU+Drop(0) + n_hidden*[Linear(h,h)+ReLU+Drop(0)] + Linear(h,out)
        layers = [(dense((E, mlp_hidden)), jnp.zeros((1, mlp_hidden), ACT_DTYPE))]
        for _ in range(n_hidden_layers):
            layers.append((dense((mlp_hidden, mlp_hidden)),
                           jnp.zeros((1, mlp_hidden), ACT_DTYPE)))
        layers.append((dense((mlp_hidden, out_size)),
                       jnp.zeros((1, out_size), ACT_DTYPE)))
        return layers

    p["lin_ner"] = make_mlp(label_vocab)
    p["lin_ic"] = make_mlp(intent_vocab)
    return p


# ----------------------------------------------------------------------------
# Forward pass (glue in JAX, hot paths in Pallas, no inter-kernel relayouts)
# ----------------------------------------------------------------------------
def bert_encoder(ids, p, num_heads):
    B, S = ids.shape
    E = p["word_emb"].shape[1]
    H = num_heads
    Dh = E // H
    q_scale = 1.0 / math.sqrt(Dh)
    M = B * S

    # TODO(synk): move the embedding gathers into a Pallas DMA-gather kernel;
    # kept as XLA glue for now (no clean single-block Pallas gather).
    h = (p["word_emb"][ids]
         + p["pos_emb"][jnp.arange(S)][None, :, :]
         + p["type_emb"][0][None, None, :])
    hs = layernorm(h.reshape(M, E), p["emb_ln_g"], p["emb_ln_b"])   # (M, E) bf16

    for layer in p["layers"]:
        # fused QKV projection -> head-major (3H, M, Dh); q pre-scaled in f32
        qkv = qkv_project(hs, layer["w_qkv"], layer["b_qkv"], H, q_scale)
        # flash attention reads q/k/v straight from qkv via index_maps
        attn = flash_attention(qkv, B, S, H, Dh)                    # (H, M, Dh)
        # attention-out projection (reduction over heads) + residual + LN fused
        hs = attn_out_residual_ln(attn, layer["wo"], layer["bo"], hs,
                                  layer["ln1_g"], layer["ln1_b"])
        # up-proj + GELU + down-proj + residual + LN fused (no HBM intermediate)
        hs = ffn_residual_ln(hs, layer["w1"], layer["b1"], layer["w2"],
                             layer["b2"], layer["ln2_g"], layer["ln2_b"])

    return hs.reshape(B, S, E)


def bert_for_ic_and_ner(text_ids, params, num_heads, apply_softmax=False):
    """Mirrors BertForIcAndNer.forward: returns (ic_out, ner_out)."""
    B, S = text_ids.shape
    encoded = bert_encoder(text_ids, params, num_heads)    # (B, S, E) bf16
    E = encoded.shape[-1]

    ner_in = encoded[:, 1:, :].reshape(B * (S - 1), E)     # tokens after [CLS]
    ic_in = encoded[:, 0, :]                               # [CLS] token

    label_vocab = params["lin_ner"][-1][0].shape[1]
    intent_vocab = params["lin_ic"][-1][0].shape[1]
    ner_out = mlp_head(ner_in, params["lin_ner"], label_vocab)
    ic_out = mlp_head(ic_in, params["lin_ic"], intent_vocab)

    if apply_softmax:
        ner_out = softmax2d(ner_out)
        ic_out = softmax2d(ic_out)

    return ic_out, ner_out.reshape(B, S - 1, -1)


# ----------------------------------------------------------------------------
if __name__ == "__main__":
    # Small synthetic configuration.
    B, S = 2, 8
    VOCAB, MAX_POS, TYPE_VOCAB = 100, 32, 2
    E, HEADS, FFN, N_ENC_LAYERS = 32, 4, 64, 2
    MLP_HIDDEN, LABEL_VOCAB, INTENT_VOCAB, N_HIDDEN_LAYERS = 32, 9, 6, 5

    key = jax.random.PRNGKey(0)
    k_param, k_ids = jax.random.split(key)
    params = make_params(
        k_param, vocab=VOCAB, max_pos=MAX_POS, type_vocab=TYPE_VOCAB,
        E=E, H=HEADS, ffn=FFN, n_enc_layers=N_ENC_LAYERS,
        mlp_hidden=MLP_HIDDEN, label_vocab=LABEL_VOCAB,
        intent_vocab=INTENT_VOCAB, n_hidden_layers=N_HIDDEN_LAYERS,
    )

    text = jax.random.randint(k_ids, (B, S), 0, VOCAB, dtype=jnp.int32)

    fwd = jax.jit(bert_for_ic_and_ner, static_argnames=("num_heads", "apply_softmax"))
    ic_out, ner_out = fwd(text, params, num_heads=HEADS, apply_softmax=False)
    jax.block_until_ready((ic_out, ner_out))

    assert ic_out.shape == (B, INTENT_VOCAB), ic_out.shape
    assert ner_out.shape == (B, S - 1, LABEL_VOCAB), ner_out.shape
    assert jnp.all(jnp.isfinite(ic_out)) and jnp.all(jnp.isfinite(ner_out))
    print("KERNEL_OK")
</pallas_src>

<mosaic_0001>
module attributes {stable_mosaic.version = 11 : i64} {
  func.func @_layernorm_kernel(%arg0: i32, %arg1: memref<16x32xf32, #tpu.memory_space<vmem>>, %arg2: memref<1x32xf32, #tpu.memory_space<vmem>>, %arg3: memref<1x32xf32, #tpu.memory_space<vmem>>, %arg4: memref<16x32xbf16, #tpu.memory_space<vmem>>) attributes {dimension_semantics = [#tpu.dimension_semantics<parallel>], iteration_bounds = array<i64: 1>, scalar_prefetch = 0 : i64, scratch_operands = 0 : i64, tpu.core_type = #tpu.core_type<tc>, window_params = [{transform_indices = @transform_0, window_bounds = array<i64: 16, 32>}, {pipeline_mode = #tpu.pipeline_mode<synchronous>, transform_indices = @transform_1, window_bounds = array<i64: 1, 32>}, {pipeline_mode = #tpu.pipeline_mode<synchronous>, transform_indices = @transform_2, window_bounds = array<i64: 1, 32>}, {transform_indices = @transform_3, window_bounds = array<i64: 16, 32>}]} {
    %c0 = arith.constant 0 : index
    %c0_0 = arith.constant 0 : index
    %0 = vector.load %arg1[%c0, %c0_0] : memref<16x32xf32, #tpu.memory_space<vmem>>, vector<16x32xf32>
    %c0_1 = arith.constant 0 : index
    %c0_2 = arith.constant 0 : index
    %1 = vector.load %arg2[%c0_1, %c0_2] : memref<1x32xf32, #tpu.memory_space<vmem>>, vector<1x32xf32>
    %c0_3 = arith.constant 0 : index
    %c0_4 = arith.constant 0 : index
    %2 = vector.load %arg3[%c0_3, %c0_4] : memref<1x32xf32, #tpu.memory_space<vmem>>, vector<1x32xf32>
    %cst = arith.constant dense<0.000000e+00> : vector<16xf32>
    %3 = vector.multi_reduction <add>, %0, %cst [1] : vector<16x32xf32> to vector<16xf32>
    %4 = vector.shape_cast %3 : vector<16xf32> to vector<16x1xf32>
    %cst_5 = arith.constant 3.200000e+01 : f32
    %5 = vector.broadcast %cst_5 : f32 to vector<16x1xf32>
    %6 = arith.divf %4, %5 : vector<16x1xf32>
    %7 = vector.broadcast %6 : vector<16x1xf32> to vector<16x32xf32>
    %8 = arith.subf %0, %7 : vector<16x32xf32>
    %9 = arith.mulf %8, %8 : vector<16x32xf32>
    %cst_6 = arith.constant dense<0.000000e+00> : vector<16xf32>
    %10 = vector.multi_reduction <add>, %9, %cst_6 [1] : vector<16x32xf32> to vector<16xf32>
    %11 = vector.shape_cast %10 : vector<16xf32> to vector<16x1xf32>
    %cst_7 = arith.constant 3.200000e+01 : f32
    %12 = vector.broadcast %cst_7 : f32 to vector<16x1xf32>
    %13 = arith.divf %11, %12 : vector<16x1xf32>
    %14 = vector.broadcast %6 : vector<16x1xf32> to vector<16x32xf32>
    %15 = arith.subf %0, %14 : vector<16x32xf32>
    %cst_8 = arith.constant 9.99999996E-13 : f32
    %16 = vector.broadcast %cst_8 : f32 to vector<16x1xf32>
    %17 = arith.addf %13, %16 : vector<16x1xf32>
    %18 = math.rsqrt %17 : vector<16x1xf32>
    %19 = vector.broadcast %18 : vector<16x1xf32> to vector<16x32xf32>
    %20 = arith.mulf %15, %19 : vector<16x32xf32>
    %21 = vector.broadcast %1 : vector<1x32xf32> to vector<16x32xf32>
    %22 = arith.mulf %20, %21 : vector<16x32xf32>
    %23 = vector.broadcast %2 : vector<1x32xf32> to vector<16x32xf32>
    %24 = arith.addf %22, %23 : vector<16x32xf32>
    %25 = arith.truncf %24 : vector<16x32xf32> to vector<16x32xbf16>
    %c0_9 = arith.constant 0 : index
    %c0_10 = arith.constant 0 : index
    %26 = vector.load %arg4[%c0_9, %c0_10] : memref<16x32xbf16, #tpu.memory_space<vmem>>, vector<16x32xbf16>
    tpu.vector_store %arg4[%c0_9, %c0_10], %25 {strides = array<i32>} : memref<16x32xbf16, #tpu.memory_space<vmem>>, vector<16x32xbf16>,
    return
  }
  func.func @transform_0(%arg0: i32) -> (i32, i32) {
    %c0_i32 = arith.constant 0 : i32
    %c0_i32_0 = arith.constant 0 : i32
    return %arg0, %c0_i32 : i32, i32
  }
  func.func @transform_1(%arg0: i32) -> (i32, i32) {
    %c0_i32 = arith.constant 0 : i32
    %c0_i32_0 = arith.constant 0 : i32
    %c0_i32_1 = arith.constant 0 : i32
    return %c0_i32, %c0_i32_0 : i32, i32
  }
  func.func @transform_2(%arg0: i32) -> (i32, i32) {
    %c0_i32 = arith.constant 0 : i32
    %c0_i32_0 = arith.constant 0 : i32
    %c0_i32_1 = arith.constant 0 : i32
    return %c0_i32, %c0_i32_0 : i32, i32
  }
  func.func @transform_3(%arg0: i32) -> (i32, i32) {
    %c0_i32 = arith.constant 0 : i32
    %c0_i32_0 = arith.constant 0 : i32
    return %arg0, %c0_i32 : i32, i32
  }
}

module attributes {stable_mosaic.version = 11 : i64} {
  func.func @_qkv_kernel(%arg0: i32, %arg1: memref<16x32xbf16, #tpu.memory_space<vmem>>, %arg2: memref<12x32x8xbf16, #tpu.memory_space<vmem>>, %arg3: memref<12x1x8xbf16, #tpu.memory_space<vmem>>, %arg4: memref<12x16x8xbf16, #tpu.memory_space<vmem>>) attributes {dimension_semantics = [#tpu.dimension_semantics<parallel>], iteration_bounds = array<i64: 1>, scalar_prefetch = 0 : i64, scratch_operands = 0 : i64, tpu.core_type = #tpu.core_type<tc>, window_params = [{transform_indices = @transform_0, window_bounds = array<i64: 16, 32>}, {pipeline_mode = #tpu.pipeline_mode<synchronous>, transform_indices = @transform_1, window_bounds = array<i64: 12, 32, 8>}, {pipeline_mode = #tpu.pipeline_mode<synchronous>, transform_indices = @transform_2, window_bounds = array<i64: 12, 1, 8>}, {transform_indices = @transform_3, window_bounds = array<i64: 12, 16, 8>}]} {
    %c0 = arith.constant 0 : index
    %c0_0 = arith.constant 0 : index
    %0 = vector.load %arg1[%c0, %c0_0] : memref<16x32xbf16, #tpu.memory_space<vmem>>, vector<16x32xbf16>
    %c0_1 = arith.constant 0 : index
    %c0_2 = arith.constant 0 : index
    %c0_3 = arith.constant 0 : index
    %1 = vector.load %arg2[%c0_1, %c0_2, %c0_3] : memref<12x32x8xbf16, #tpu.memory_space<vmem>>, vector<1x32x8xbf16>
    %2 = vector.shape_cast %1 : vector<1x32x8xbf16> to vector<32x8xbf16>
    %cst = arith.constant dense<0.000000e+00> : vector<16x8xf32>
    %3 = tpu.matmul %0, %2, %cst {dimension_numbers = #tpu.dot_dimension_numbers<[1], [0], [0], [1], [0, 0, 1, 1], [], []>} : vector<16x32xbf16>, vector<32x8xbf16>, vector<16x8xf32> -> vector<16x8xf32>
    %c0_4 = arith.constant 0 : index
    %c0_5 = arith.constant 0 : index
    %c0_6 = arith.constant 0 : index
    %4 = vector.load %arg3[%c0_4, %c0_5, %c0_6] : memref<12x1x8xbf16, #tpu.memory_space<vmem>>, vector<1x1x8xbf16>
    %5 = vector.shape_cast %4 : vector<1x1x8xbf16> to vector<1x8xbf16>
    %6 = arith.extf %5 : vector<1x8xbf16> to vector<1x8xf32>
    %7 = vector.broadcast %6 : vector<1x8xf32> to vector<16x8xf32>
    %8 = arith.addf %3, %7 : vector<16x8xf32>
    %cst_7 = arith.constant 0.353553385 : f32
    %9 = vector.broadcast %cst_7 : f32 to vector<16x8xf32>
    %10 = arith.mulf %8, %9 : vector<16x8xf32>
    %11 = arith.truncf %10 : vector<16x8xf32> to vector<16x8xbf16>
    %c0_8 = arith.constant 0 : index
    %c0_9 = arith.constant 0 : index
    %c0_10 = arith.constant 0 : index
    %12 = vector.load %arg4[%c0_8, %c0_9, %c0_10] : memref<12x16x8xbf16, #tpu.memory_space<vmem>>, vector<1x16x8xbf16>
    %13 = vector.shape_cast %12 : vector<1x16x8xbf16> to vector<16x8xbf16>
    %14 = vector.shape_cast %11 : vector<16x8xbf16> to vector<1x16x8xbf16>
    tpu.vector_store %arg4[%c0_8, %c0_9, %c0_10], %14 {strides = array<i32>} : memref<12x16x8xbf16, #tpu.memory_space<vmem>>, vector<1x16x8xbf16>,
    %c1 = arith.constant 1 : index
    %c0_11 = arith.constant 0 : index
    %c0_12 = arith.constant 0 : index
    %15 = vector.load %arg2[%c1, %c0_11, %c0_12] : memref<12x32x8xbf16, #tpu.memory_space<vmem>>, vector<1x32x8xbf16>
    %16 = vector.shape_cast %15 : vector<1x32x8xbf16> to vector<32x8xbf16>
    %cst_13 = arith.constant dense<0.000000e+00> : vector<16x8xf32>
    %17 = tpu.matmul %0, %16, %cst_13 {dimension_numbers = #tpu.dot_dimension_numbers<[1], [0], [0], [1], [0, 0, 1, 1], [], []>} : vector<16x32xbf16>, vector<32x8xbf16>, vector<16x8xf32> -> vector<16x8xf32>
    %c1_14 = arith.constant 1 : index
    %c0_15 = arith.constant 0 : index
    %c0_16 = arith.constant 0 : index
    %18 = vector.load %arg3[%c1_14, %c0_15, %c0_16] : memref<12x1x8xbf16, #tpu.memory_space<vmem>>, vector<1x1x8xbf16>
    %19 = vector.shape_cast %18 : vector<1x1x8xbf16> to vector<1x8xbf16>
    %20 = arith.extf %19 : vector<1x8xbf16> to vector<1x8xf32>
    %21 = vector.broadcast %20 : vector<1x8xf32> to vector<16x8xf32>
    %22 = arith.addf %17, %21 : vector<16x8xf32>
    %cst_17 = arith.constant 0.353553385 : f32
    %23 = vector.broadcast %cst_17 : f32 to vector<16x8xf32>
    %24 = arith.mulf %22, %23 : vector<16x8xf32>
    %25 = arith.truncf %24 : vector<16x8xf32> to vector<16x8xbf16>
    %c1_18 = arith.constant 1 : index
    %c0_19 = arith.constant 0 : index
    %c0_20 = arith.constant 0 : index
    %26 = vector.load %arg4[%c1_18, %c0_19, %c0_20] : memref<12x16x8xbf16, #tpu.memory_space<vmem>>, vector<1x16x8xbf16>
    %27 = vector.shape_cast %26 : vector<1x16x8xbf16> to vector<16x8xbf16>
    %28 = vector.shape_cast %25 : vector<16x8xbf16> to vector<1x16x8xbf16>
    tpu.vector_store %arg4[%c1_18, %c0_19, %c0_20], %28 {strides = array<i32>} : memref<12x16x8xbf16, #tpu.memory_space<vmem>>, vector<1x16x8xbf16>,
    %c2 = arith.constant 2 : index
    %c0_21 = arith.constant 0 : index
    %c0_22 = arith.constant 0 : index
    %29 = vector.load %arg2[%c2, %c0_21, %c0_22] : memref<12x32x8xbf16, #tpu.memory_space<vmem>>, vector<1x32x8xbf16>
    %30 = vector.shape_cast %29 : vector<1x32x8xbf16> to vector<32x8xbf16>
    %cst_23 = arith.constant dense<0.000000e+00> : vector<16x8xf32>
    %31 = tpu.matmul %0, %30, %cst_23 {dimension_numbers = #tpu.dot_dimension_numbers<[1], [0], [0], [1], [0, 0, 1, 1], [], []>} : vector<16x32xbf16>, vector<32x8xbf16>, vector<16x8xf32> -> vector<16x8xf32>
    %c2_24 = arith.constant 2 : index
    %c0_25 = arith.constant 0 : index
    %c0_26 = arith.constant 0 : index
    %32 = vector.load %arg3[%c2_24, %c0_25, %c0_26] : memref<12x1x8xbf16, #tpu.memory_space<vmem>>, vector<1x1x8xbf16>
    %33 = vector.shape_cast %32 : vector<1x1x8xbf16> to vector<1x8xbf16>
    %34 = arith.extf %33 : vector<1x8xbf16> to vector<1x8xf32>
    %35 = vector.broadcast %34 : vector<1x8xf32> to vector<16x8xf32>
    %36 = arith.addf %31, %35 : vector<16x8xf32>
    %cst_27 = arith.constant 0.353553385 : f32
    %37 = vector.broadcast %cst_27 : f32 to vector<16x8xf32>
    %38 = arith.mulf %36, %37 : vector<16x8xf32>
    %39 = arith.truncf %38 : vector<16x8xf32> to vector<16x8xbf16>
    %c2_28 = arith.constant 2 : index
    %c0_29 = arith.constant 0 : index
    %c0_30 = arith.constant 0 : index
    %40 = vector.load %arg4[%c2_28, %c0_29, %c0_30] : memref<12x16x8xbf16, #tpu.memory_space<vmem>>, vector<1x16x8xbf16>
    %41 = vector.shape_cast %40 : vector<1x16x8xbf16> to vector<16x8xbf16>
    %42 = vector.shape_cast %39 : vector<16x8xbf16> to vector<1x16x8xbf16>
    tpu.vector_store %arg4[%c2_28, %c0_29, %c0_30], %42 {strides = array<i32>} : memref<12x16x8xbf16, #tpu.memory_space<vmem>>, vector<1x16x8xbf16>,
    %c3 = arith.constant 3 : index
    %c0_31 = arith.constant 0 : index
    %c0_32 = arith.constant 0 : index
    %43 = vector.load %arg2[%c3, %c0_31, %c0_32] : memref<12x32x8xbf16, #tpu.memory_space<vmem>>, vector<1x32x8xbf16>
    %44 = vector.shape_cast %43 : vector<1x32x8xbf16> to vector<32x8xbf16>
    %cst_33 = arith.constant dense<0.000000e+00> : vector<16x8xf32>
    %45 = tpu.matmul %0, %44, %cst_33 {dimension_numbers = #tpu.dot_dimension_numbers<[1], [0], [0], [1], [0, 0, 1, 1], [], []>} : vector<16x32xbf16>, vector<32x8xbf16>, vector<16x8xf32> -> vector<16x8xf32>
    %c3_34 = arith.constant 3 : index
    %c0_35 = arith.constant 0 : index
    %c0_36 = arith.constant 0 : index
    %46 = vector.load %arg3[%c3_34, %c0_35, %c0_36] : memref<12x1x8xbf16, #tpu.memory_space<vmem>>, vector<1x1x8xbf16>
    %47 = vector.shape_cast %46 : vector<1x1x8xbf16> to vector<1x8xbf16>
    %48 = arith.extf %47 : vector<1x8xbf16> to vector<1x8xf32>
    %49 = vector.broadcast %48 : vector<1x8xf32> to vector<16x8xf32>
    %50 = arith.addf %45, %49 : vector<16x8xf32>
    %cst_37 = arith.constant 0.353553385 : f32
    %51 = vector.broadcast %cst_37 : f32 to vector<16x8xf32>
    %52 = arith.mulf %50, %51 : vector<16x8xf32>
    %53 = arith.truncf %52 : vector<16x8xf32> to vector<16x8xbf16>
    %c3_38 = arith.constant 3 : index
    %c0_39 = arith.constant 0 : index
    %c0_40 = arith.constant 0 : index
    %54 = vector.load %arg4[%c3_38, %c0_39, %c0_40] : memref<12x16x8xbf16, #tpu.memory_space<vmem>>, vector<1x16x8xbf16>
    %55 = vector.shape_cast %54 : vector<1x16x8xbf16> to vector<16x8xbf16>
    %56 = vector.shape_cast %53 : vector<16x8xbf16> to vector<1x16x8xbf16>
    tpu.vector_store %arg4[%c3_38, %c0_39, %c0_40], %56 {strides = array<i32>} : memref<12x16x8xbf16, #tpu.memory_space<vmem>>, vector<1x16x8xbf16>,
    %c4 = arith.constant 4 : index
    %c0_41 = arith.constant 0 : index
    %c0_42 = arith.constant 0 : index
    %57 = vector.load %arg2[%c4, %c0_41, %c0_42] : memref<12x32x8xbf16, #tpu.memory_space<vmem>>, vector<1x32x8xbf16>
    %58 = vector.shape_cast %57 : vector<1x32x8xbf16> to vector<32x8xbf16>
    %cst_43 = arith.constant dense<0.000000e+00> : vector<16x8xf32>
    %59 = tpu.matmul %0, %58, %cst_43 {dimension_numbers = #tpu.dot_dimension_numbers<[1], [0], [0], [1], [0, 0, 1, 1], [], []>} : vector<16x32xbf16>, vector<32x8xbf16>, vector<16x8xf32> -> vector<16x8xf32>
    %c4_44 = arith.constant 4 : index
    %c0_45 = arith.constant 0 : index
    %c0_46 = arith.constant 0 : index
    %60 = vector.load %arg3[%c4_44, %c0_45, %c0_46] : memref<12x1x8xbf16, #tpu.memory_space<vmem>>, vector<1x1x8xbf16>
    %61 = vector.shape_cast %60 : vector<1x1x8xbf16> to vector<1x8xbf16>
    %62 = arith.extf %61 : vector<1x8xbf16> to vector<1x8xf32>
    %63 = vector.broadcast %62 : vector<1x8xf32> to vector<16x8xf32>
    %64 = arith.addf %59, %63 : vector<16x8xf32>
    %65 = arith.truncf %64 : vector<16x8xf32> to vector<16x8xbf16>
    %c4_47 = arith.constant 4 : index
    %c0_48 = arith.constant 0 : index
    %c0_49 = arith.constant 0 : index
    %66 = vector.load %arg4[%c4_47, %c0_48, %c0_49] : memref<12x16x8xbf16, #tpu.memory_space<vmem>>, vector<1x16x8xbf16>
    %67 = vector.shape_cast %66 : vector<1x16x8xbf16> to vector<16x8xbf16>
    %68 = vector.shape_cast %65 : vector<16x8xbf16> to vector<1x16x8xbf16>
    tpu.vector_store %arg4[%c4_47, %c0_48, %c0_49], %68 {strides = array<i32>} : memref<12x16x8xbf16, #tpu.memory_space<vmem>>, vector<1x16x8xbf16>,
    %c5 = arith.constant 5 : index
    %c0_50 = arith.constant 0 : index
    %c0_51 = arith.constant 0 : index
    %69 = vector.load %arg2[%c5, %c0_50, %c0_51] : memref<12x32x8xbf16, #tpu.memory_space<vmem>>, vector<1x32x8xbf16>
    %70 = vector.shape_cast %69 : vector<1x32x8xbf16> to vector<32x8xbf16>
    %cst_52 = arith.constant dense<0.000000e+00> : vector<16x8xf32>
    %71 = tpu.matmul %0, %70, %cst_52 {dimension_numbers = #tpu.dot_dimension_numbers<[1], [0], [0], [1], [0, 0, 1, 1], [], []>} : vector<16x32xbf16>, vector<32x8xbf16>, vector<16x8xf32> -> vector<16x8xf32>
    %c5_53 = arith.constant 5 : index
    %c0_54 = arith.constant 0 : index
    %c0_55 = arith.constant 0 : index
    %72 = vector.load %arg3[%c5_53, %c0_54, %c0_55] : memref<12x1x8xbf16, #tpu.memory_space<vmem>>, vector<1x1x8xbf16>
    %73 = vector.shape_cast %72 : vector<1x1x8xbf16> to vector<1x8xbf16>
    %74 = arith.extf %73 : vector<1x8xbf16> to vector<1x8xf32>
    %75 = vector.broadcast %74 : vector<1x8xf32> to vector<16x8xf32>
    %76 = arith.addf %71, %75 : vector<16x8xf32>
    %77 = arith.truncf %76 : vector<16x8xf32> to vector<16x8xbf16>
    %c5_56 = arith.constant 5 : index
    %c0_57 = arith.constant 0 : index
    %c0_58 = arith.constant 0 : index
    %78 = vector.load %arg4[%c5_56, %c0_57, %c0_58] : memref<12x16x8xbf16, #tpu.memory_space<vmem>>, vector<1x16x8xbf16>
    %79 = vector.shape_cast %78 : vector<1x16x8xbf16> to vector<16x8xbf16>
    %80 = vector.shape_cast %77 : vector<16x8xbf16> to vector<1x16x8xbf16>
    tpu.vector_store %arg4[%c5_56, %c0_57, %c0_58], %80 {strides = array<i32>} : memref<12x16x8xbf16, #tpu.memory_space<vmem>>, vector<1x16x8xbf16>,
    %c6 = arith.constant 6 : index
    %c0_59 = arith.constant 0 : index
    %c0_60 = arith.constant 0 : index
    %81 = vector.load %arg2[%c6, %c0_59, %c0_60] : memref<12x32x8xbf16, #tpu.memory_space<vmem>>, vector<1x32x8xbf16>
    %82 = vector.shape_cast %81 : vector<1x32x8xbf16> to vector<32x8xbf16>
    %cst_61 = arith.constant dense<0.000000e+00> : vector<16x8xf32>
    %83 = tpu.matmul %0, %82, %cst_61 {dimension_numbers = #tpu.dot_dimension_numbers<[1], [0], [0], [1], [0, 0, 1, 1], [], []>} : vector<16x32xbf16>, vector<32x8xbf16>, vector<16x8xf32> -> vector<16x8xf32>
    %c6_62 = arith.constant 6 : index
    %c0_63 = arith.constant 0 : index
    %c0_64 = arith.constant 0 : index
    %84 = vector.load %arg3[%c6_62, %c0_63, %c0_64] : memref<12x1x8xbf16, #tpu.memory_space<vmem>>, vector<1x1x8xbf16>
    %85 = vector.shape_cast %84 : vector<1x1x8xbf16> to vector<1x8xbf16>
    %86 = arith.extf %85 : vector<1x8xbf16> to vector<1x8xf32>
    %87 = vector.broadcast %86 : vector<1x8xf32> to vector<16x8xf32>
    %88 = arith.addf %83, %87 : vector<16x8xf32>
    %89 = arith.truncf %88 : vector<16x8xf32> to vector<16x8xbf16>
    %c6_65 = arith.constant 6 : index
    %c0_66 = arith.constant 0 : index
    %c0_67 = arith.constant 0 : index
    %90 = vector.load %arg4[%c6_65, %c0_66, %c0_67] : memref<12x16x8xbf16, #tpu.memory_space<vmem>>, vector<1x16x8xbf16>
    %91 = vector.shape_cast %90 : vector<1x16x8xbf16> to vector<16x8xbf16>
    %92 = vector.shape_cast %89 : vector<16x8xbf16> to vector<1x16x8xbf16>
    tpu.vector_store %arg4[%c6_65, %c0_66, %c0_67], %92 {strides = array<i32>} : memref<12x16x8xbf16, #tpu.memory_space<vmem>>, vector<1x16x8xbf16>,
    %c7 = arith.constant 7 : index
    %c0_68 = arith.constant 0 : index
    %c0_69 = arith.constant 0 : index
    %93 = vector.load %arg2[%c7, %c0_68, %c0_69] : memref<12x32x8xbf16, #tpu.memory_space<vmem>>, vector<1x32x8xbf16>
    %94 = vector.shape_cast %93 : vector<1x32x8xbf16> to vector<32x8xbf16>
    %cst_70 = arith.constant dense<0.000000e+00> : vector<16x8xf32>
    %95 = tpu.matmul %0, %94, %cst_70 {dimension_numbers = #tpu.dot_dimension_numbers<[1], [0], [0], [1], [0, 0, 1, 1], [], []>} : vector<16x32xbf16>, vector<32x8xbf16>, vector<16x8xf32> -> vector<16x8xf32>
    %c7_71 = arith.constant 7 : index
    %c0_72 = arith.constant 0 : index
    %c0_73 = arith.constant 0 : index
    %96 = vector.load %arg3[%c7_71, %c0_72, %c0_73] : memref<12x1x8xbf16, #tpu.memory_space<vmem>>, vector<1x1x8xbf16>
    %97 = vector.shape_cast %96 : vector<1x1x8xbf16> to vector<1x8xbf16>
    %98 = arith.extf %97 : vector<1x8xbf16> to vector<1x8xf32>
    %99 = vector.broadcast %98 : vector<1x8xf32> to vector<16x8xf32>
    %100 = arith.addf %95, %99 : vector<16x8xf32>
    %101 = arith.truncf %100 : vector<16x8xf32> to vector<16x8xbf16>
    %c7_74 = arith.constant 7 : index
    %c0_75 = arith.constant 0 : index
    %c0_76 = arith.constant 0 : index
    %102 = vector.load %arg4[%c7_74, %c0_75, %c0_76] : memref<12x16x8xbf16, #tpu.memory_space<vmem>>, vector<1x16x8xbf16>
    %103 = vector.shape_cast %102 : vector<1x16x8xbf16> to vector<16x8xbf16>
    %104 = vector.shape_cast %101 : vector<16x8xbf16> to vector<1x16x8xbf16>
    tpu.vector_store %arg4[%c7_74, %c0_75, %c0_76], %104 {strides = array<i32>} : memref<12x16x8xbf16, #tpu.memory_space<vmem>>, vector<1x16x8xbf16>,
    %c8 = arith.constant 8 : index
    %c0_77 = arith.constant 0 : index
    %c0_78 = arith.constant 0 : index
    %105 = vector.load %arg2[%c8, %c0_77, %c0_78] : memref<12x32x8xbf16, #tpu.memory_space<vmem>>, vector<1x32x8xbf16>
    %106 = vector.shape_cast %105 : vector<1x32x8xbf16> to vector<32x8xbf16>
    %cst_79 = arith.constant dense<0.000000e+00> : vector<16x8xf32>
    %107 = tpu.matmul %0, %106, %cst_79 {dimension_numbers = #tpu.dot_dimension_numbers<[1], [0], [0], [1], [0, 0, 1, 1], [], []>} : vector<16x32xbf16>, vector<32x8xbf16>, vector<16x8xf32> -> vector<16x8xf32>
    %c8_80 = arith.constant 8 : index
    %c0_81 = arith.constant 0 : index
    %c0_82 = arith.constant 0 : index
    %108 = vector.load %arg3[%c8_80, %c0_81, %c0_82] : memref<12x1x8xbf16, #tpu.memory_space<vmem>>, vector<1x1x8xbf16>
    %109 = vector.shape_cast %108 : vector<1x1x8xbf16> to vector<1x8xbf16>
    %110 = arith.extf %109 : vector<1x8xbf16> to vector<1x8xf32>
    %111 = vector.broadcast %110 : vector<1x8xf32> to vector<16x8xf32>
    %112 = arith.addf %107, %111 : vector<16x8xf32>
    %113 = arith.truncf %112 : vector<16x8xf32> to vector<16x8xbf16>
    %c8_83 = arith.constant 8 : index
    %c0_84 = arith.constant 0 : index
    %c0_85 = arith.constant 0 : index
    %114 = vector.load %arg4[%c8_83, %c0_84, %c0_85] : memref<12x16x8xbf16, #tpu.memory_space<vmem>>, vector<1x16x8xbf16>
    %115 = vector.shape_cast %114 : vector<1x16x8xbf16> to vector<16x8xbf16>
    %116 = vector.shape_cast %113 : vector<16x8xbf16> to vector<1x16x8xbf16>
    tpu.vector_store %arg4[%c8_83, %c0_84, %c0_85], %116 {strides = array<i32>} : memref<12x16x8xbf16, #tpu.memory_space<vmem>>, vector<1x16x8xbf16>,
    %c9 = arith.constant 9 : index
    %c0_86 = arith.constant 0 : index
    %c0_87 = arith.constant 0 : index
    %117 = vector.load %arg2[%c9, %c0_86, %c0_87] : memref<12x32x8xbf16, #tpu.memory_space<vmem>>, vector<1x32x8xbf16>
    %118 = vector.shape_cast %117 : vector<1x32x8xbf16> to vector<32x8xbf16>
    %cst_88 = arith.constant dense<0.000000e+00> : vector<16x8xf32>
    %119 = tpu.matmul %0, %118, %cst_88 {dimension_numbers = #tpu.dot_dimension_numbers<[1], [0], [0], [1], [0, 0, 1, 1], [], []>} : vector<16x32xbf16>, vector<32x8xbf16>, vector<16x8xf32> -> vector<16x8xf32>
    %c9_89 = arith.constant 9 : index
    %c0_90 = arith.constant 0 : index
    %c0_91 = arith.constant 0 : index
    %120 = vector.load %arg3[%c9_89, %c0_90, %c0_91] : memref<12x1x8xbf16, #tpu.memory_space<vmem>>, vector<1x1x8xbf16>
    %121 = vector.shape_cast %120 : vector<1x1x8xbf16> to vector<1x8xbf16>
    %122 = arith.extf %121 : vector<1x8xbf16> to vector<1x8xf32>
    %123 = vector.broadcast %122 : vector<1x8xf32> to vector<16x8xf32>
    %124 = arith.addf %119, %123 : vector<16x8xf32>
    %125 = arith.truncf %124 : vector<16x8xf32> to vector<16x8xbf16>
    %c9_92 = arith.constant 9 : index
    %c0_93 = arith.constant 0 : index
    %c0_94 = arith.constant 0 : index
    %126 = vector.load %arg4[%c9_92, %c0_93, %c0_94] : memref<12x16x8xbf16, #tpu.memory_space<vmem>>, vector<1x16x8xbf16>
    %127 = vector.shape_cast %126 : vector<1x16x8xbf16> to vector<16x8xbf16>
    %128 = vector.shape_cast %125 : vector<16x8xbf16> to vector<1x16x8xbf16>
    tpu.vector_store %arg4[%c9_92, %c0_93, %c0_94], %128 {strides = array<i32>} : memref<12x16x8xbf16, #tpu.memory_space<vmem>>, vector<1x16x8xbf16>,
    %c10 = arith.constant 10 : index
    %c0_95 = arith.constant 0 : index
    %c0_96 = arith.constant 0 : index
    %129 = vector.load %arg2[%c10, %c0_95, %c0_96] : memref<12x32x8xbf16, #tpu.memory_space<vmem>>, vector<1x32x8xbf16>
    %130 = vector.shape_cast %129 : vector<1x32x8xbf16> to vector<32x8xbf16>
    %cst_97 = arith.constant dense<0.000000e+00> : vector<16x8xf32>
    %131 = tpu.matmul %0, %130, %cst_97 {dimension_numbers = #tpu.dot_dimension_numbers<[1], [0], [0], [1], [0, 0, 1, 1], [], []>} : vector<16x32xbf16>, vector<32x8xbf16>, vector<16x8xf32> -> vector<16x8xf32>
    %c10_98 = arith.constant 10 : index
    %c0_99 = arith.constant 0 : index
    %c0_100 = arith.constant 0 : index
    %132 = vector.load %arg3[%c10_98, %c0_99, %c0_100] : memref<12x1x8xbf16, #tpu.memory_space<vmem>>, vector<1x1x8xbf16>
    %133 = vector.shape_cast %132 : vector<1x1x8xbf16> to vector<1x8xbf16>
    %134 = arith.extf %133 : vector<1x8xbf16> to vector<1x8xf32>
    %135 = vector.broadcast %134 : vector<1x8xf32> to vector<16x8xf32>
    %136 = arith.addf %131, %135 : vector<16x8xf32>
    %137 = arith.truncf %136 : vector<16x8xf32> to vector<16x8xbf16>
    %c10_101 = arith.constant 10 : index
    %c0_102 = arith.constant 0 : index
    %c0_103 = arith.constant 0 : index
    %138 = vector.load %arg4[%c10_101, %c0_102, %c0_103] : memref<12x16x8xbf16, #tpu.memory_space<vmem>>, vector<1x16x8xbf16>
    %139 = vector.shape_cast %138 : vector<1x16x8xbf16> to vector<16x8xbf16>
    %140 = vector.shape_cast %137 : vector<16x8xbf16> to vector<1x16x8xbf16>
    tpu.vector_store %arg4[%c10_101, %c0_102, %c0_103], %140 {strides = array<i32>} : memref<12x16x8xbf16, #tpu.memory_space<vmem>>, vector<1x16x8xbf16>,
    %c11 = arith.constant 11 : index
    %c0_104 = arith.constant 0 : index
    %c0_105 = arith.constant 0 : index
    %141 = vector.load %arg2[%c11, %c0_104, %c0_105] : memref<12x32x8xbf16, #tpu.memory_space<vmem>>, vector<1x32x8xbf16>
    %142 = vector.shape_cast %141 : vector<1x32x8xbf16> to vector<32x8xbf16>
    %cst_106 = arith.constant dense<0.000000e+00> : vector<16x8xf32>
    %143 = tpu.matmul %0, %142, %cst_106 {dimension_numbers = #tpu.dot_dimension_numbers<[1], [0], [0], [1], [0, 0, 1, 1], [], []>} : vector<16x32xbf16>, vector<32x8xbf16>, vector<16x8xf32> -> vector<16x8xf32>
    %c11_107 = arith.constant 11 : index
    %c0_108 = arith.constant 0 : index
    %c0_109 = arith.constant 0 : index
    %144 = vector.load %arg3[%c11_107, %c0_108, %c0_109] : memref<12x1x8xbf16, #tpu.memory_space<vmem>>, vector<1x1x8xbf16>
    %145 = vector.shape_cast %144 : vector<1x1x8xbf16> to vector<1x8xbf16>
    %146 = arith.extf %145 : vector<1x8xbf16> to vector<1x8xf32>
    %147 = vector.broadcast %146 : vector<1x8xf32> to vector<16x8xf32>
    %148 = arith.addf %143, %147 : vector<16x8xf32>
    %149 = arith.truncf %148 : vector<16x8xf32> to vector<16x8xbf16>
    %c11_110 = arith.constant 11 : index
    %c0_111 = arith.constant 0 : index
    %c0_112 = arith.constant 0 : index
    %150 = vector.load %arg4[%c11_110, %c0_111, %c0_112] : memref<12x16x8xbf16, #tpu.memory_space<vmem>>, vector<1x16x8xbf16>
    %151 = vector.shape_cast %150 : vector<1x16x8xbf16> to vector<16x8xbf16>
    %152 = vector.shape_cast %149 : vector<16x8xbf16> to vector<1x16x8xbf16>
    tpu.vector_store %arg4[%c11_110, %c0_111, %c0_112], %152 {strides = array<i32>} : memref<12x16x8xbf16, #tpu.memory_space<vmem>>, vector<1x16x8xbf16>,
    return
  }
  func.func @transform_0(%arg0: i32) -> (i32, i32) {
    %c0_i32 = arith.constant 0 : i32
    %c0_i32_0 = arith.constant 0 : i32
    return %arg0, %c0_i32 : i32, i32
  }
  func.func @transform_1(%arg0: i32) -> (i32, i32, i32) {
    %c0_i32 = arith.constant 0 : i32
    %c0_i32_0 = arith.constant 0 : i32
    %c0_i32_1 = arith.constant 0 : i32
    %c0_i32_2 = arith.constant 0 : i32
    return %c0_i32, %c0_i32_0, %c0_i32_1 : i32, i32, i32
  }
  func.func @transform_2(%arg0: i32) -> (i32, i32, i32) {
    %c0_i32 = arith.constant 0 : i32
    %c0_i32_0 = arith.constant 0 : i32
    %c0_i32_1 = arith.constant 0 : i32
    %c0_i32_2 = arith.constant 0 : i32
    return %c0_i32, %c0_i32_0, %c0_i32_1 : i32, i32, i32
  }
  func.func @transform_3(%arg0: i32) -> (i32, i32, i32) {
    %c0_i32 = arith.constant 0 : i32
    %c0_i32_0 = arith.constant 0 : i32
    %c0_i32_1 = arith.constant 0 : i32
    return %c0_i32, %arg0, %c0_i32_0 : i32, i32, i32
  }
}

module attributes {stable_mosaic.version = 11 : i64} {
  func.func @_flash_kernel(%arg0: i32, %arg1: i32, %arg2: i32, %arg3: i32, %arg4: memref<4x8x8xbf16, #tpu.memory_space<vmem>>, %arg5: memref<4x8x8xbf16, #tpu.memory_space<vmem>>, %arg6: memref<4x8x8xbf16, #tpu.memory_space<vmem>>, %arg7: memref<4x8x8xbf16, #tpu.memory_space<vmem>>, %arg8: memref<4x8x1xf32, #tpu.memory_space<vmem>>, %arg9: memref<4x8x1xf32, #tpu.memory_space<vmem>>, %arg10: memref<4x8x8xf32, #tpu.memory_space<vmem>>) attributes {dimension_semantics = [#tpu.dimension_semantics<parallel>, #tpu.dimension_semantics<parallel>, #tpu.dimension_semantics<parallel>, #tpu.dimension_semantics<arbitrary>], iteration_bounds = array<i64: 2, 1, 1, 1>, scalar_prefetch = 0 : i64, scratch_operands = 3 : i64, tpu.core_type = #tpu.core_type<tc>, window_params = [{transform_indices = @transform_0, window_bounds = array<i64: 4, 8, 8>}, {transform_indices = @transform_1, window_bounds = array<i64: 4, 8, 8>}, {transform_indices = @transform_2, window_bounds = array<i64: 4, 8, 8>}, {transform_indices = @transform_3, window_bounds = array<i64: 4, 8, 8>}]} {
    %c0_i32 = arith.constant 0 : i32
    %0 = arith.cmpi eq, %arg3, %c0_i32 : i32
    %1 = arith.extui %0 : i1 to i32
    %c0_i32_0 = arith.constant 0 : i32
    %2 = arith.cmpi ne, %1, %c0_i32_0 : i32
    scf.if %2 {
      %cst_32 = arith.constant 0xFF800000 : f32
      %33 = vector.broadcast %cst_32 : f32 to vector<4x8x1xf32>
      %c0_33 = arith.constant 0 : index
      %c0_34 = arith.constant 0 : index
      %c0_35 = arith.constant 0 : index
      %34 = vector.load %arg8[%c0_33, %c0_34, %c0_35] : memref<4x8x1xf32, #tpu.memory_space<vmem>>, vector<4x8x1xf32>
      tpu.vector_store %arg8[%c0_33, %c0_34, %c0_35], %33 {strides = array<i32>} : memref<4x8x1xf32, #tpu.memory_space<vmem>>, vector<4x8x1xf32>,
      %cst_36 = arith.constant 0.000000e+00 : f32
      %35 = vector.broadcast %cst_36 : f32 to vector<4x8x1xf32>
      %c0_37 = arith.constant 0 : index
      %c0_38 = arith.constant 0 : index
      %c0_39 = arith.constant 0 : index
      %36 = vector.load %arg9[%c0_37, %c0_38, %c0_39] : memref<4x8x1xf32, #tpu.memory_space<vmem>>, vector<4x8x1xf32>
      tpu.vector_store %arg9[%c0_37, %c0_38, %c0_39], %35 {strides = array<i32>} : memref<4x8x1xf32, #tpu.memory_space<vmem>>, vector<4x8x1xf32>,
      %cst_40 = arith.constant 0.000000e+00 : f32
      %37 = vector.broadcast %cst_40 : f32 to vector<4x8x8xf32>
      %c0_41 = arith.constant 0 : index
      %c0_42 = arith.constant 0 : index
      %c0_43 = arith.constant 0 : index
      %38 = vector.load %arg10[%c0_41, %c0_42, %c0_43] : memref<4x8x8xf32, #tpu.memory_space<vmem>>, vector<4x8x8xf32>
      tpu.vector_store %arg10[%c0_41, %c0_42, %c0_43], %37 {strides = array<i32>} : memref<4x8x8xf32, #tpu.memory_space<vmem>>, vector<4x8x8xf32>,
    } else {
    }
    %c0 = arith.constant 0 : index
    %c0_1 = arith.constant 0 : index
    %c0_2 = arith.constant 0 : index
    %3 = vector.load %arg4[%c0, %c0_1, %c0_2] : memref<4x8x8xbf16, #tpu.memory_space<vmem>>, vector<4x8x8xbf16>
    %c0_3 = arith.constant 0 : index
    %c0_4 = arith.constant 0 : index
    %c0_5 = arith.constant 0 : index
    %4 = vector.load %arg5[%c0_3, %c0_4, %c0_5] : memref<4x8x8xbf16, #tpu.memory_space<vmem>>, vector<4x8x8xbf16>
    %c0_6 = arith.constant 0 : index
    %c0_7 = arith.constant 0 : index
    %c0_8 = arith.constant 0 : index
    %5 = vector.load %arg6[%c0_6, %c0_7, %c0_8] : memref<4x8x8xbf16, #tpu.memory_space<vmem>>, vector<4x8x8xbf16>
    "tpu.trace_start"() <{level = 10 : i32, message = "gqd,gkd->gqk"}> : () -> ()
    %cst = arith.constant dense<0.000000e+00> : vector<4x8x8xf32>
    %6 = tpu.matmul %3, %4, %cst {dimension_numbers = #tpu.dot_dimension_numbers<[2], [2], [1], [1], [0, 0, 0, 1, 1, 1], [0], [0]>} : vector<4x8x8xbf16>, vector<4x8x8xbf16>, vector<4x8x8xf32> -> vector<4x8x8xf32>
    "tpu.trace_stop"() : () -> ()
    %c0_9 = arith.constant 0 : index
    %c0_10 = arith.constant 0 : index
    %c0_11 = arith.constant 0 : index
    %7 = vector.load %arg8[%c0_9, %c0_10, %c0_11] : memref<4x8x1xf32, #tpu.memory_space<vmem>>, vector<4x8x1xf32>
    %cst_12 = arith.constant dense<0xFF800000> : vector<4x8xf32>
    %8 = vector.multi_reduction <maximumf>, %6, %cst_12 [2] : vector<4x8x8xf32> to vector<4x8xf32>
    %9 = vector.shape_cast %8 : vector<4x8xf32> to vector<4x8x1xf32>
    %10 = arith.maximumf %7, %9 : vector<4x8x1xf32>
    %11 = arith.subf %7, %10 : vector<4x8x1xf32>
    %12 = math.exp %11 : vector<4x8x1xf32>
    %13 = vector.broadcast %10 : vector<4x8x1xf32> to vector<4x8x8xf32>
    %14 = arith.subf %6, %13 : vector<4x8x8xf32>
    %15 = math.exp %14 : vector<4x8x8xf32>
    %c0_13 = arith.constant 0 : index
    %c0_14 = arith.constant 0 : index
    %c0_15 = arith.constant 0 : index
    %16 = vector.load %arg9[%c0_13, %c0_14, %c0_15] : memref<4x8x1xf32, #tpu.memory_space<vmem>>, vector<4x8x1xf32>
    %17 = arith.mulf %12, %16 : vector<4x8x1xf32>
    %cst_16 = arith.constant dense<0.000000e+00> : vector<4x8xf32>
    %18 = vector.multi_reduction <add>, %15, %cst_16 [2] : vector<4x8x8xf32> to vector<4x8xf32>
    %19 = vector.shape_cast %18 : vector<4x8xf32> to vector<4x8x1xf32>
    %20 = arith.addf %17, %19 : vector<4x8x1xf32>
    %c0_17 = arith.constant 0 : index
    %c0_18 = arith.constant 0 : index
    %c0_19 = arith.constant 0 : index
    %21 = vector.load %arg9[%c0_17, %c0_18, %c0_19] : memref<4x8x1xf32, #tpu.memory_space<vmem>>, vector<4x8x1xf32>
    tpu.vector_store %arg9[%c0_17, %c0_18, %c0_19], %20 {strides = array<i32>} : memref<4x8x1xf32, #tpu.memory_space<vmem>>, vector<4x8x1xf32>,
    %c0_20 = arith.constant 0 : index
    %c0_21 = arith.constant 0 : index
    %c0_22 = arith.constant 0 : index
    %22 = vector.load %arg10[%c0_20, %c0_21, %c0_22] : memref<4x8x8xf32, #tpu.memory_space<vmem>>, vector<4x8x8xf32>
    %23 = vector.broadcast %12 : vector<4x8x1xf32> to vector<4x8x8xf32>
    %24 = arith.mulf %23, %22 : vector<4x8x8xf32>
    %25 = arith.truncf %15 : vector<4x8x8xf32> to vector<4x8x8xbf16>
    "tpu.trace_start"() <{level = 10 : i32, message = "gqk,gkd->gqd"}> : () -> ()
    %cst_23 = arith.constant dense<0.000000e+00> : vector<4x8x8xf32>
    %26 = tpu.matmul %25, %5, %cst_23 {dimension_numbers = #tpu.dot_dimension_numbers<[2], [1], [1], [2], [0, 0, 0, 1, 1, 2], [0], [0]>} : vector<4x8x8xbf16>, vector<4x8x8xbf16>, vector<4x8x8xf32> -> vector<4x8x8xf32>
    "tpu.trace_stop"() : () -> ()
    %27 = arith.addf %24, %26 : vector<4x8x8xf32>
    %c0_24 = arith.constant 0 : index
    %c0_25 = arith.constant 0 : index
    %c0_26 = arith.constant 0 : index
    %28 = vector.load %arg10[%c0_24, %c0_25, %c0_26] : memref<4x8x8xf32, #tpu.memory_space<vmem>>, vector<4x8x8xf32>
    tpu.vector_store %arg10[%c0_24, %c0_25, %c0_26], %27 {strides = array<i32>} : memref<4x8x8xf32, #tpu.memory_space<vmem>>, vector<4x8x8xf32>,
    %c0_27 = arith.constant 0 : index
    %c0_28 = arith.constant 0 : index
    %c0_29 = arith.constant 0 : index
    %29 = vector.load %arg8[%c0_27, %c0_28, %c0_29] : memref<4x8x1xf32, #tpu.memory_space<vmem>>, vector<4x8x1xf32>
    tpu.vector_store %arg8[%c0_27, %c0_28, %c0_29], %10 {strides = array<i32>} : memref<4x8x1xf32, #tpu.memory_space<vmem>>, vector<4x8x1xf32>,
    %c0_i32_30 = arith.constant 0 : i32
    %30 = arith.cmpi eq, %arg3, %c0_i32_30 : i32
    %31 = arith.extui %30 : i1 to i32
    %c0_i32_31 = arith.constant 0 : i32
    %32 = arith.cmpi ne, %31, %c0_i32_31 : i32
    scf.if %32 {
      %c0_32 = arith.constant 0 : index
      %c0_33 = arith.constant 0 : index
      %c0_34 = arith.constant 0 : index
      %33 = vector.load %arg10[%c0_32, %c0_33, %c0_34] : memref<4x8x8xf32, #tpu.memory_space<vmem>>, vector<4x8x8xf32>
      %c0_35 = arith.constant 0 : index
      %c0_36 = arith.constant 0 : index
      %c0_37 = arith.constant 0 : index
      %34 = vector.load %arg9[%c0_35, %c0_36, %c0_37] : memref<4x8x1xf32, #tpu.memory_space<vmem>>, vector<4x8x1xf32>
      %35 = vector.broadcast %34 : vector<4x8x1xf32> to vector<4x8x8xf32>
      %36 = arith.divf %33, %35 : vector<4x8x8xf32>
      %37 = arith.truncf %36 : vector<4x8x8xf32> to vector<4x8x8xbf16>
      %c0_38 = arith.constant 0 : index
      %c0_39 = arith.constant 0 : index
      %c0_40 = arith.constant 0 : index
      %38 = vector.load %arg7[%c0_38, %c0_39, %c0_40] : memref<4x8x8xbf16, #tpu.memory_space<vmem>>, vector<4x8x8xbf16>
      tpu.vector_store %arg7[%c0_38, %c0_39, %c0_40], %37 {strides = array<i32>} : memref<4x8x8xbf16, #tpu.memory_space<vmem>>, vector<4x8x8xbf16>,
    } else {
    }
    return
  }
  func.func @transform_0(%arg0: i32, %arg1: i32, %arg2: i32, %arg3: i32) -> (i32, i32, i32) {
    %c1_i32 = arith.constant 1 : i32
    %0 = arith.muli %arg0, %c1_i32 : i32
    %1 = arith.addi %0, %arg2 : i32
    %c0_i32 = arith.constant 0 : i32
    %c0_i32_0 = arith.constant 0 : i32
    return %arg1, %1, %c0_i32 : i32, i32, i32
  }
  func.func @transform_1(%arg0: i32, %arg1: i32, %arg2: i32, %arg3: i32) -> (i32, i32, i32) {
    %c1_i32 = arith.constant 1 : i32
    %0 = arith.addi %c1_i32, %arg1 : i32
    %c1_i32_0 = arith.constant 1 : i32
    %1 = arith.muli %arg0, %c1_i32_0 : i32
    %2 = arith.addi %1, %arg3 : i32
    %c0_i32 = arith.constant 0 : i32
    %c0_i32_1 = arith.constant 0 : i32
    return %0, %2, %c0_i32 : i32, i32, i32
  }
  func.func @transform_2(%arg0: i32, %arg1: i32, %arg2: i32, %arg3: i32) -> (i32, i32, i32) {
    %c2_i32 = arith.constant 2 : i32
    %0 = arith.addi %c2_i32, %arg1 : i32
    %c1_i32 = arith.constant 1 : i32
    %1 = arith.muli %arg0, %c1_i32 : i32
    %2 = arith.addi %1, %arg3 : i32
    %c0_i32 = arith.constant 0 : i32
    %c0_i32_0 = arith.constant 0 : i32
    return %0, %2, %c0_i32 : i32, i32, i32
  }
  func.func @transform_3(%arg0: i32, %arg1: i32, %arg2: i32, %arg3: i32) -> (i32, i32, i32) {
    %c1_i32 = arith.constant 1 : i32
    %0 = arith.muli %arg0, %c1_i32 : i32
    %1 = arith.addi %0, %arg2 : i32
    %c0_i32 = arith.constant 0 : i32
    %c0_i32_0 = arith.constant 0 : i32
    return %arg1, %1, %c0_i32 : i32, i32, i32
  }
}

module attributes {stable_mosaic.version = 11 : i64} {
  func.func @_attn_out_res_ln_kernel(%arg0: i32, %arg1: memref<4x16x8xbf16, #tpu.memory_space<vmem>>, %arg2: memref<4x8x32xbf16, #tpu.memory_space<vmem>>, %arg3: memref<1x32xbf16, #tpu.memory_space<vmem>>, %arg4: memref<16x32xbf16, #tpu.memory_space<vmem>>, %arg5: memref<1x32xf32, #tpu.memory_space<vmem>>, %arg6: memref<1x32xf32, #tpu.memory_space<vmem>>, %arg7: memref<16x32xbf16, #tpu.memory_space<vmem>>) attributes {dimension_semantics = [#tpu.dimension_semantics<parallel>], iteration_bounds = array<i64: 1>, scalar_prefetch = 0 : i64, scratch_operands = 0 : i64, tpu.core_type = #tpu.core_type<tc>, window_params = [{transform_indices = @transform_0, window_bounds = array<i64: 4, 16, 8>}, {pipeline_mode = #tpu.pipeline_mode<synchronous>, transform_indices = @transform_1, window_bounds = array<i64: 4, 8, 32>}, {pipeline_mode = #tpu.pipeline_mode<synchronous>, transform_indices = @transform_2, window_bounds = array<i64: 1, 32>}, {transform_indices = @transform_3, window_bounds = array<i64: 16, 32>}, {pipeline_mode = #tpu.pipeline_mode<synchronous>, transform_indices = @transform_4, window_bounds = array<i64: 1, 32>}, {pipeline_mode = #tpu.pipeline_mode<synchronous>, transform_indices = @transform_5, window_bounds = array<i64: 1, 32>}, {transform_indices = @transform_6, window_bounds = array<i64: 16, 32>}]} {
    %c0 = arith.constant 0 : index
    %c0_0 = arith.constant 0 : index
    %c0_1 = arith.constant 0 : index
    %0 = vector.load %arg1[%c0, %c0_0, %c0_1] : memref<4x16x8xbf16, #tpu.memory_space<vmem>>, vector<1x16x8xbf16>
    %1 = vector.shape_cast %0 : vector<1x16x8xbf16> to vector<16x8xbf16>
    %c0_2 = arith.constant 0 : index
    %c0_3 = arith.constant 0 : index
    %c0_4 = arith.constant 0 : index
    %2 = vector.load %arg2[%c0_2, %c0_3, %c0_4] : memref<4x8x32xbf16, #tpu.memory_space<vmem>>, vector<1x8x32xbf16>
    %3 = vector.shape_cast %2 : vector<1x8x32xbf16> to vector<8x32xbf16>
    %cst = arith.constant dense<0.000000e+00> : vector<16x32xf32>
    %4 = tpu.matmul %1, %3, %cst {dimension_numbers = #tpu.dot_dimension_numbers<[1], [0], [0], [1], [0, 0, 1, 1], [], []>} : vector<16x8xbf16>, vector<8x32xbf16>, vector<16x32xf32> -> vector<16x32xf32>
    %c1 = arith.constant 1 : index
    %c0_5 = arith.constant 0 : index
    %c0_6 = arith.constant 0 : index
    %5 = vector.load %arg1[%c1, %c0_5, %c0_6] : memref<4x16x8xbf16, #tpu.memory_space<vmem>>, vector<1x16x8xbf16>
    %6 = vector.shape_cast %5 : vector<1x16x8xbf16> to vector<16x8xbf16>
    %c1_7 = arith.constant 1 : index
    %c0_8 = arith.constant 0 : index
    %c0_9 = arith.constant 0 : index
    %7 = vector.load %arg2[%c1_7, %c0_8, %c0_9] : memref<4x8x32xbf16, #tpu.memory_space<vmem>>, vector<1x8x32xbf16>
    %8 = vector.shape_cast %7 : vector<1x8x32xbf16> to vector<8x32xbf16>
    %cst_10 = arith.constant dense<0.000000e+00> : vector<16x32xf32>
    %9 = tpu.matmul %6, %8, %cst_10 {dimension_numbers = #tpu.dot_dimension_numbers<[1], [0], [0], [1], [0, 0, 1, 1], [], []>} : vector<16x8xbf16>, vector<8x32xbf16>, vector<16x32xf32> -> vector<16x32xf32>
    %10 = arith.addf %4, %9 : vector<16x32xf32>
    %c2 = arith.constant 2 : index
    %c0_11 = arith.constant 0 : index
    %c0_12 = arith.constant 0 : index
    %11 = vector.load %arg1[%c2, %c0_11, %c0_12] : memref<4x16x8xbf16, #tpu.memory_space<vmem>>, vector<1x16x8xbf16>
    %12 = vector.shape_cast %11 : vector<1x16x8xbf16> to vector<16x8xbf16>
    %c2_13 = arith.constant 2 : index
    %c0_14 = arith.constant 0 : index
    %c0_15 = arith.constant 0 : index
    %13 = vector.load %arg2[%c2_13, %c0_14, %c0_15] : memref<4x8x32xbf16, #tpu.memory_space<vmem>>, vector<1x8x32xbf16>
    %14 = vector.shape_cast %13 : vector<1x8x32xbf16> to vector<8x32xbf16>
    %cst_16 = arith.constant dense<0.000000e+00> : vector<16x32xf32>
    %15 = tpu.matmul %12, %14, %cst_16 {dimension_numbers = #tpu.dot_dimension_numbers<[1], [0], [0], [1], [0, 0, 1, 1], [], []>} : vector<16x8xbf16>, vector<8x32xbf16>, vector<16x32xf32> -> vector<16x32xf32>
    %16 = arith.addf %10, %15 : vector<16x32xf32>
    %c3 = arith.constant 3 : index
    %c0_17 = arith.constant 0 : index
    %c0_18 = arith.constant 0 : index
    %17 = vector.load %arg1[%c3, %c0_17, %c0_18] : memref<4x16x8xbf16, #tpu.memory_space<vmem>>, vector<1x16x8xbf16>
    %18 = vector.shape_cast %17 : vector<1x16x8xbf16> to vector<16x8xbf16>
    %c3_19 = arith.constant 3 : index
    %c0_20 = arith.constant 0 : index
    %c0_21 = arith.constant 0 : index
    %19 = vector.load %arg2[%c3_19, %c0_20, %c0_21] : memref<4x8x32xbf16, #tpu.memory_space<vmem>>, vector<1x8x32xbf16>
    %20 = vector.shape_cast %19 : vector<1x8x32xbf16> to vector<8x32xbf16>
    %cst_22 = arith.constant dense<0.000000e+00> : vector<16x32xf32>
    %21 = tpu.matmul %18, %20, %cst_22 {dimension_numbers = #tpu.dot_dimension_numbers<[1], [0], [0], [1], [0, 0, 1, 1], [], []>} : vector<16x8xbf16>, vector<8x32xbf16>, vector<16x32xf32> -> vector<16x32xf32>
    %22 = arith.addf %16, %21 : vector<16x32xf32>
    %c0_23 = arith.constant 0 : index
    %c0_24 = arith.constant 0 : index
    %23 = vector.load %arg3[%c0_23, %c0_24] : memref<1x32xbf16, #tpu.memory_space<vmem>>, vector<1x32xbf16>
    %24 = arith.extf %23 : vector<1x32xbf16> to vector<1x32xf32>
    %25 = vector.broadcast %24 : vector<1x32xf32> to vector<16x32xf32>
    %26 = arith.addf %22, %25 : vector<16x32xf32>
    %c0_25 = arith.constant 0 : index
    %c0_26 = arith.constant 0 : index
    %27 = vector.load %arg4[%c0_25, %c0_26] : memref<16x32xbf16, #tpu.memory_space<vmem>>, vector<16x32xbf16>
    %28 = arith.extf %27 : vector<16x32xbf16> to vector<16x32xf32>
    %29 = arith.addf %26, %28 : vector<16x32xf32>
    %c0_27 = arith.constant 0 : index
    %c0_28 = arith.constant 0 : index
    %30 = vector.load %arg5[%c0_27, %c0_28] : memref<1x32xf32, #tpu.memory_space<vmem>>, vector<1x32xf32>
    %c0_29 = arith.constant 0 : index
    %c0_30 = arith.constant 0 : index
    %31 = vector.load %arg6[%c0_29, %c0_30] : memref<1x32xf32, #tpu.memory_space<vmem>>, vector<1x32xf32>
    %cst_31 = arith.constant dense<0.000000e+00> : vector<16xf32>
    %32 = vector.multi_reduction <add>, %29, %cst_31 [1] : vector<16x32xf32> to vector<16xf32>
    %33 = vector.shape_cast %32 : vector<16xf32> to vector<16x1xf32>
    %cst_32 = arith.constant 3.200000e+01 : f32
    %34 = vector.broadcast %cst_32 : f32 to vector<16x1xf32>
    %35 = arith.divf %33, %34 : vector<16x1xf32>
    %36 = vector.broadcast %35 : vector<16x1xf32> to vector<16x32xf32>
    %37 = arith.subf %29, %36 : vector<16x32xf32>
    %38 = arith.mulf %37, %37 : vector<16x32xf32>
    %cst_33 = arith.constant dense<0.000000e+00> : vector<16xf32>
    %39 = vector.multi_reduction <add>, %38, %cst_33 [1] : vector<16x32xf32> to vector<16xf32>
    %40 = vector.shape_cast %39 : vector<16xf32> to vector<16x1xf32>
    %cst_34 = arith.constant 3.200000e+01 : f32
    %41 = vector.broadcast %cst_34 : f32 to vector<16x1xf32>
    %42 = arith.divf %40, %41 : vector<16x1xf32>
    %43 = vector.broadcast %35 : vector<16x1xf32> to vector<16x32xf32>
    %44 = arith.subf %29, %43 : vector<16x32xf32>
    %cst_35 = arith.constant 9.99999996E-13 : f32
    %45 = vector.broadcast %cst_35 : f32 to vector<16x1xf32>
    %46 = arith.addf %42, %45 : vector<16x1xf32>
    %47 = math.rsqrt %46 : vector<16x1xf32>
    %48 = vector.broadcast %47 : vector<16x1xf32> to vector<16x32xf32>
    %49 = arith.mulf %44, %48 : vector<16x32xf32>
    %50 = vector.broadcast %30 : vector<1x32xf32> to vector<16x32xf32>
    %51 = arith.mulf %49, %50 : vector<16x32xf32>
    %52 = vector.broadcast %31 : vector<1x32xf32> to vector<16x32xf32>
    %53 = arith.addf %51, %52 : vector<16x32xf32>
    %54 = arith.truncf %53 : vector<16x32xf32> to vector<16x32xbf16>
    %c0_36 = arith.constant 0 : index
    %c0_37 = arith.constant 0 : index
    %55 = vector.load %arg7[%c0_36, %c0_37] : memref<16x32xbf16, #tpu.memory_space<vmem>>, vector<16x32xbf16>
    tpu.vector_store %arg7[%c0_36, %c0_37], %54 {strides = array<i32>} : memref<16x32xbf16, #tpu.memory_space<vmem>>, vector<16x32xbf16>,
    return
  }
  func.func @transform_0(%arg0: i32) -> (i32, i32, i32) {
    %c0_i32 = arith.constant 0 : i32
    %c0_i32_0 = arith.constant 0 : i32
    %c0_i32_1 = arith.constant 0 : i32
    return %c0_i32, %arg0, %c0_i32_0 : i32, i32, i32
  }
  func.func @transform_1(%arg0: i32) -> (i32, i32, i32) {
    %c0_i32 = arith.constant 0 : i32
    %c0_i32_0 = arith.constant 0 : i32
    %c0_i32_1 = arith.constant 0 : i32
    %c0_i32_2 = arith.constant 0 : i32
    return %c0_i32, %c0_i32_0, %c0_i32_1 : i32, i32, i32
  }
  func.func @transform_2(%arg0: i32) -> (i32, i32) {
    %c0_i32 = arith.constant 0 : i32
    %c0_i32_0 = arith.constant 0 : i32
    %c0_i32_1 = arith.constant 0 : i32
    return %c0_i32, %c0_i32_0 : i32, i32
  }
  func.func @transform_3(%arg0: i32) -> (i32, i32) {
    %c0_i32 = arith.constant 0 : i32
    %c0_i32_0 = arith.constant 0 : i32
    return %arg0, %c0_i32 : i32, i32
  }
  func.func @transform_4(%arg0: i32) -> (i32, i32) {
    %c0_i32 = arith.constant 0 : i32
    %c0_i32_0 = arith.constant 0 : i32
    %c0_i32_1 = arith.constant 0 : i32
    return %c0_i32, %c0_i32_0 : i32, i32
  }
  func.func @transform_5(%arg0: i32) -> (i32, i32) {
    %c0_i32 = arith.constant 0 : i32
    %c0_i32_0 = arith.constant 0 : i32
    %c0_i32_1 = arith.constant 0 : i32
    return %c0_i32, %c0_i32_0 : i32, i32
  }
  func.func @transform_6(%arg0: i32) -> (i32, i32) {
    %c0_i32 = arith.constant 0 : i32
    %c0_i32_0 = arith.constant 0 : i32
    return %arg0, %c0_i32 : i32, i32
  }
}

module attributes {stable_mosaic.version = 11 : i64} {
  func.func @_ffn_res_ln_kernel(%arg0: i32, %arg1: memref<16x32xbf16, #tpu.memory_space<vmem>>, %arg2: memref<32x64xbf16, #tpu.memory_space<vmem>>, %arg3: memref<1x64xbf16, #tpu.memory_space<vmem>>, %arg4: memref<64x32xbf16, #tpu.memory_space<vmem>>, %arg5: memref<1x32xbf16, #tpu.memory_space<vmem>>, %arg6: memref<1x32xf32, #tpu.memory_space<vmem>>, %arg7: memref<1x32xf32, #tpu.memory_space<vmem>>, %arg8: memref<16x32xbf16, #tpu.memory_space<vmem>>) attributes {dimension_semantics = [#tpu.dimension_semantics<parallel>], iteration_bounds = array<i64: 1>, scalar_prefetch = 0 : i64, scratch_operands = 0 : i64, tpu.core_type = #tpu.core_type<tc>, window_params = [{transform_indices = @transform_0, window_bounds = array<i64: 16, 32>}, {pipeline_mode = #tpu.pipeline_mode<synchronous>, transform_indices = @transform_1, window_bounds = array<i64: 32, 64>}, {pipeline_mode = #tpu.pipeline_mode<synchronous>, transform_indices = @transform_2, window_bounds = array<i64: 1, 64>}, {pipeline_mode = #tpu.pipeline_mode<synchronous>, transform_indices = @transform_3, window_bounds = array<i64: 64, 32>}, {pipeline_mode = #tpu.pipeline_mode<synchronous>, transform_indices = @transform_4, window_bounds = array<i64: 1, 32>}, {pipeline_mode = #tpu.pipeline_mode<synchronous>, transform_indices = @transform_5, window_bounds = array<i64: 1, 32>}, {pipeline_mode = #tpu.pipeline_mode<synchronous>, transform_indices = @transform_6, window_bounds = array<i64: 1, 32>}, {transform_indices = @transform_7, window_bounds = array<i64: 16, 32>}]} {
    %c0 = arith.constant 0 : index
    %c0_0 = arith.constant 0 : index
    %0 = vector.load %arg1[%c0, %c0_0] : memref<16x32xbf16, #tpu.memory_space<vmem>>, vector<16x32xbf16>
    %cst = arith.constant 0.000000e+00 : f32
    %1 = vector.broadcast %cst : f32 to vector<16x32xf32>
    %c0_1 = arith.constant 0 : index
    %c0_2 = arith.constant 0 : index
    %2 = vector.load %arg2[%c0_1, %c0_2] : memref<32x64xbf16, #tpu.memory_space<vmem>>, vector<32x64xbf16>
    %cst_3 = arith.constant dense<0.000000e+00> : vector<16x64xf32>
    %3 = tpu.matmul %0, %2, %cst_3 {dimension_numbers = #tpu.dot_dimension_numbers<[1], [0], [0], [1], [0, 0, 1, 1], [], []>} : vector<16x32xbf16>, vector<32x64xbf16>, vector<16x64xf32> -> vector<16x64xf32>
    %c0_4 = arith.constant 0 : index
    %c0_5 = arith.constant 0 : index
    %4 = vector.load %arg3[%c0_4, %c0_5] : memref<1x64xbf16, #tpu.memory_space<vmem>>, vector<1x64xbf16>
    %5 = arith.extf %4 : vector<1x64xbf16> to vector<1x64xf32>
    %6 = vector.broadcast %5 : vector<1x64xf32> to vector<16x64xf32>
    %7 = arith.addf %3, %6 : vector<16x64xf32>
    %8 = arith.mulf %7, %7 : vector<16x64xf32>
    %9 = arith.mulf %7, %8 : vector<16x64xf32>
    %cst_6 = arith.constant 4.471500e-02 : f32
    %10 = vector.broadcast %cst_6 : f32 to vector<16x64xf32>
    %11 = arith.mulf %10, %9 : vector<16x64xf32>
    %12 = arith.addf %7, %11 : vector<16x64xf32>
    %cst_7 = arith.constant 0.797884583 : f32
    %13 = vector.broadcast %cst_7 : f32 to vector<16x64xf32>
    %14 = arith.mulf %13, %12 : vector<16x64xf32>
    %15 = math.tanh %14 : vector<16x64xf32>
    %cst_8 = arith.constant 1.000000e+00 : f32
    %16 = vector.broadcast %cst_8 : f32 to vector<16x64xf32>
    %17 = arith.addf %16, %15 : vector<16x64xf32>
    %cst_9 = arith.constant 5.000000e-01 : f32
    %18 = vector.broadcast %cst_9 : f32 to vector<16x64xf32>
    %19 = arith.mulf %18, %17 : vector<16x64xf32>
    %20 = arith.mulf %7, %19 : vector<16x64xf32>
    %21 = arith.truncf %20 : vector<16x64xf32> to vector<16x64xbf16>
    %c0_10 = arith.constant 0 : index
    %c0_11 = arith.constant 0 : index
    %22 = vector.load %arg4[%c0_10, %c0_11] : memref<64x32xbf16, #tpu.memory_space<vmem>>, vector<64x32xbf16>
    %cst_12 = arith.constant dense<0.000000e+00> : vector<16x32xf32>
    %23 = tpu.matmul %21, %22, %cst_12 {dimension_numbers = #tpu.dot_dimension_numbers<[1], [0], [0], [1], [0, 0, 1, 1], [], []>} : vector<16x64xbf16>, vector<64x32xbf16>, vector<16x32xf32> -> vector<16x32xf32>
    %24 = arith.addf %1, %23 : vector<16x32xf32>
    %c0_13 = arith.constant 0 : index
    %c0_14 = arith.constant 0 : index
    %25 = vector.load %arg5[%c0_13, %c0_14] : memref<1x32xbf16, #tpu.memory_space<vmem>>, vector<1x32xbf16>
    %26 = arith.extf %25 : vector<1x32xbf16> to vector<1x32xf32>
    %27 = vector.broadcast %26 : vector<1x32xf32> to vector<16x32xf32>
    %28 = arith.addf %24, %27 : vector<16x32xf32>
    %29 = arith.extf %0 : vector<16x32xbf16> to vector<16x32xf32>
    %30 = arith.addf %28, %29 : vector<16x32xf32>
    %c0_15 = arith.constant 0 : index
    %c0_16 = arith.constant 0 : index
    %31 = vector.load %arg6[%c0_15, %c0_16] : memref<1x32xf32, #tpu.memory_space<vmem>>, vector<1x32xf32>
    %c0_17 = arith.constant 0 : index
    %c0_18 = arith.constant 0 : index
    %32 = vector.load %arg7[%c0_17, %c0_18] : memref<1x32xf32, #tpu.memory_space<vmem>>, vector<1x32xf32>
    %cst_19 = arith.constant dense<0.000000e+00> : vector<16xf32>
    %33 = vector.multi_reduction <add>, %30, %cst_19 [1] : vector<16x32xf32> to vector<16xf32>
    %34 = vector.shape_cast %33 : vector<16xf32> to vector<16x1xf32>
    %cst_20 = arith.constant 3.200000e+01 : f32
    %35 = vector.broadcast %cst_20 : f32 to vector<16x1xf32>
    %36 = arith.divf %34, %35 : vector<16x1xf32>
    %37 = vector.broadcast %36 : vector<16x1xf32> to vector<16x32xf32>
    %38 = arith.subf %30, %37 : vector<16x32xf32>
    %39 = arith.mulf %38, %38 : vector<16x32xf32>
    %cst_21 = arith.constant dense<0.000000e+00> : vector<16xf32>
    %40 = vector.multi_reduction <add>, %39, %cst_21 [1] : vector<16x32xf32> to vector<16xf32>
    %41 = vector.shape_cast %40 : vector<16xf32> to vector<16x1xf32>
    %cst_22 = arith.constant 3.200000e+01 : f32
    %42 = vector.broadcast %cst_22 : f32 to vector<16x1xf32>
    %43 = arith.divf %41, %42 : vector<16x1xf32>
    %44 = vector.broadcast %36 : vector<16x1xf32> to vector<16x32xf32>
    %45 = arith.subf %30, %44 : vector<16x32xf32>
    %cst_23 = arith.constant 9.99999996E-13 : f32
    %46 = vector.broadcast %cst_23 : f32 to vector<16x1xf32>
    %47 = arith.addf %43, %46 : vector<16x1xf32>
    %48 = math.rsqrt %47 : vector<16x1xf32>
    %49 = vector.broadcast %48 : vector<16x1xf32> to vector<16x32xf32>
    %50 = arith.mulf %45, %49 : vector<16x32xf32>
    %51 = vector.broadcast %31 : vector<1x32xf32> to vector<16x32xf32>
    %52 = arith.mulf %50, %51 : vector<16x32xf32>
    %53 = vector.broadcast %32 : vector<1x32xf32> to vector<16x32xf32>
    %54 = arith.addf %52, %53 : vector<16x32xf32>
    %55 = arith.truncf %54 : vector<16x32xf32> to vector<16x32xbf16>
    %c0_24 = arith.constant 0 : index
    %c0_25 = arith.constant 0 : index
    %56 = vector.load %arg8[%c0_24, %c0_25] : memref<16x32xbf16, #tpu.memory_space<vmem>>, vector<16x32xbf16>
    tpu.vector_store %arg8[%c0_24, %c0_25], %55 {strides = array<i32>} : memref<16x32xbf16, #tpu.memory_space<vmem>>, vector<16x32xbf16>,
    return
  }
  func.func @transform_0(%arg0: i32) -> (i32, i32) {
    %c0_i32 = arith.constant 0 : i32
    %c0_i32_0 = arith.constant 0 : i32
    return %arg0, %c0_i32 : i32, i32
  }
  func.func @transform_1(%arg0: i32) -> (i32, i32) {
    %c0_i32 = arith.constant 0 : i32
    %c0_i32_0 = arith.constant 0 : i32
    %c0_i32_1 = arith.constant 0 : i32
    return %c0_i32, %c0_i32_0 : i32, i32
  }
  func.func @transform_2(%arg0: i32) -> (i32, i32) {
    %c0_i32 = arith.constant 0 : i32
    %c0_i32_0 = arith.constant 0 : i32
    %c0_i32_1 = arith.constant 0 : i32
    return %c0_i32, %c0_i32_0 : i32, i32
  }
  func.func @transform_3(%arg0: i32) -> (i32, i32) {
    %c0_i32 = arith.constant 0 : i32
    %c0_i32_0 = arith.constant 0 : i32
    %c0_i32_1 = arith.constant 0 : i32
    return %c0_i32, %c0_i32_0 : i32, i32
  }
  func.func @transform_4(%arg0: i32) -> (i32, i32) {
    %c0_i32 = arith.constant 0 : i32
    %c0_i32_0 = arith.constant 0 : i32
    %c0_i32_1 = arith.constant 0 : i32
    return %c0_i32, %c0_i32_0 : i32, i32
  }
  func.func @transform_5(%arg0: i32) -> (i32, i32) {
    %c0_i32 = arith.constant 0 : i32
    %c0_i32_0 = arith.constant 0 : i32
    %c0_i32_1 = arith.constant 0 : i32
    return %c0_i32, %c0_i32_0 : i32, i32
  }
  func.func @transform_6(%arg0: i32) -> (i32, i32) {
    %c0_i32 = arith.constant 0 : i32
    %c0_i32_0 = arith.constant 0 : i32
    %c0_i32_1 = arith.constant 0 : i32
    return %c0_i32, %c0_i32_0 : i32, i32
  }
  func.func @transform_7(%arg0: i32) -> (i32, i32) {
    %c0_i32 = arith.constant 0 : i32
    %c0_i32_0 = arith.constant 0 : i32
    return %arg0, %c0_i32 : i32, i32
  }
}

module attributes {stable_mosaic.version = 11 : i64} {
  func.func @_mlp_kernel(%arg0: i32, %arg1: memref<16x32xbf16, #tpu.memory_space<vmem>>, %arg2: memref<32x32xbf16, #tpu.memory_space<vmem>>, %arg3: memref<1x32xbf16, #tpu.memory_space<vmem>>, %arg4: memref<32x32xbf16, #tpu.memory_space<vmem>>, %arg5: memref<1x32xbf16, #tpu.memory_space<vmem>>, %arg6: memref<32x32xbf16, #tpu.memory_space<vmem>>, %arg7: memref<1x32xbf16, #tpu.memory_space<vmem>>, %arg8: memref<32x32xbf16, #tpu.memory_space<vmem>>, %arg9: memref<1x32xbf16, #tpu.memory_space<vmem>>, %arg10: memref<32x32xbf16, #tpu.memory_space<vmem>>, %arg11: memref<1x32xbf16, #tpu.memory_space<vmem>>, %arg12: memref<32x32xbf16, #tpu.memory_space<vmem>>, %arg13: memref<1x32xbf16, #tpu.memory_space<vmem>>, %arg14: memref<32x128xbf16, #tpu.memory_space<vmem>>, %arg15: memref<1x128xbf16, #tpu.memory_space<vmem>>, %arg16: memref<16x128xbf16, #tpu.memory_space<vmem>>) attributes {dimension_semantics = [#tpu.dimension_semantics<parallel>], iteration_bounds = array<i64: 1>, scalar_prefetch = 0 : i64, scratch_operands = 0 : i64, tpu.core_type = #tpu.core_type<tc>, window_params = [{transform_indices = @transform_0, window_bounds = array<i64: 16, 32>}, {pipeline_mode = #tpu.pipeline_mode<synchronous>, transform_indices = @transform_1, window_bounds = array<i64: 32, 32>}, {pipeline_mode = #tpu.pipeline_mode<synchronous>, transform_indices = @transform_2, window_bounds = array<i64: 1, 32>}, {pipeline_mode = #tpu.pipeline_mode<synchronous>, transform_indices = @transform_3, window_bounds = array<i64: 32, 32>}, {pipeline_mode = #tpu.pipeline_mode<synchronous>, transform_indices = @transform_4, window_bounds = array<i64: 1, 32>}, {pipeline_mode = #tpu.pipeline_mode<synchronous>, transform_indices = @transform_5, window_bounds = array<i64: 32, 32>}, {pipeline_mode = #tpu.pipeline_mode<synchronous>, transform_indices = @transform_6, window_bounds = array<i64: 1, 32>}, {pipeline_mode = #tpu.pipeline_mode<synchronous>, transform_indices = @transform_7, window_bounds = array<i64: 32, 32>}, {pipeline_mode = #tpu.pipeline_mode<synchronous>, transform_indices = @transform_8, window_bounds = array<i64: 1, 32>}, {pipeline_mode = #tpu.pipeline_mode<synchronous>, transform_indices = @transform_9, window_bounds = array<i64: 32, 32>}, {pipeline_mode = #tpu.pipeline_mode<synchronous>, transform_indices = @transform_10, window_bounds = array<i64: 1, 32>}, {pipeline_mode = #tpu.pipeline_mode<synchronous>, transform_indices = @transform_11, window_bounds = array<i64: 32, 32>}, {pipeline_mode = #tpu.pipeline_mode<synchronous>, transform_indices = @transform_12, window_bounds = array<i64: 1, 32>}, {pipeline_mode = #tpu.pipeline_mode<synchronous>, transform_indices = @transform_13, window_bounds = array<i64: 32, 128>}, {pipeline_mode = #tpu.pipeline_mode<synchronous>, transform_indices = @transform_14, window_bounds = array<i64: 1, 128>}, {transform_indices = @transform_15, window_bounds = array<i64: 16, 128>}]} {
    %c0 = arith.constant 0 : index
    %c0_0 = arith.constant 0 : index
    %0 = vector.load %arg1[%c0, %c0_0] : memref<16x32xbf16, #tpu.memory_space<vmem>>, vector<16x32xbf16>
    %c0_1 = arith.constant 0 : index
    %c0_2 = arith.constant 0 : index
    %1 = vector.load %arg2[%c0_1, %c0_2] : memref<32x32xbf16, #tpu.memory_space<vmem>>, vector<32x32xbf16>
    %c0_3 = arith.constant 0 : index
    %c0_4 = arith.constant 0 : index
    %2 = vector.load %arg3[%c0_3, %c0_4] : memref<1x32xbf16, #tpu.memory_space<vmem>>, vector<1x32xbf16>
    %cst = arith.constant dense<0.000000e+00> : vector<16x32xf32>
    %3 = tpu.matmul %0, %1, %cst {dimension_numbers = #tpu.dot_dimension_numbers<[1], [0], [0], [1], [0, 0, 1, 1], [], []>} : vector<16x32xbf16>, vector<32x32xbf16>, vector<16x32xf32> -> vector<16x32xf32>
    %4 = arith.extf %2 : vector<1x32xbf16> to vector<1x32xf32>
    %5 = vector.broadcast %4 : vector<1x32xf32> to vector<16x32xf32>
    %6 = arith.addf %3, %5 : vector<16x32xf32>
    %cst_5 = arith.constant 0.000000e+00 : f32
    %7 = vector.broadcast %cst_5 : f32 to vector<16x32xf32>
    %8 = arith.maximumf %6, %7 : vector<16x32xf32>
    %9 = arith.truncf %8 : vector<16x32xf32> to vector<16x32xbf16>
    %c0_6 = arith.constant 0 : index
    %c0_7 = arith.constant 0 : index
    %10 = vector.load %arg4[%c0_6, %c0_7] : memref<32x32xbf16, #tpu.memory_space<vmem>>, vector<32x32xbf16>
    %c0_8 = arith.constant 0 : index
    %c0_9 = arith.constant 0 : index
    %11 = vector.load %arg5[%c0_8, %c0_9] : memref<1x32xbf16, #tpu.memory_space<vmem>>, vector<1x32xbf16>
    %cst_10 = arith.constant dense<0.000000e+00> : vector<16x32xf32>
    %12 = tpu.matmul %9, %10, %cst_10 {dimension_numbers = #tpu.dot_dimension_numbers<[1], [0], [0], [1], [0, 0, 1, 1], [], []>} : vector<16x32xbf16>, vector<32x32xbf16>, vector<16x32xf32> -> vector<16x32xf32>
    %13 = arith.extf %11 : vector<1x32xbf16> to vector<1x32xf32>
    %14 = vector.broadcast %13 : vector<1x32xf32> to vector<16x32xf32>
    %15 = arith.addf %12, %14 : vector<16x32xf32>
    %cst_11 = arith.constant 0.000000e+00 : f32
    %16 = vector.broadcast %cst_11 : f32 to vector<16x32xf32>
    %17 = arith.maximumf %15, %16 : vector<16x32xf32>
    %18 = arith.truncf %17 : vector<16x32xf32> to vector<16x32xbf16>
    %c0_12 = arith.constant 0 : index
    %c0_13 = arith.constant 0 : index
    %19 = vector.load %arg6[%c0_12, %c0_13] : memref<32x32xbf16, #tpu.memory_space<vmem>>, vector<32x32xbf16>
    %c0_14 = arith.constant 0 : index
    %c0_15 = arith.constant 0 : index
    %20 = vector.load %arg7[%c0_14, %c0_15] : memref<1x32xbf16, #tpu.memory_space<vmem>>, vector<1x32xbf16>
    %cst_16 = arith.constant dense<0.000000e+00> : vector<16x32xf32>
    %21 = tpu.matmul %18, %19, %cst_16 {dimension_numbers = #tpu.dot_dimension_numbers<[1], [0], [0], [1], [0, 0, 1, 1], [], []>} : vector<16x32xbf16>, vector<32x32xbf16>, vector<16x32xf32> -> vector<16x32xf32>
    %22 = arith.extf %20 : vector<1x32xbf16> to vector<1x32xf32>
    %23 = vector.broadcast %22 : vector<1x32xf32> to vector<16x32xf32>
    %24 = arith.addf %21, %23 : vector<16x32xf32>
    %cst_17 = arith.constant 0.000000e+00 : f32
    %25 = vector.broadcast %cst_17 : f32 to vector<16x32xf32>
    %26 = arith.maximumf %24, %25 : vector<16x32xf32>
    %27 = arith.truncf %26 : vector<16x32xf32> to vector<16x32xbf16>
    %c0_18 = arith.constant 0 : index
    %c0_19 = arith.constant 0 : index
    %28 = vector.load %arg8[%c0_18, %c0_19] : memref<32x32xbf16, #tpu.memory_space<vmem>>, vector<32x32xbf16>
    %c0_20 = arith.constant 0 : index
    %c0_21 = arith.constant 0 : index
    %29 = vector.load %arg9[%c0_20, %c0_21] : memref<1x32xbf16, #tpu.memory_space<vmem>>, vector<1x32xbf16>
    %cst_22 = arith.constant dense<0.000000e+00> : vector<16x32xf32>
    %30 = tpu.matmul %27, %28, %cst_22 {dimension_numbers = #tpu.dot_dimension_numbers<[1], [0], [0], [1], [0, 0, 1, 1], [], []>} : vector<16x32xbf16>, vector<32x32xbf16>, vector<16x32xf32> -> vector<16x32xf32>
    %31 = arith.extf %29 : vector<1x32xbf16> to vector<1x32xf32>
    %32 = vector.broadcast %31 : vector<1x32xf32> to vector<16x32xf32>
    %33 = arith.addf %30, %32 : vector<16x32xf32>
    %cst_23 = arith.constant 0.000000e+00 : f32
    %34 = vector.broadcast %cst_23 : f32 to vector<16x32xf32>
    %35 = arith.maximumf %33, %34 : vector<16x32xf32>
    %36 = arith.truncf %35 : vector<16x32xf32> to vector<16x32xbf16>
    %c0_24 = arith.constant 0 : index
    %c0_25 = arith.constant 0 : index
    %37 = vector.load %arg10[%c0_24, %c0_25] : memref<32x32xbf16, #tpu.memory_space<vmem>>, vector<32x32xbf16>
    %c0_26 = arith.constant 0 : index
    %c0_27 = arith.constant 0 : index
    %38 = vector.load %arg11[%c0_26, %c0_27] : memref<1x32xbf16, #tpu.memory_space<vmem>>, vector<1x32xbf16>
    %cst_28 = arith.constant dense<0.000000e+00> : vector<16x32xf32>
    %39 = tpu.matmul %36, %37, %cst_28 {dimension_numbers = #tpu.dot_dimension_numbers<[1], [0], [0], [1], [0, 0, 1, 1], [], []>} : vector<16x32xbf16>, vector<32x32xbf16>, vector<16x32xf32> -> vector<16x32xf32>
    %40 = arith.extf %38 : vector<1x32xbf16> to vector<1x32xf32>
    %41 = vector.broadcast %40 : vector<1x32xf32> to vector<16x32xf32>
    %42 = arith.addf %39, %41 : vector<16x32xf32>
    %cst_29 = arith.constant 0.000000e+00 : f32
    %43 = vector.broadcast %cst_29 : f32 to vector<16x32xf32>
    %44 = arith.maximumf %42, %43 : vector<16x32xf32>
    %45 = arith.truncf %44 : vector<16x32xf32> to vector<16x32xbf16>
    %c0_30 = arith.constant 0 : index
    %c0_31 = arith.constant 0 : index
    %46 = vector.load %arg12[%c0_30, %c0_31] : memref<32x32xbf16, #tpu.memory_space<vmem>>, vector<32x32xbf16>
    %c0_32 = arith.constant 0 : index
    %c0_33 = arith.constant 0 : index
    %47 = vector.load %arg13[%c0_32, %c0_33] : memref<1x32xbf16, #tpu.memory_space<vmem>>, vector<1x32xbf16>
    %cst_34 = arith.constant dense<0.000000e+00> : vector<16x32xf32>
    %48 = tpu.matmul %45, %46, %cst_34 {dimension_numbers = #tpu.dot_dimension_numbers<[1], [0], [0], [1], [0, 0, 1, 1], [], []>} : vector<16x32xbf16>, vector<32x32xbf16>, vector<16x32xf32> -> vector<16x32xf32>
    %49 = arith.extf %47 : vector<1x32xbf16> to vector<1x32xf32>
    %50 = vector.broadcast %49 : vector<1x32xf32> to vector<16x32xf32>
    %51 = arith.addf %48, %50 : vector<16x32xf32>
    %cst_35 = arith.constant 0.000000e+00 : f32
    %52 = vector.broadcast %cst_35 : f32 to vector<16x32xf32>
    %53 = arith.maximumf %51, %52 : vector<16x32xf32>
    %54 = arith.truncf %53 : vector<16x32xf32> to vector<16x32xbf16>
    %c0_36 = arith.constant 0 : index
    %c0_37 = arith.constant 0 : index
    %55 = vector.load %arg14[%c0_36, %c0_37] : memref<32x128xbf16, #tpu.memory_space<vmem>>, vector<32x128xbf16>
    %c0_38 = arith.constant 0 : index
    %c0_39 = arith.constant 0 : index
    %56 = vector.load %arg15[%c0_38, %c0_39] : memref<1x128xbf16, #tpu.memory_space<vmem>>, vector<1x128xbf16>
    %cst_40 = arith.constant dense<0.000000e+00> : vector<16x128xf32>
    %57 = tpu.matmul %54, %55, %cst_40 {dimension_numbers = #tpu.dot_dimension_numbers<[1], [0], [0], [1], [0, 0, 1, 1], [], []>} : vector<16x32xbf16>, vector<32x128xbf16>, vector<16x128xf32> -> vector<16x128xf32>
    %58 = arith.extf %56 : vector<1x128xbf16> to vector<1x128xf32>
    %59 = vector.broadcast %58 : vector<1x128xf32> to vector<16x128xf32>
    %60 = arith.addf %57, %59 : vector<16x128xf32>
    %61 = arith.truncf %60 : vector<16x128xf32> to vector<16x128xbf16>
    %c0_41 = arith.constant 0 : index
    %c0_42 = arith.constant 0 : index
    %62 = vector.load %arg16[%c0_41, %c0_42] : memref<16x128xbf16, #tpu.memory_space<vmem>>, vector<16x128xbf16>
    tpu.vector_store %arg16[%c0_41, %c0_42], %61 {strides = array<i32>} : memref<16x128xbf16, #tpu.memory_space<vmem>>, vector<16x128xbf16>,
    return
  }
  func.func @transform_0(%arg0: i32) -> (i32, i32) {
    %c0_i32 = arith.constant 0 : i32
    %c0_i32_0 = arith.constant 0 : i32
    return %arg0, %c0_i32 : i32, i32
  }
  func.func @transform_1(%arg0: i32) -> (i32, i32) {
    %c0_i32 = arith.constant 0 : i32
    %c0_i32_0 = arith.constant 0 : i32
    %c0_i32_1 = arith.constant 0 : i32
    return %c0_i32, %c0_i32_0 : i32, i32
  }
  func.func @transform_2(%arg0: i32) -> (i32, i32) {
    %c0_i32 = arith.constant 0 : i32
    %c0_i32_0 = arith.constant 0 : i32
    %c0_i32_1 = arith.constant 0 : i32
    return %c0_i32, %c0_i32_0 : i32, i32
  }
  func.func @transform_3(%arg0: i32) -> (i32, i32) {
    %c0_i32 = arith.constant 0 : i32
    %c0_i32_0 = arith.constant 0 : i32
    %c0_i32_1 = arith.constant 0 : i32
    return %c0_i32, %c0_i32_0 : i32, i32
  }
  func.func @transform_4(%arg0: i32) -> (i32, i32) {
    %c0_i32 = arith.constant 0 : i32
    %c0_i32_0 = arith.constant 0 : i32
    %c0_i32_1 = arith.constant 0 : i32
    return %c0_i32, %c0_i32_0 : i32, i32
  }
  func.func @transform_5(%arg0: i32) -> (i32, i32) {
    %c0_i32 = arith.constant 0 : i32
    %c0_i32_0 = arith.constant 0 : i32
    %c0_i32_1 = arith.constant 0 : i32
    return %c0_i32, %c0_i32_0 : i32, i32
  }
  func.func @transform_6(%arg0: i32) -> (i32, i32) {
    %c0_i32 = arith.constant 0 : i32
    %c0_i32_0 = arith.constant 0 : i32
    %c0_i32_1 = arith.constant 0 : i32
    return %c0_i32, %c0_i32_0 : i32, i32
  }
  func.func @transform_7(%arg0: i32) -> (i32, i32) {
    %c0_i32 = arith.constant 0 : i32
    %c0_i32_0 = arith.constant 0 : i32
    %c0_i32_1 = arith.constant 0 : i32
    return %c0_i32, %c0_i32_0 : i32, i32
  }
  func.func @transform_8(%arg0: i32) -> (i32, i32) {
    %c0_i32 = arith.constant 0 : i32
    %c0_i32_0 = arith.constant 0 : i32
    %c0_i32_1 = arith.constant 0 : i32
    return %c0_i32, %c0_i32_0 : i32, i32
  }
  func.func @transform_9(%arg0: i32) -> (i32, i32) {
    %c0_i32 = arith.constant 0 : i32
    %c0_i32_0 = arith.constant 0 : i32
    %c0_i32_1 = arith.constant 0 : i32
    return %c0_i32, %c0_i32_0 : i32, i32
  }
  func.func @transform_10(%arg0: i32) -> (i32, i32) {
    %c0_i32 = arith.constant 0 : i32
    %c0_i32_0 = arith.constant 0 : i32
    %c0_i32_1 = arith.constant 0 : i32
    return %c0_i32, %c0_i32_0 : i32, i32
  }
  func.func @transform_11(%arg0: i32) -> (i32, i32) {
    %c0_i32 = arith.constant 0 : i32
    %c0_i32_0 = arith.constant 0 : i32
    %c0_i32_1 = arith.constant 0 : i32
    return %c0_i32, %c0_i32_0 : i32, i32
  }
  func.func @transform_12(%arg0: i32) -> (i32, i32) {
    %c0_i32 = arith.constant 0 : i32
    %c0_i32_0 = arith.constant 0 : i32
    %c0_i32_1 = arith.constant 0 : i32
    return %c0_i32, %c0_i32_0 : i32, i32
  }
  func.func @transform_13(%arg0: i32) -> (i32, i32) {
    %c0_i32 = arith.constant 0 : i32
    %c0_i32_0 = arith.constant 0 : i32
    %c0_i32_1 = arith.constant 0 : i32
    return %c0_i32, %c0_i32_0 : i32, i32
  }
  func.func @transform_14(%arg0: i32) -> (i32, i32) {
    %c0_i32 = arith.constant 0 : i32
    %c0_i32_0 = arith.constant 0 : i32
    %c0_i32_1 = arith.constant 0 : i32
    return %c0_i32, %c0_i32_0 : i32, i32
  }
  func.func @transform_15(%arg0: i32) -> (i32, i32) {
    %c0_i32 = arith.constant 0 : i32
    %c0_i32_0 = arith.constant 0 : i32
    return %arg0, %c0_i32 : i32, i32
  }
}

</mosaic_0001>

<bundles_post_ra>
// kernel: bert_for_ic_and_ner.11
= control target key start
LH: loop header
LB: loop body
LE: loop exit
PB: predicated region body
PF: predicated region fallthrough
CT: control target
= control target key end

     0   :  { %vm18_vm0 = vcmask 261120   ;;  %vm70_vm1 = vcmask 257024   ;;  %s129_s0 = inlined_call_operand.vmem [shape: f32[16,32], index: 0, kind: input, shape index: {}]   ;;  %s130_s1 = inlined_call_operand.vmem [shape: f32[1,32], index: 1, kind: input, shape index: {}]   ;;  %s131_s2 = inlined_call_operand.vmem [shape: f32[1,32], index: 2, kind: input, shape index: {}]   ;;  %s132_s3 = inlined_call_operand.vmem [shape: bf16[16,32], index: 3, kind: output, shape index: {}]  }
   0x1   :  { %v14_v0 = vld [vmem:[%s129_s0] sm:$0xff]  ;;  %v15_v1 = vld [vmem:[%s129_s0 + $0x8] sm:$0xff] }
   0x2   :  { %v19_v2 = vsel %vm18_vm0, %v14_v0, 0.0  ;;  %v22_v3 = vsel %vm18_vm0, %v15_v1, 0.0  ;;  %v77_v21 = vld [vmem:[%s130_s1] ss:$0 sm:$0xff] }
   0x3   :  { %20 = vadd.xlane.f32.xlu0 %v19_v2  ;;  %v78_v23 = vld [vmem:[%s131_s2] ss:$0 sm:$0xff] }
   0x7   :  { %23 = vadd.xlane.f32.xlu0 %v22_v3 }
  0x8c   :  { %v21_v4 = vpop.xlane.xlu0 %20 }
  0x8d   :  { %v26_v5 = vmul.f32 0.03125, %v21_v4 }
  0x8f   :  { %v28_v6 = vsub.f32 %v14_v0, %v26_v5 }
  0x90   :  { %v24_v7 = vpop.xlane.xlu0 %23 }
  0x91   :  { %v27_v8 = vmul.f32 0.03125, %v24_v7  ;;  %v30_v9 = vmul.f32 %v28_v6, %v28_v6 }
  0x93   :  { %v29_v10 = vsub.f32 %v15_v1, %v27_v8  ;;  %v32_v11 = vsel %vm18_vm0, %v30_v9, 0.0 }
  0x94   :  { %33 = vadd.xlane.f32.xlu1 %v32_v11 }
  0x95   :  { %v31_v12 = vmul.f32 %v29_v10, %v29_v10 }
  0x97   :  { %v35_v13 = vsel %vm18_vm0, %v31_v12, 0.0 }
  0x98   :  { %36 = vadd.xlane.f32.xlu1 %v35_v13 }
 0x11d   :  { %v34_v14 = vpop.xlane.xlu1 %33 }
 0x11e   :  { %v38_v15 = vmul.f32 0.03125, %v34_v14 }
 0x120   :  { %v40_v16 = vadd.f32 1e-12, %v38_v15 }
 0x121   :  { %v37_v17 = vpop.xlane.xlu1 %36 }
 0x122   :  { %83 = vrsqrt.f32 %v40_v16  ;;  %v39_v18 = vmul.f32 0.03125, %v37_v17 }
 0x124   :  { %v41_v19 = vadd.f32 1e-12, %v39_v18 }
 0x126   :  { %85 = vrsqrt.f32 %v41_v19 }
 0x12f   :  { %v84_v20 = vpop.eup %83 }
 0x130   :  { %v44_v22 = vmul.f32 %v84_v20, %v28_v6 }
 0x132   :  { %v52_v24 = vmul.f32 %v77_v21, %v44_v22 }
 0x133   :  { %v86_v25 = vpop.eup %85 }
 0x134   :  { %v60_v26 = vadd.f32 %v78_v23, %v52_v24  ;;  %v45_v27 = vmul.f32 %v86_v25, %v29_v10 }
 0x136   :  { %v81_v28 = vpack.c.bf16 %v60_v26, %v60_v26  ;;  %v53_v29 = vmul.f32 %v77_v21, %v45_v27 }
 0x138   :  { %71 = vst.msk [vmem:[%s132_s3] sm:$0xf] %vm70_vm1, %v81_v28  ;;  %v61_v30 = vadd.f32 %v78_v23, %v53_v29 }
 0x13a   :  { %v82_v31 = vpack.c.bf16 %v61_v30, %v61_v30 }
 0x13c   :  { %72 = vst.msk [vmem:[%s132_s3 + $0x4] sm:$0xf] %vm70_vm1, %v82_v31 }

// kernel: bert_for_ic_and_ner.14
= control target key start
LH: loop header
LB: loop body
LE: loop exit
PB: predicated region body
PF: predicated region fallthrough
CT: control target
= control target key end

     0   :  { %vm41_vm0 = vcmask 1043456   ;;  %vm37_vm1 = vcmask 64512   ;;  %v400_v0 = vmov 0.0   ;;  %vm401_vm2 = vmmov 0   ;;  %s495_s1 = inlined_call_operand.vmem [shape: bf16[4,8,32], index: 1, kind: input, shape index: {}]   ;;  %s496_s0 = inlined_call_operand.vmem [shape: bf16[4,16,8], index: 0, kind: input, shape index: {}]   ;;  %s497_s2 = inlined_call_operand.vmem [shape: bf16[1,32], index: 2, kind: input, shape index: {}]   ;;  %s498_s3 = inlined_call_operand.vmem [shape: bf16[16,32], index: 3, kind: input, shape index: {}]   ;;  %s499_s4 = inlined_call_operand.vmem [shape: f32[1,32], index: 4, kind: input, shape index: {}]   ;;  %s500_s5 = inlined_call_operand.vmem [shape: f32[1,32], index: 5, kind: input, shape index: {}]   ;;  %s501_s6 = inlined_call_operand.vmem [shape: bf16[16,32], index: 6, kind: output, shape index: {}]  }
   0x1   :  { %366 = vmatprep.subr.bf16.mxu0 %v400_v0  ;;  %372 = vmatprep.subr.bf16.mxu1 %v400_v0  ;;  %v333_v1 = vld [vmem:[%s495_s1 + $0x4] sm:$0xf]  ;;  %v26_v2 = vld [vmem:[%s495_s1] sm:$0xf]  ;;  %v392_v5 = vld [vmem:[%s496_s0 + $0x8] sm:$0xff]   ;;  %v258_v13 = vlaneseq  ;;  %vm272_vm3 = vcmask 261120  }
   0x2   :  { %v43_v3 = vsel %vm41_vm0, %v333_v1, 0  ;;  %v95_v4 = vsel %vm41_vm0, %v26_v2, 0  ;;  %368 = vmatprep.mubr.msk.bf16.mxu0 %vm401_vm2, %v400_v0  ;;  %374 = vmatprep.mubr.msk.bf16.mxu1 %vm401_vm2, %v400_v0  ;;  %v393_v6 = vld [vmem:[%s496_s0] sm:$0xff]   ;;  %v340_v7 = vld [vmem:[%s495_s1 + $0x8] sm:$0xf]  ;;  %v394_v11 = vld [vmem:[%s496_s0 + $0x10] sm:$0xff]  }
   0x3   :  { %367 = vmatpush3.bf16.msra.mxu0 %v43_v3  ;;  %373 = vmatpush3.bf16.msra.mxu1 %v95_v4  ;;  %v152_v8 = vsel %vm41_vm0, %v340_v7, 0  ;;  %v345_v9 = vld [vmem:[%s495_s1 + $0xc] sm:$0xf]  ;;  %v395_v12 = vld [vmem:[%s496_s0 + $0x18] sm:$0xff]   ;;  %v259_v16 = vshrl.u32 %v258_v13, 7  ;;  %v355_v29 = vld [vmem:[%s498_s3] sm:$0xff]  }
   0x4   :  { %378 = vmatprep.subr.bf16.mxu0 %v400_v0  ;;  %384 = vmatprep.subr.bf16.mxu1 %v400_v0  ;;  %v211_v10 = vsel %vm41_vm0, %v345_v9, 0  ;;  %v256_v19 = vld [vmem:[%s497_s2] sm:$0x1]  ;;  %v356_v36 = vunpack.c.l.bf16 %v355_v29  ;;  %v357_v45 = vunpack.c.h.bf16 %v355_v29  ;;  %vm324_vm4 = vcmask 257024  }
   0x5   :  { %v257_v22 = vunpack.c.l.bf16 %v256_v19  ;;  %v260_v23 = vsub.s32 0, %v259_v16  ;;  %v348_v3 = vld [vmem:[%s499_s4] ss:$0 sm:$0xff] }
   0x6   :  { %369 = vmatmul.mubr.msk.bf16.vlgmr.msra.gmra.mxu0 %vm37_vm1, %v392_v5  ;;  %375 = vmatmul.mubr.msk.bf16.vlgmr.msra.gmra.mxu1 %vm37_vm1, %v393_v6  ;;  %v349_v5 = vld [vmem:[%s500_s5] ss:$0 sm:$0xff] }
   0x7   :  { %379 = vmatpush3.bf16.msra.mxu0 %v152_v8  ;;  %385 = vmatpush3.bf16.msra.mxu1 %v211_v10  ;;  %v261_v31 = vrot.slane %v257_v22, %v260_v23 }
   0x8   :  { %380 = vmatprep.mubr.msk.bf16.mxu0 %vm401_vm2, %v400_v0  ;;  %386 = vmatprep.mubr.msk.bf16.mxu1 %vm401_vm2, %v400_v0 }
   0xe   :  { %381 = vmatmul.mubr.msk.bf16.vlgmr.msra.gmra.mxu0 %vm37_vm1, %v394_v11  ;;  %387 = vmatmul.mubr.msk.bf16.vlgmr.msra.gmra.mxu1 %vm37_vm1, %v395_v12 }
  0xc6   :  { %v79_v14 = vpop.f32.mrf.mxu0  ;;  %v131_v15 = vpop.f32.mrf.mxu1 }
  0xc7   :  { %v132_v26 = vadd.f32 %v131_v15, %v79_v14 }
  0xc8   :  { %v370_v17 = vpop.f32.mrf.mxu0  ;;  %v376_v18 = vpop.f32.mrf.mxu1 }
  0xca   :  { %v82_v20 = vpop.f32.mrf.mxu0  ;;  %v134_v21 = vpop.f32.mrf.mxu1 }
  0xcb   :  { %v135_v34 = vadd.f32 %v134_v21, %v82_v20 }
  0xcc   :  { %v371_v24 = vpop.f32.mrf.mxu0  ;;  %v377_v25 = vpop.f32.mrf.mxu1 }
  0xce   :  { %v188_v27 = vpop.f32.mrf.mxu0  ;;  %v247_v28 = vpop.f32.mrf.mxu1 }
  0xcf   :  { %v195_v30 = vadd.f32 %v188_v27, %v132_v26 }
  0xd0   :  { %v382_v32 = vpop.f32.mrf.mxu0  ;;  %v388_v33 = vpop.f32.mrf.mxu1 }
  0xd1   :  { %v254_v35 = vadd.f32 %v247_v28, %v195_v30 }
  0xd2   :  { %v191_v37 = vpop.f32.mrf.mxu0  ;;  %v250_v38 = vpop.f32.mrf.mxu1 }
  0xd3   :  { %v262_v39 = vadd.f32 %v261_v31, %v254_v35  ;;  %v196_v40 = vadd.f32 %v191_v37, %v135_v34 }
  0xd4   :  { %v383_v41 = vpop.f32.mrf.mxu0  ;;  %v389_v42 = vpop.f32.mrf.mxu1 }
  0xd5   :  { %v255_v43 = vadd.f32 %v250_v38, %v196_v40  ;;  %v268_v44 = vadd.f32 %v356_v36, %v262_v39 }
  0xd7   :  { %v263_v46 = vadd.f32 %v261_v31, %v255_v43  ;;  %v273_v47 = vsel %vm272_vm3, %v268_v44, 0.0 }
  0xd8   :  { %274 = vadd.xlane.f32.xlu0 %v273_v47 }
  0xd9   :  { %v269_v48 = vadd.f32 %v357_v45, %v263_v46 }
  0xdb   :  { %v276_v49 = vsel %vm272_vm3, %v269_v48, 0.0 }
  0xdc   :  { %277 = vadd.xlane.f32.xlu0 %v276_v49 }
 0x161   :  { %v275_v50 = vpop.xlane.xlu0 %274 }
 0x162   :  { %v280_v51 = vmul.f32 0.03125, %v275_v50 }
 0x164   :  { %v282_v52 = vsub.f32 %v268_v44, %v280_v51 }
 0x165   :  { %v278_v53 = vpop.xlane.xlu0 %277 }
 0x166   :  { %v281_v54 = vmul.f32 0.03125, %v278_v53  ;;  %v284_v55 = vmul.f32 %v282_v52, %v282_v52 }
 0x168   :  { %v283_v56 = vsub.f32 %v269_v48, %v281_v54  ;;  %v286_v57 = vsel %vm272_vm3, %v284_v55, 0.0 }
 0x169   :  { %287 = vadd.xlane.f32.xlu1 %v286_v57 }
 0x16a   :  { %v285_v58 = vmul.f32 %v283_v56, %v283_v56 }
 0x16c   :  { %v289_v59 = vsel %vm272_vm3, %v285_v58, 0.0 }
 0x16d   :  { %290 = vadd.xlane.f32.xlu1 %v289_v59 }
 0x1f2   :  { %v288_v60 = vpop.xlane.xlu1 %287 }
 0x1f3   :  { %v292_v61 = vmul.f32 0.03125, %v288_v60 }
 0x1f5   :  { %v294_v62 = vadd.f32 1e-12, %v292_v61 }
 0x1f6   :  { %v291_v63 = vpop.xlane.xlu1 %290 }
 0x1f7   :  { %396 = vrsqrt.f32 %v294_v62  ;;  %v293_v0 = vmul.f32 0.03125, %v291_v63 }
 0x1f9   :  { %v295_v1 = vadd.f32 1e-12, %v293_v0 }
 0x1fb   :  { %398 = vrsqrt.f32 %v295_v1 }
 0x204   :  { %v397_v2 = vpop.eup %396 }
 0x205   :  { %v298_v4 = vmul.f32 %v397_v2, %v282_v52 }
 0x207   :  { %v306_v6 = vmul.f32 %v348_v3, %v298_v4 }
 0x208   :  { %v399_v7 = vpop.eup %398 }
 0x209   :  { %v314_v8 = vadd.f32 %v349_v5, %v306_v6  ;;  %v299_v9 = vmul.f32 %v399_v7, %v283_v56 }
 0x20b   :  { %v352_v10 = vpack.c.bf16 %v314_v8, %v314_v8  ;;  %v307_v11 = vmul.f32 %v348_v3, %v299_v9 }
 0x20d   :  { %325 = vst.msk [vmem:[%s501_s6] sm:$0xf] %vm324_vm4, %v352_v10  ;;  %v315_v12 = vadd.f32 %v349_v5, %v307_v11 }
 0x20f   :  { %v353_v13 = vpack.c.bf16 %v315_v12, %v315_v12 }
 0x211   :  { %326 = vst.msk [vmem:[%s501_s6 + $0x4] sm:$0xf] %vm324_vm4, %v353_v13 }

// kernel: bert_for_ic_and_ner.13
= control target key start
LH: loop header
LB: loop body
LE: loop exit
PB: predicated region body
PF: predicated region fallthrough
CT: control target
= control target key end

     0   :  { %s1446_s12 = smov 0   ;;  %s1448_s13 = smov 0   ;;  %s1685_s0 = inlined_call_operand.vmem [shape: bf16[12,16,8], index: 0, kind: input, shape index: {}, may-alias: {0,1,2}]   ;;  %s1686_s1 = inlined_call_operand.vmem [shape: bf16[12,16,8], index: 1, kind: input, shape index: {}, may-alias: {0,1,2}]   ;;  %s1687_s2 = inlined_call_operand.vmem [shape: bf16[12,16,8], index: 2, kind: input, shape index: {}, may-alias: {0,1,2}]   ;;  %s1688_s3 = inlined_call_operand.vmem [shape: bf16[4,16,8], index: 3, kind: output, shape index: {}]  }
   0x1   :  { %s1450_s14 = smov 0   ;;  %s1452_s15 = smov 0  }
   0x2   :  { %s1454_s16 = smov 0  }
   0x3 LB: > { %s39_s17 = sadd.s32 1, %s1416_s15  ;;  %s1213_s18 = sadd.s32 4294967295, %s1420_s16   ;;  %s1420_s16 = sphi %s1454_s16, %s13_s16   ;;  %s1416_s15 = sphi %s1452_s15, %s1694_s15   ;;  %s1412_s14 = sphi %s1450_s14, %s1693_s14   ;;  %s1408_s13 = sphi %s1448_s13, %s1692_s13   ;;  %s1404_s12 = sphi %s1446_s12, %s1691_s12  }
   0x4   : > { %p41_p0 = scmp.ge.s32.totalorder %s39_s17, 2  ;;  %p57_p1 = scmp.ne.s32.totalorder %s1408_s13, %s1404_s12 }
   0x5   : > { %p58_p2 = scmp.eq.s32.totalorder %s1420_s16, 0  ;;  %p155_p4 = scmp.eq.s32.totalorder %s1213_s18, 1 }
   0x6   : > { %s1696_s17 = smov (%p41_p0, %s39_s17), 0  ;;  %s50_s21 = sadd.s32 1, %s1408_s13 }
   0x7   : > { %p1478_p3 = por %p58_p2, %p57_p1  ;;  %s46_s20 = ssub.s32 %s1416_s15, %s1696_s17 }
   0x8   : > { %p48_p5 = scmp.eq.s32.totalorder %s46_s20, 0  ;;  %p1485_p6 = por %p155_p4, %p57_p1 }
   0x9   : > { %p1216_p7 = scmp.ge.s32.totalorder %s1420_s16, 2 }
   0xa   : > { %s1490_s23 = scalar_select %p48_p5, %s1408_s13, %s50_s21  }
   0xb   : > { %177 = sbr.rel (%p1216_p7) target bundleno = 34 (0x22), region = 16 }
  0x10   : > { %180 = sbr.rel (!%p1478_p3) target bundleno = 22 (0x16), region = 20  ;;  %s182_s24 = sand.u32 (%p1478_p3), 1, %s1408_s13  }
  0x11   : > { %s1218_s25 = sshll.u32 (%p1478_p3), %s1416_s15, 2  ;;  %s1217_s26 = sshll.u32 (%p1478_p3), %s182_s24, 4 }
  0x12   : > { %s190_s29 = scalar_lea.vmem (%p1478_p3), %s1685_s0, %s1218_s25  ;;  %s184_s30 = scalar_lea.vmem (%p1478_p3), [#allocation5], %s1217_s26 }
  0x13   : > { %v207_v0 = vld [vmem:[%s190_s29] sm:$0xf] (%p1478_p3)  ;;  %v209_v1 = vld [vmem:[%s190_s29 + $0x8] sm:$0xf] (%p1478_p3)  ;;  %v211_v2 = vld [vmem:[%s190_s29 + $0x10] sm:$0xf] (%p1478_p3) }
  0x14   : > { %208 = vst [vmem:[%s184_s30] sm:$0xf] (%p1478_p3), %v207_v0  ;;  %210 = vst [vmem:[%s184_s30 + $0x4] sm:$0xf] (%p1478_p3), %v209_v1  ;;  %v213_v3 = vld [vmem:[%s190_s29 + $0x18] sm:$0xf] (%p1478_p3) }
  0x15   : > { %212 = vst [vmem:[%s184_s30 + $0x8] sm:$0xf] %v211_v2  ;;  %214 = vst [vmem:[%s184_s30 + $0xc] sm:$0xf] %v213_v3 }
  0x16 PF: > { %246 = sbr.rel (!%p1478_p3) target bundleno = 28 (0x1c), region = 61  ;;  %s248_s4 = sand.u32 (%p1478_p3), 1, %s1408_s13  }
  0x17   : > { %s1220_s5 = sshll.u32 (%p1478_p3), %s1416_s15, 2  ;;  %s1219_s6 = sshll.u32 (%p1478_p3), %s248_s4, 4 }
  0x18   : > { %s1117_s9 = scalar_lea.vmem (%p1478_p3), %s1686_s1, %s1220_s5  ;;  %s250_s10 = scalar_lea.vmem (%p1478_p3), [#allocation6], %s1219_s6 }
  0x19   : > { %v1221_v4 = vld [vmem:[%s1117_s9 + $0x20] sm:$0xf] (%p1478_p3)  ;;  %v1222_v5 = vld [vmem:[%s1117_s9 + $0x28] sm:$0xf] (%p1478_p3)  ;;  %v1223_v6 = vld [vmem:[%s1117_s9 + $0x30] sm:$0xf] (%p1478_p3) }
  0x1a   : > { %275 = vst [vmem:[%s250_s10] sm:$0xf] (%p1478_p3), %v1221_v4  ;;  %277 = vst [vmem:[%s250_s10 + $0x4] sm:$0xf] (%p1478_p3), %v1222_v5  ;;  %v1224_v7 = vld [vmem:[%s1117_s9 + $0x38] sm:$0xf] (%p1478_p3) }
  0x1b   : > { %279 = vst [vmem:[%s250_s10 + $0x8] sm:$0xf] %v1223_v6  ;;  %281 = vst [vmem:[%s250_s10 + $0xc] sm:$0xf] %v1224_v7 }
  0x1c PF: > { %313 = sbr.rel (!%p1478_p3) target bundleno = 34 (0x22), region = 102  ;;  %s315_s11 = sand.u32 (%p1478_p3), 1, %s1408_s13  }
  0x1d   : > { %s1226_s18 = sshll.u32 (%p1478_p3), %s1416_s15, 2  ;;  %s1225_s20 = sshll.u32 (%p1478_p3), %s315_s11, 4 }
  0x1e   : > { %s1125_s25 = scalar_lea.vmem (%p1478_p3), %s1687_s2, %s1226_s18  ;;  %s317_s26 = scalar_lea.vmem (%p1478_p3), [#allocation7], %s1225_s20 }
  0x1f   : > { %v1227_v8 = vld [vmem:[%s1125_s25 + $0x40] sm:$0xf] (%p1478_p3)  ;;  %v1228_v9 = vld [vmem:[%s1125_s25 + $0x48] sm:$0xf] (%p1478_p3)  ;;  %v1229_v10 = vld [vmem:[%s1125_s25 + $0x50] sm:$0xf] (%p1478_p3) }
  0x20   : > { %342 = vst [vmem:[%s317_s26] sm:$0xf] (%p1478_p3), %v1227_v8  ;;  %344 = vst [vmem:[%s317_s26 + $0x4] sm:$0xf] (%p1478_p3), %v1228_v9  ;;  %v1230_v11 = vld [vmem:[%s1125_s25 + $0x58] sm:$0xf] (%p1478_p3) }
  0x21   : > { %346 = vst [vmem:[%s317_s26 + $0x8] sm:$0xf] %v1229_v10  ;;  %348 = vst [vmem:[%s317_s26 + $0xc] sm:$0xf] %v1230_v11 }
  0x22 PF: > { %p1231_p8 = scmp.ge.s32.totalorder %s1420_s16, 1  ;;  %p379_p9 = scmp.lt.s32.totalorder %s1420_s16, 3 }
  0x24   : > { %p380_p10 = pnand %p1231_p8, %p379_p9 }
  0x25   : > { %s386_s19 = sand.u32 (!%p380_p10), 1, %s1404_s12  }
  0x26   : > { %383 = sbr.rel (%p380_p10) target bundleno = 843 (0x34b), region = 143  ;;  %s1519_s27 = sshll.u32 (!%p380_p10), %s386_s19, 4 }
  0x27   : > { %s395_s12 = scalar_lea.vmem (!%p380_p10), [#allocation6], %s1519_s27  ;;  %s388_s28 = scalar_lea.vmem (!%p380_p10), [#allocation5], %s1519_s27 }
  0x28   : > { %s402_s29 = scalar_lea.vmem (!%p380_p10), [#allocation7], %s1519_s27  ;;  %s429_s30 = scalar_lea.vmem (!%p380_p10), [#allocation8], %s1519_s27 }
  0x2b   : > { %vm454_vm0 = vcmask 64512   ;;  %v1422_v12 = vmov 0.0   ;;  %vm1423_vm1 = vmmov 0   ;;  %v463_v13 = vld [vmem:[%s395_s12] sm:$0xf]  ;;  %vm445_vm2 = vcmask 7168  }
  0x2c   : > { %1264 = vmatprep.subr.bf16.mxu0 %v1422_v12  ;;  %1270 = vmatprep.subr.bf16.mxu1 %v1422_v12  ;;  %455 = vst.msk [vmem:[#allocation4] sm:$0xff] %vm454_vm0, %v1422_v12  ;;  %456 = vst.msk [vmem:[#allocation4 + $0x8] sm:$0xff] %vm454_vm0, %v1422_v12  ;;  %v464_v14 = vld [vmem:[%s395_s12 + $0x4] sm:$0xf]  ;;  %v476_v15 = vsel %vm454_vm0, %v463_v13, 0  ;;  %v1424_v25 = vmov -inf  }
  0x2d   : > { %457 = vst.msk [vmem:[#allocation4 + $0x10] sm:$0xff] %vm454_vm0, %v1422_v12  ;;  %458 = vst.msk [vmem:[#allocation4 + $0x18] sm:$0xff] %vm454_vm0, %v1422_v12  ;;  %1266 = vmatprep.mubr.msk.bf16.mxu0 %vm1423_vm1, %v1422_v12  ;;  %1272 = vmatprep.mubr.msk.bf16.mxu1 %vm1423_vm1, %v1422_v12  ;;  %v522_v16 = vsel %vm454_vm0, %v464_v14, 0  ;;  %v465_v17 = vld [vmem:[%s395_s12 + $0x8] sm:$0xf]  ;;  %v1425_v44 = vmov 0  }
  0x2e   : > { %1265 = vmatpush3.bf16.xpose.msra.mxu0 %v476_v15  ;;  %1271 = vmatpush3.bf16.xpose.msra.mxu1 %v522_v16  ;;  %v466_v18 = vld [vmem:[%s395_s12 + $0xc] sm:$0xf]  ;;  %v459_v19 = vld [vmem:[%s388_s28] sm:$0xf]  ;;  %v460_v20 = vld [vmem:[%s388_s28 + $0x4] sm:$0xf] }
  0x2f   : > { %1276 = vmatprep.subr.bf16.mxu0 %v1422_v12  ;;  %1282 = vmatprep.subr.bf16.mxu1 %v1422_v12  ;;  %v568_v21 = vsel %vm454_vm0, %v465_v17, 0  ;;  %v614_v22 = vsel %vm454_vm0, %v466_v18, 0  ;;  %v461_v23 = vld [vmem:[%s388_s28 + $0x8] sm:$0xf]  ;;  %v462_v24 = vld [vmem:[%s388_s28 + $0xc] sm:$0xf] }
  0x30   : > { %446 = vst.msk [vmem:[#allocation2] sm:$0xff] %vm445_vm2, %v1424_v25  ;;  %447 = vst.msk [vmem:[#allocation2 + $0x8] sm:$0xff] %vm445_vm2, %v1424_v25  ;;  %1356 = vset.pattern.permute.xlu0 %v1425_v44  ;;  %1357 = vset.pattern.permute.xlu1 %v1425_v44  ;;  %v467_v62 = vld [vmem:[%s402_s29] sm:$0xf]  ;;  %vm784_vm3 = vcmask 1043456   ;;  %vm1021_vm4 = vcmask 60416  }
  0x31   : > { %448 = vst.msk [vmem:[#allocation2 + $0x10] sm:$0xff] %vm445_vm2, %v1424_v25  ;;  %449 = vst.msk [vmem:[#allocation2 + $0x18] sm:$0xff] %vm445_vm2, %v1424_v25  ;;  %v786_v0 = vsel %vm784_vm3, %v467_v62, 0  ;;  %v468_v1 = vld [vmem:[%s402_s29 + $0x4] sm:$0xf]  ;;  %s1245_s4 = sshll.u32 (%p1485_p6), %s1412_s14, 2 }
  0x32   : > { %450 = vst.msk [vmem:[#allocation3] sm:$0xff] %vm445_vm2, %v1422_v12  ;;  %451 = vst.msk [vmem:[#allocation3 + $0x8] sm:$0xff] %vm445_vm2, %v1422_v12  ;;  %v832_v2 = vsel %vm784_vm3, %v468_v1, 0  ;;  %v469_v3 = vld [vmem:[%s402_s29 + $0x8] sm:$0xf]  ;;  %s1038_s7 = scalar_lea.vmem (%p1485_p6), %s1688_s3, %s1245_s4 }
  0x33   : > { %452 = vst.msk [vmem:[#allocation3 + $0x10] sm:$0xff] %vm445_vm2, %v1422_v12  ;;  %453 = vst.msk [vmem:[#allocation3 + $0x18] sm:$0xff] %vm445_vm2, %v1422_v12  ;;  %v878_v4 = vsel %vm784_vm3, %v469_v3, 0  ;;  %v470_v5 = vld [vmem:[%s402_s29 + $0xc] sm:$0xf] }
  0x34   : > { %v924_v6 = vsel %vm784_vm3, %v470_v5, 0  ;;  %v750_v62 = vld [vmem:[#allocation4 + $0x8] sm:$0xff] }
  0x35   : > { %1267 = vmatmul.mubr.msk.bf16.vlgmr.msra.gmra.mxu0 %vm454_vm0, %v459_v19  ;;  %1273 = vmatmul.mubr.msk.bf16.vlgmr.msra.gmra.mxu1 %vm454_vm0, %v460_v20 }
  0x36   : > { %1277 = vmatpush3.bf16.xpose.msra.mxu0 %v568_v21  ;;  %1283 = vmatpush3.bf16.xpose.msra.mxu1 %v614_v22 }
  0x37   : > { %1278 = vmatprep.mubr.msk.bf16.mxu0 %vm1423_vm1, %v1422_v12  ;;  %1284 = vmatprep.mubr.msk.bf16.mxu1 %vm1423_vm1, %v1422_v12  ;;  %v1583_v47 = vld [vmem:[#allocation2] sm:$0xff]  ;;  %v1588_v50 = vld [vmem:[#allocation2 + $0x8] sm:$0xff] }
  0x38   : > { %1288 = vmatprep.subr.bf16.mxu0 %v1422_v12  ;;  %1294 = vmatprep.subr.bf16.mxu1 %v1422_v12  ;;  %v1598_v54 = vld [vmem:[#allocation2 + $0x10] sm:$0xff]  ;;  %v1608_v58 = vld [vmem:[#allocation2 + $0x18] sm:$0xff] }
  0x3d   : > { %1279 = vmatmul.mubr.msk.bf16.vlgmr.msra.gmra.mxu0 %vm454_vm0, %v461_v23  ;;  %1285 = vmatmul.mubr.msk.bf16.vlgmr.msra.gmra.mxu1 %vm454_vm0, %v462_v24 }
  0x3e   : > { %1290 = vmatprep.mubr.msk.bf16.mxu0 %vm1423_vm1, %v1422_v12  ;;  %1296 = vmatprep.mubr.msk.bf16.mxu1 %vm1423_vm1, %v1422_v12 }
  0x3f   : > { %1289 = vmatpush3.bf16.msra.mxu0 %v786_v0  ;;  %1295 = vmatpush3.bf16.msra.mxu1 %v832_v2 }
  0x40   : > { %1300 = vmatprep.subr.bf16.mxu0 %v1422_v12  ;;  %1306 = vmatprep.subr.bf16.mxu1 %v1422_v12 }
  0xf5   : > { %v1567_v26 = vpop.f32.mrf.mxu0  ;;  %v1569_v27 = vpop.f32.mrf.mxu1 }
  0xf6   : > { %v660_v28 = vsel %vm454_vm0, %v1567_v26, -inf  ;;  %v663_v31 = vsel %vm454_vm0, %v1569_v27, -inf }
  0xf7   : > { %v1274_v29 = vpop.f32.mrf.mxu1  ;;  %661 = vmax.xlane.f32.xlu0 %v660_v28  ;;  %v1268_v30 = vpop.f32.mrf.mxu0 }
  0xf9   : > { %v515_v32 = vpop.f32.mrf.mxu0  ;;  %v561_v33 = vpop.f32.mrf.mxu1 }
  0xfb   : > { %v1275_v34 = vpop.f32.mrf.mxu1  ;;  %664 = vmax.xlane.f32.xlu0 %v663_v31  ;;  %v1269_v35 = vpop.f32.mrf.mxu0 }
  0xfd   : > { %v1575_v36 = vpop.f32.mrf.mxu0  ;;  %v1577_v37 = vpop.f32.mrf.mxu1 }
  0xfe   : > { %v666_v38 = vsel %vm454_vm0, %v1575_v36, -inf  ;;  %v669_v41 = vsel %vm454_vm0, %v1577_v37, -inf }
  0xff   : > { %v1286_v39 = vpop.f32.mrf.mxu1  ;;  %667 = vmax.xlane.f32.xlu1 %v666_v38  ;;  %v1280_v40 = vpop.f32.mrf.mxu0 }
 0x100   : > { %v721_v40 = vld [vmem:[#allocation3 + $0x8] sm:$0xff] }
 0x101   : > { %v607_v42 = vpop.f32.mrf.mxu0  ;;  %v653_v43 = vpop.f32.mrf.mxu1 }
 0x103   : > { %v1287_v45 = vpop.f32.mrf.mxu1  ;;  %670 = vmax.xlane.f32.xlu1 %v669_v41  ;;  %v1281_v46 = vpop.f32.mrf.mxu0 }
 0x104   : > { %v722_v45 = vld [vmem:[#allocation3 + $0x10] sm:$0xff] }
 0x180   : > { %v662_v48 = vpop.xlane.xlu0 %661 }
 0x181   : > { %v1586_v49 = vmax.f32 %v1583_v47, %v662_v48 }
 0x183   : > { %v676_v51 = vsub.f32 %v1583_v47, %v1586_v49  ;;  %974 = vst.msk [vmem:[#allocation2] sm:$0xff] %vm445_vm2, %v1586_v49  ;;  %690 = vperm.xlu0 %1356, %v1586_v49  }
 0x184   : > { %v665_v52 = vpop.xlane.xlu0 %664 }
 0x185   : > { %v1596_v53 = vmax.f32 %v1588_v50, %v665_v52  ;;  %v680_v31 = vmul.f32 1.442695, %v676_v51 }
 0x187   : > { %v677_v55 = vsub.f32 %v1588_v50, %v1596_v53  ;;  %975 = vst.msk [vmem:[#allocation2 + $0x8] sm:$0xff] %vm445_vm2, %v1596_v53  ;;  %695 = vperm.xlu1 %1357, %v1596_v53   ;;  %v723_v50 = vld [vmem:[#allocation3 + $0x18] sm:$0xff] }
 0x188   : > { %v668_v56 = vpop.xlane.xlu1 %667 }
 0x189   : > { %v1606_v57 = vmax.f32 %v1598_v54, %v668_v56  ;;  %v682_v29 = vmul.f32 1.442695, %v677_v55 }
 0x18b   : > { %v678_v59 = vsub.f32 %v1598_v54, %v1606_v57  ;;  %976 = vst.msk [vmem:[#allocation2 + $0x10] sm:$0xff] %vm445_vm2, %v1606_v57  ;;  %700 = vperm.xlu1 %1357, %v1606_v57  }
 0x18c   : > { %v671_v60 = vpop.xlane.xlu1 %670 }
 0x18d   : > { %v1616_v61 = vmax.f32 %v1608_v58, %v671_v60  ;;  %v684_v35 = vmul.f32 1.442695, %v678_v59  ;;  %v749_v59 = vld [vmem:[#allocation4] sm:$0xff] }
 0x18f   : > { %v679_v63 = vsub.f32 %v1608_v58, %v1616_v61  ;;  %977 = vst.msk [vmem:[#allocation2 + $0x18] sm:$0xff] %vm445_vm2, %v1616_v61  ;;  %705 = vperm.xlu1 %1357, %v1616_v61  }
 0x1fe   : > { %v691_v7 = vpop.permute.xlu0 %690 }
 0x1ff   : > { %v708_v8 = vsub.f32 %v1567_v26, %v691_v7 }
 0x201   : > { %v712_v9 = vmul.f32 1.442695, %v708_v8 }
 0x202   : > { %v696_v10 = vpop.permute.xlu1 %695 }
 0x203   : > { %1358 = vpow2.f32 %v712_v9  ;;  %v709_v11 = vsub.f32 %v1569_v27, %v696_v10 }
 0x205   : > { %v714_v13 = vmul.f32 1.442695, %v709_v11 }
 0x206   : > { %v701_v14 = vpop.permute.xlu1 %700 }
 0x207   : > { %1360 = vpow2.f32 %v714_v13  ;;  %v710_v15 = vsub.f32 %v1575_v36, %v701_v14  ;;  %v686_v36 = vmul.f32 1.442695, %v679_v63 }
 0x209   : > { %v716_v16 = vmul.f32 1.442695, %v710_v15 }
 0x20a   : > { %v706_v17 = vpop.permute.xlu1 %705 }
 0x20b   : > { %1362 = vpow2.f32 %v716_v16  ;;  %v711_v18 = vsub.f32 %v1577_v37, %v706_v17  ;;  %v720_v37 = vld [vmem:[#allocation3] sm:$0xff] }
 0x20d   : > { %v718_v19 = vmul.f32 1.442695, %v711_v18 }
 0x20f   : > { %1364 = vpow2.f32 %v718_v19 }
 0x210   : > { %v1359_v20 = vpop.eup %1358  ;;  %1366 = vpow2.f32 %v682_v29 }
 0x211   : > { %v728_v21 = vsel %vm454_vm0, %v1359_v20, 0.0  ;;  %v777_v22 = vpack.c.bf16 %v1359_v20, %v1359_v20  ;;  %1368 = vpow2.f32 %v680_v31 }
 0x212   : > { %729 = vadd.xlane.f32.xlu1 %v728_v21  ;;  %1370 = vpow2.f32 %v684_v35 }
 0x213   : > { %1291 = vmatmul.mubr.msk.bf16.vlgmr.msra.gmra.mxu0 %vm454_vm0, %v777_v22  ;;  %1372 = vpow2.f32 %v686_v36  ;;  %v752_v22 = vld [vmem:[#allocation4 + $0x18] sm:$0xff] }
 0x214   : > { %v1361_v23 = vpop.eup %1360  ;;  %1301 = vmatpush3.bf16.msra.mxu0 %v878_v4  ;;  %1302 = vmatprep.mubr.msk.bf16.mxu0 %vm1423_vm1, %v1422_v12 }
 0x215   : > { %v731_v24 = vsel %vm454_vm0, %v1361_v23, 0.0  ;;  %v778_v25 = vpack.c.bf16 %v1361_v23, %v1361_v23 }
 0x216   : > { %732 = vadd.xlane.f32.xlu0 %v731_v24 }
 0x217   : > { %1297 = vmatmul.mubr.msk.bf16.vlgmr.msra.gmra.mxu1 %vm454_vm0, %v778_v25 }
 0x218   : > { %v1363_v26 = vpop.eup %1362  ;;  %1307 = vmatpush3.bf16.msra.mxu1 %v924_v6  ;;  %1308 = vmatprep.mubr.msk.bf16.mxu1 %vm1423_vm1, %v1422_v12 }
 0x219   : > { %v734_v27 = vsel %vm454_vm0, %v1363_v26, 0.0  ;;  %v779_v28 = vpack.c.bf16 %v1363_v26, %v1363_v26 }
 0x21a   : > { %735 = vadd.xlane.f32.xlu1 %v734_v27 }
 0x21b   : > { %1303 = vmatmul.mubr.msk.bf16.vlgmr.msra.gmra.mxu0 %vm454_vm0, %v779_v28 }
 0x21c   : > { %v1365_v30 = vpop.eup %1364 }
 0x21d   : > { %v737_v32 = vsel %vm454_vm0, %v1365_v30, 0.0  ;;  %v780_v33 = vpack.c.bf16 %v1365_v30, %v1365_v30  ;;  %v1367_v12 = vpop.eup %1366  ;;  %v751_v30 = vld [vmem:[#allocation4 + $0x10] sm:$0xff] }
 0x21e   : > { %738 = vadd.xlane.f32.xlu1 %v737_v32  ;;  %v1369_v34 = vpop.eup %1368  ;;  %v725_v42 = vmul.f32 %v1367_v12, %v721_v40 }
 0x21f   : > { %1309 = vmatmul.mubr.msk.bf16.vlgmr.msra.gmra.mxu1 %vm454_vm0, %v780_v33  ;;  %v724_v38 = vmul.f32 %v1369_v34, %v720_v37  ;;  %v1371_v43 = vpop.eup %1370 }
 0x220   : > { %v726_v47 = vmul.f32 %v1371_v43, %v722_v45  ;;  %v1373_v48 = vpop.eup %1372 }
 0x221   : > { %v727_v53 = vmul.f32 %v1373_v48, %v723_v50 }
 0x22c   : > { %760 = vperm.xlu0 %1356, %v1367_v12  }
 0x22f   : > { %755 = vperm.xlu1 %1357, %v1369_v34  }
 0x29b   : > { %v730_v39 = vpop.xlane.xlu1 %729 }
 0x29c   : > { %v740_v41 = vadd.f32 %v730_v39, %v724_v38 }
 0x29e   : > { %745 = vst.msk [vmem:[#allocation3] sm:$0xff] %vm445_vm2, %v740_v41 }
 0x29f   : > { %v733_v44 = vpop.xlane.xlu0 %732 }
 0x2a0   : > { %v741_v46 = vadd.f32 %v733_v44, %v725_v42 }
 0x2a2   : > { %746 = vst.msk [vmem:[#allocation3 + $0x8] sm:$0xff] %vm445_vm2, %v741_v46 }
 0x2a3   : > { %v736_v49 = vpop.xlane.xlu1 %735 }
 0x2a4   : > { %v742_v51 = vadd.f32 %v736_v49, %v726_v47 }
 0x2a5   : > { %v985_v52 = vld [vmem:[#allocation3] sm:$0xff] }
 0x2a6   : > { %747 = vst.msk [vmem:[#allocation3 + $0x10] sm:$0xff] %vm445_vm2, %v742_v51  ;;  %991 = vperm.xlu1 %1357, %v985_v52  }
 0x2a7   : > { %v739_v54 = vpop.xlane.xlu1 %738  ;;  %v761_v63 = vpop.permute.xlu0 %760 }
 0x2a8   : > { %v743_v55 = vadd.f32 %v739_v54, %v727_v53  ;;  %v774_v3 = vmul.f32 %v761_v63, %v750_v62 }
 0x2a9   : > { %v986_v56 = vld [vmem:[#allocation3 + $0x8] sm:$0xff] }
 0x2aa   : > { %748 = vst.msk [vmem:[#allocation3 + $0x18] sm:$0xff] %vm445_vm2, %v743_v55  ;;  %996 = vperm.xlu0 %1356, %v986_v56  }
 0x2ab   : > { %v756_v60 = vpop.permute.xlu1 %755 }
 0x2ac   : > { %v773_v61 = vmul.f32 %v756_v60, %v749_v59 }
 0x2ad   : > { %v987_v57 = vld [vmem:[#allocation3 + $0x10] sm:$0xff] }
 0x2ae   : > { %770 = vperm.xlu0 %1356, %v1373_v48   ;;  %1001 = vperm.xlu1 %1357, %v987_v57  }
 0x2b1   : > { %v988_v58 = vld [vmem:[#allocation3 + $0x18] sm:$0xff] }
 0x2b2   : > { %1006 = vperm.xlu1 %1357, %v988_v58  }
 0x2b6   : > { %765 = vperm.xlu1 %1357, %v1371_v43  }
 0x2d3   : > { %v822_v0 = vpop.f32.mrf.mxu0 }
 0x2d4   : > { %v966_v1 = vadd.f32 %v822_v0, %v773_v61 }
 0x2d5   : > { %v1292_v2 = vpop.f32.mrf.mxu0 }
 0x2d6   : > { %970 = vst.msk [vmem:[#allocation4] sm:$0xff] %vm454_vm0, %v966_v1 }
 0x2d7   : > { %v825_v4 = vpop.f32.mrf.mxu0  ;;  %v868_v5 = vpop.f32.mrf.mxu1 }
 0x2d8   : > { %v967_v6 = vadd.f32 %v868_v5, %v774_v3 }
 0x2d9   : > { %v1293_v7 = vpop.f32.mrf.mxu0  ;;  %v1298_v8 = vpop.f32.mrf.mxu1 }
 0x2da   : > { %971 = vst.msk [vmem:[#allocation4 + $0x8] sm:$0xff] %vm454_vm0, %v967_v6 }
 0x2db   : > { %v871_v9 = vpop.f32.mrf.mxu1  ;;  %v914_v10 = vpop.f32.mrf.mxu0 }
 0x2dd   : > { %v1299_v11 = vpop.f32.mrf.mxu1  ;;  %v1304_v13 = vpop.f32.mrf.mxu0  ;;  %v981_v29 = vld [vmem:[#allocation4] sm:$0xff] }
 0x2df   : > { %v917_v14 = vpop.f32.mrf.mxu0  ;;  %v960_v15 = vpop.f32.mrf.mxu1 }
 0x2e1   : > { %v1305_v16 = vpop.f32.mrf.mxu0  ;;  %v1310_v17 = vpop.f32.mrf.mxu1  ;;  %v982_v35 = vld [vmem:[#allocation4 + $0x8] sm:$0xff] }
 0x2e3   : > { %v963_v18 = vpop.f32.mrf.mxu1 }
 0x2e5   : > { %v1311_v19 = vpop.f32.mrf.mxu1 }
 0x321   : > { %v992_v20 = vpop.permute.xlu1 %991 }
 0x322   : > { %1374 = vrcp.f32 %v992_v20 }
 0x325   : > { %v997_v21 = vpop.permute.xlu0 %996 }
 0x326   : > { %1376 = vrcp.f32 %v997_v21 }
 0x329   : > { %v771_v23 = vpop.permute.xlu0 %770  ;;  %v1002_v24 = vpop.permute.xlu1 %1001 }
 0x32a   : > { %v776_v25 = vmul.f32 %v771_v23, %v752_v22 }
 0x32c   : > { %v969_v26 = vadd.f32 %v960_v15, %v776_v25 }
 0x32d   : > { %v1007_v27 = vpop.permute.xlu1 %1006 }
 0x32e   : > { %973 = vst.msk [vmem:[#allocation4 + $0x18] sm:$0xff] %vm454_vm0, %v969_v26  ;;  %1378 = vrcp.f32 %v1007_v27 }
 0x32f   : > { %v1375_v28 = vpop.eup %1374  ;;  %1380 = vrcp.f32 %v1002_v24 }
 0x330   : > { %v1010_v31 = vmul.f32 %v1375_v28, %v981_v29 }
 0x331   : > { %v766_v32 = vpop.permute.xlu1 %765 }
 0x332   : > { %v1017_v33 = vpack.c.bf16 %v1010_v31, %v1010_v31  ;;  %v775_v12 = vmul.f32 %v766_v32, %v751_v30 }
 0x333   : > { %v1377_v34 = vpop.eup %1376 }
 0x334   : > { %1022 = vst.msk [vmem:[%s429_s30] sm:$0xf] %vm1021_vm4, %v1017_v33  ;;  %v1012_v36 = vmul.f32 %v1377_v34, %v982_v35  ;;  %v968_v37 = vadd.f32 %v914_v10, %v775_v12 }
 0x335   : > { %v984_v40 = vld [vmem:[#allocation4 + $0x18] sm:$0xff] }
 0x336   : > { %v1018_v38 = vpack.c.bf16 %v1012_v36, %v1012_v36  ;;  %972 = vst.msk [vmem:[#allocation4 + $0x10] sm:$0xff] %vm454_vm0, %v968_v37 }
 0x338   : > { %1023 = vst.msk [vmem:[%s429_s30 + $0x4] sm:$0xf] %vm1021_vm4, %v1018_v38 }
 0x33b   : > { %v1379_v39 = vpop.eup %1378  ;;  %v1055_v47 = vld [vmem:[%s429_s30] sm:$0xf] (%p1485_p6) }
 0x33c   : > { %v1016_v41 = vmul.f32 %v1379_v39, %v984_v40  ;;  %v1381_v42 = vpop.eup %1380  ;;  %1056 = vst [vmem:[%s1038_s7] sm:$0xf] (%p1485_p6), %v1055_v47 }
 0x33d   : > { %v983_v43 = vld [vmem:[#allocation4 + $0x10] sm:$0xff] }
 0x33e   : > { %v1020_v44 = vpack.c.bf16 %v1016_v41, %v1016_v41  ;;  %v1014_v45 = vmul.f32 %v1381_v42, %v983_v43  ;;  %1032 = sbr.rel (!%p1485_p6) target bundleno = 843 (0x34b), region = 167 }
 0x33f   : > { %v1057_v48 = vld [vmem:[%s429_s30 + $0x4] sm:$0xf] (%p1485_p6) }
 0x340   : > { %1025 = vst.msk [vmem:[%s429_s30 + $0xc] sm:$0xf] %vm1021_vm4, %v1020_v44  ;;  %v1019_v46 = vpack.c.bf16 %v1014_v45, %v1014_v45  ;;  %1058 = vst [vmem:[%s1038_s7 + $0x8] sm:$0xf] (%p1485_p6), %v1057_v48 }
 0x342   : > { %1024 = vst.msk [vmem:[%s429_s30 + $0x8] sm:$0xf] %vm1021_vm4, %v1019_v46 }
 0x347   : > { %v1061_v50 = vld [vmem:[%s429_s30 + $0xc] sm:$0xf] }
 0x348   : > { %1062 = vst [vmem:[%s1038_s7 + $0x18] sm:$0xf] %v1061_v50 }
 0x349   : > { %v1059_v49 = vld [vmem:[%s429_s30 + $0x8] sm:$0xf] }
 0x34a   : > { %1060 = vst [vmem:[%s1038_s7 + $0x10] sm:$0xf] %v1059_v49 }
 0x34b PF: > { %s13_s16 = sadd.s32 1, %s1420_s16   ;;  %s1691_s12 = smov %s1408_s13 }
 0x34c   : > { %p10_p11 = scmp.ge.s32.totalorder %s13_s16, 4   ;;  %s1692_s13 = smov %s1490_s23 }
 0x34d   : > { %s1693_s14 = smov %s1416_s15  ;;  %s1694_s15 = smov %s1696_s17 }
 0x34e   :  { %12 = sbr.rel (!%p10_p11) target bundleno = 3 (0x3), region = 255 }

// kernel: bert_for_ic_and_ner.12
= control target key start
LH: loop header
LB: loop body
LE: loop exit
PB: predicated region body
PF: predicated region fallthrough
CT: control target
= control target key end

     0   :  { %v1269_v0 = vmov 0.0   ;;  %vm1270_vm0 = vmmov 0   ;;  %vm44_vm1 = vcmask 261120   ;;  %v23_v26 = vlaneseq  ;;  %s1586_s1 = inlined_call_operand.vmem [shape: bf16[12,32,8], index: 1, kind: input, shape index: {}]   ;;  %s1587_s0 = inlined_call_operand.vmem [shape: bf16[16,32], index: 0, kind: input, shape index: {}]   ;;  %s1588_s2 = inlined_call_operand.vmem [shape: bf16[12,1,8], index: 2, kind: input, shape index: {}]   ;;  %s1589_s3 = inlined_call_operand.vmem [shape: bf16[12,16,8], index: 3, kind: output, shape index: {}]  }
   0x1   :  { %1146 = vmatprep.subr.bf16.mxu0 %v1269_v0  ;;  %1154 = vmatprep.subr.bf16.mxu1 %v1269_v0  ;;  %v1244_v1 = vld [vmem:[%s1586_s1 + $0x8] sm:$0xff]   ;;  %v1245_v2 = vld [vmem:[%s1586_s1 + $0x18] sm:$0xff]   ;;  %v1246_v3 = vld [vmem:[%s1586_s1] sm:$0xff]   ;;  %vm99_vm2 = vcmask 60416  }
   0x2   :  { %1150 = vmatprep.mubr.msk.bf16.mxu0 %vm1270_vm0, %v1269_v0  ;;  %1158 = vmatprep.mubr.msk.bf16.mxu1 %vm1270_vm0, %v1269_v0  ;;  %v1247_v4 = vld [vmem:[%s1586_s1 + $0x10] sm:$0xff]   ;;  %v1314_v5 = vld [vmem:[%s1587_s0] sm:$0xff]   ;;  %v1249_v6 = vld [vmem:[%s1586_s1 + $0x28] sm:$0xff]   ;;  %v24_v27 = vshrl.u32 %v23_v26, 7 }
   0x3   :  { %1147 = vmatpush3.bf16.msra.mxu0 %v1244_v1  ;;  %1155 = vmatpush3.bf16.msra.mxu1 %v1245_v2  ;;  %v1250_v7 = vld [vmem:[%s1586_s1 + $0x38] sm:$0xff]   ;;  %v1251_v8 = vld [vmem:[%s1586_s1 + $0x20] sm:$0xff]   ;;  %v1252_v9 = vld [vmem:[%s1586_s1 + $0x30] sm:$0xff]  }
   0x4   :  { %1148 = vmatprep.subr.bf16.mxu0 %v1269_v0  ;;  %1156 = vmatprep.subr.bf16.mxu1 %v1269_v0  ;;  %v1253_v10 = vld [vmem:[%s1586_s1 + $0x48] sm:$0xff]   ;;  %v1254_v11 = vld [vmem:[%s1586_s1 + $0x58] sm:$0xff]   ;;  %v1255_v12 = vld [vmem:[%s1586_s1 + $0x40] sm:$0xff]   ;;  %v1446_v31 = vsub.s32 0, %v24_v27 }
   0x5   :  { %v1256_v13 = vld [vmem:[%s1586_s1 + $0x50] sm:$0xff]   ;;  %v1257_v14 = vld [vmem:[%s1586_s1 + $0x68] sm:$0xff]   ;;  %v1258_v15 = vld [vmem:[%s1586_s1 + $0x78] sm:$0xff]  }
   0x6   :  { %v1259_v16 = vld [vmem:[%s1586_s1 + $0x60] sm:$0xff]   ;;  %v1260_v17 = vld [vmem:[%s1586_s1 + $0x70] sm:$0xff]   ;;  %v1261_v18 = vld [vmem:[%s1586_s1 + $0x88] sm:$0xff]  }
   0x7   :  { %1149 = vmatpush3.bf16.msra.mxu0 %v1246_v3  ;;  %1157 = vmatpush3.bf16.msra.mxu1 %v1247_v4  ;;  %v1262_v19 = vld [vmem:[%s1586_s1 + $0x98] sm:$0xff]   ;;  %v1263_v20 = vld [vmem:[%s1586_s1 + $0x80] sm:$0xff]   ;;  %v1264_v21 = vld [vmem:[%s1586_s1 + $0x90] sm:$0xff]  }
   0x8   :  { %1162 = vmatprep.subr.bf16.mxu0 %v1269_v0  ;;  %1170 = vmatprep.subr.bf16.mxu1 %v1269_v0  ;;  %v1265_v22 = vld [vmem:[%s1586_s1 + $0xa8] sm:$0xff]   ;;  %v1266_v23 = vld [vmem:[%s1586_s1 + $0xb8] sm:$0xff]   ;;  %v1267_v24 = vld [vmem:[%s1586_s1 + $0xa0] sm:$0xff]  }
   0x9   :  { %v1268_v25 = vld [vmem:[%s1586_s1 + $0xb0] sm:$0xff]   ;;  %v21_v28 = vld [vmem:[%s1588_s2] sm:$0x1]  ;;  %v958_v29 = vld [vmem:[%s1588_s2 + $0x1] sm:$0x1] }
   0xa   :  { %1151 = vmatmul.mubr.msk.bf16.vlgmr.msra.gmra.mxu0 %vm44_vm1, %v1314_v5  ;;  %1159 = vmatmul.mubr.msk.bf16.vlgmr.msra.gmra.mxu1 %vm44_vm1, %v1314_v5  ;;  %v22_v30 = vunpack.c.l.bf16 %v21_v28  ;;  %v109_v32 = vunpack.c.l.bf16 %v958_v29  ;;  %v970_v35 = vld [vmem:[%s1588_s2 + $0x2] sm:$0x1]  ;;  %v982_v36 = vld [vmem:[%s1588_s2 + $0x3] sm:$0x1]  ;;  %v994_v56 = vld [vmem:[%s1588_s2 + $0x4] sm:$0x1] }
   0xb   :  { %1163 = vmatpush3.bf16.msra.mxu0 %v1249_v6  ;;  %1171 = vmatpush3.bf16.msra.mxu1 %v1250_v7  ;;  %v187_v40 = vunpack.c.l.bf16 %v970_v35  ;;  %v265_v43 = vunpack.c.l.bf16 %v982_v36  ;;  %v1006_v59 = vld [vmem:[%s1588_s2 + $0x5] sm:$0x1]  ;;  %v343_v1 = vunpack.c.l.bf16 %v994_v56 }
   0xc   :  { %1164 = vmatprep.subr.bf16.mxu0 %v1269_v0  ;;  %1172 = vmatprep.subr.bf16.mxu1 %v1269_v0  ;;  %v26_v33 = vrot.slane %v22_v30, %v1446_v31  ;;  %v113_v34 = vrot.slane %v109_v32, %v1446_v31 }
   0xd   :  { %1166 = vmatprep.mubr.msk.bf16.mxu0 %vm1270_vm0, %v1269_v0  ;;  %1174 = vmatprep.mubr.msk.bf16.mxu1 %vm1270_vm0, %v1269_v0  ;;  %v191_v51 = vrot.slane %v187_v40, %v1446_v31  ;;  %v269_v55 = vrot.slane %v265_v43, %v1446_v31  ;;  %v1042_v43 = vld [vmem:[%s1588_s2 + $0x8] sm:$0x1] }
   0xf   :  { %1165 = vmatpush3.bf16.msra.mxu0 %v1251_v8  ;;  %1173 = vmatpush3.bf16.msra.mxu1 %v1252_v9 }
  0x10   :  { %1178 = vmatprep.subr.bf16.mxu0 %v1269_v0  ;;  %1186 = vmatprep.subr.bf16.mxu1 %v1269_v0 }
  0x12   :  { %1167 = vmatmul.mubr.msk.bf16.vlgmr.msra.gmra.mxu0 %vm44_vm1, %v1314_v5  ;;  %1175 = vmatmul.mubr.msk.bf16.vlgmr.msra.gmra.mxu1 %vm44_vm1, %v1314_v5 }
  0x13   :  { %1179 = vmatpush3.bf16.msra.mxu0 %v1253_v10  ;;  %1187 = vmatpush3.bf16.msra.mxu1 %v1254_v11 }
  0x14   :  { %1180 = vmatprep.subr.bf16.mxu0 %v1269_v0  ;;  %1188 = vmatprep.subr.bf16.mxu1 %v1269_v0 }
  0x15   :  { %1182 = vmatprep.mubr.msk.bf16.mxu0 %vm1270_vm0, %v1269_v0  ;;  %1190 = vmatprep.mubr.msk.bf16.mxu1 %vm1270_vm0, %v1269_v0 }
  0x17   :  { %1181 = vmatpush3.bf16.msra.mxu0 %v1255_v12  ;;  %1189 = vmatpush3.bf16.msra.mxu1 %v1256_v13  ;;  %v347_v13 = vrot.slane %v343_v1, %v1446_v31  ;;  %v1066_v1 = vld [vmem:[%s1588_s2 + $0xa] sm:$0x1] }
  0x18   :  { %1194 = vmatprep.subr.bf16.mxu0 %v1269_v0  ;;  %1202 = vmatprep.subr.bf16.mxu1 %v1269_v0 }
  0x1a   :  { %1183 = vmatmul.mubr.msk.bf16.vlgmr.msra.gmra.mxu0 %vm44_vm1, %v1314_v5  ;;  %1191 = vmatmul.mubr.msk.bf16.vlgmr.msra.gmra.mxu1 %vm44_vm1, %v1314_v5 }
  0x1b   :  { %1195 = vmatpush3.bf16.msra.mxu0 %v1257_v14  ;;  %1203 = vmatpush3.bf16.msra.mxu1 %v1258_v15 }
  0x1c   :  { %1196 = vmatprep.subr.bf16.mxu0 %v1269_v0  ;;  %1204 = vmatprep.subr.bf16.mxu1 %v1269_v0 }
  0x1d   :  { %1198 = vmatprep.mubr.msk.bf16.mxu0 %vm1270_vm0, %v1269_v0  ;;  %1206 = vmatprep.mubr.msk.bf16.mxu1 %vm1270_vm0, %v1269_v0 }
  0x1f   :  { %1197 = vmatpush3.bf16.msra.mxu0 %v1259_v16  ;;  %1205 = vmatpush3.bf16.msra.mxu1 %v1260_v17 }
  0x20   :  { %1210 = vmatprep.subr.bf16.mxu0 %v1269_v0  ;;  %1218 = vmatprep.subr.bf16.mxu1 %v1269_v0 }
  0x22   :  { %1199 = vmatmul.mubr.msk.bf16.vlgmr.msra.gmra.mxu0 %vm44_vm1, %v1314_v5  ;;  %1207 = vmatmul.mubr.msk.bf16.vlgmr.msra.gmra.mxu1 %vm44_vm1, %v1314_v5 }
  0x23   :  { %1211 = vmatpush3.bf16.msra.mxu0 %v1261_v18  ;;  %1219 = vmatpush3.bf16.msra.mxu1 %v1262_v19  ;;  %v1018_v18 = vld [vmem:[%s1588_s2 + $0x6] sm:$0x1] }
  0x24   :  { %1212 = vmatprep.subr.bf16.mxu0 %v1269_v0  ;;  %1220 = vmatprep.subr.bf16.mxu1 %v1269_v0  ;;  %v495_v27 = vunpack.c.l.bf16 %v1018_v18 }
  0x25   :  { %1214 = vmatprep.mubr.msk.bf16.mxu0 %vm1270_vm0, %v1269_v0  ;;  %1222 = vmatprep.mubr.msk.bf16.mxu1 %vm1270_vm0, %v1269_v0 }
  0x27   :  { %1213 = vmatpush3.bf16.msra.mxu0 %v1263_v20  ;;  %1221 = vmatpush3.bf16.msra.mxu1 %v1264_v21  ;;  %v1030_v21 = vld [vmem:[%s1588_s2 + $0x7] sm:$0x1] }
  0x28   :  { %1226 = vmatprep.subr.bf16.mxu0 %v1269_v0  ;;  %1234 = vmatprep.subr.bf16.mxu1 %v1269_v0  ;;  %v571_v32 = vunpack.c.l.bf16 %v1030_v21 }
  0x2a   :  { %1215 = vmatmul.mubr.msk.bf16.vlgmr.msra.gmra.mxu0 %vm44_vm1, %v1314_v5  ;;  %1223 = vmatmul.mubr.msk.bf16.vlgmr.msra.gmra.mxu1 %vm44_vm1, %v1314_v5 }
  0x2b   :  { %1227 = vmatpush3.bf16.msra.mxu0 %v1265_v22  ;;  %1235 = vmatpush3.bf16.msra.mxu1 %v1266_v23 }
  0x2c   :  { %1228 = vmatprep.subr.bf16.mxu0 %v1269_v0  ;;  %1236 = vmatprep.subr.bf16.mxu1 %v1269_v0 }
  0x2d   :  { %1230 = vmatprep.mubr.msk.bf16.mxu0 %vm1270_vm0, %v1269_v0  ;;  %1238 = vmatprep.mubr.msk.bf16.mxu1 %vm1270_vm0, %v1269_v0 }
  0x2f   :  { %1229 = vmatpush3.bf16.msra.mxu0 %v1267_v24  ;;  %1237 = vmatpush3.bf16.msra.mxu1 %v1268_v25 }
  0x32   :  { %1231 = vmatmul.mubr.msk.bf16.vlgmr.msra.gmra.mxu0 %vm44_vm1, %v1314_v5  ;;  %1239 = vmatmul.mubr.msk.bf16.vlgmr.msra.gmra.mxu1 %vm44_vm1, %v1314_v5  ;;  %v419_v5 = vunpack.c.l.bf16 %v1006_v59 }
  0x34   :  { %v423_v17 = vrot.slane %v419_v5, %v1446_v31 }
  0xca   :  { %v82_v37 = vpop.f32.mrf.mxu0  ;;  %v160_v39 = vpop.f32.mrf.mxu1 }
  0xcb   :  { %v83_v38 = vadd.f32 %v82_v37, %v26_v33  ;;  %v161_v41 = vadd.f32 %v160_v39, %v113_v34  ;;  %v499_v39 = vrot.slane %v495_v27, %v1446_v31 }
  0xcc   :  { %v1152_v42 = vpop.f32.mrf.mxu0  ;;  %v1160_v45 = vpop.f32.mrf.mxu1 }
  0xcd   :  { %v89_v44 = vmul.f32 0.35355338, %v83_v38  ;;  %v167_v46 = vmul.f32 0.35355338, %v161_v41  ;;  %v575_v42 = vrot.slane %v571_v32, %v1446_v31 }
  0xce   :  { %v85_v47 = vpop.f32.mrf.mxu0  ;;  %v163_v50 = vpop.f32.mrf.mxu1 }
  0xcf   :  { %v1086_v48 = vpack.c.bf16 %v89_v44, %v89_v44  ;;  %v86_v49 = vadd.f32 %v85_v47, %v26_v33  ;;  %v1088_v52 = vpack.c.bf16 %v167_v46, %v167_v46  ;;  %v164_v53 = vadd.f32 %v163_v50, %v113_v34  ;;  %v1054_v46 = vld [vmem:[%s1588_s2 + $0x9] sm:$0x1] }
  0xd0   :  { %v1153_v54 = vpop.f32.mrf.mxu0  ;;  %v1161_v58 = vpop.f32.mrf.mxu1 }
  0xd1   :  { %100 = vst.msk [vmem:[%s1589_s3] sm:$0xf] %vm99_vm2, %v1086_v48  ;;  %v90_v57 = vmul.f32 0.35355338, %v86_v49  ;;  %964 = vst.msk [vmem:[%s1589_s3 + $0x8] sm:$0xf] %vm99_vm2, %v1088_v52  ;;  %v723_v54 = vunpack.c.l.bf16 %v1054_v46 }
  0xd2   :  { %v168_v60 = vmul.f32 0.35355338, %v164_v53  ;;  %v238_v61 = vpop.f32.mrf.mxu0  ;;  %v316_v0 = vpop.f32.mrf.mxu1 }
  0xd3   :  { %v1087_v62 = vpack.c.bf16 %v90_v57, %v90_v57  ;;  %v239_v63 = vadd.f32 %v238_v61, %v191_v51  ;;  %v317_v3 = vadd.f32 %v316_v0, %v269_v55  ;;  %v727_v0 = vrot.slane %v723_v54, %v1446_v31 }
  0xd4   :  { %v1089_v2 = vpack.c.bf16 %v168_v60, %v168_v60  ;;  %v1168_v4 = vpop.f32.mrf.mxu0  ;;  %v1176_v7 = vpop.f32.mrf.mxu1 }
  0xd5   :  { %101 = vst.msk [vmem:[%s1589_s3 + $0x4] sm:$0xf] %vm99_vm2, %v1087_v62  ;;  %v245_v6 = vmul.f32 0.35355338, %v239_v63  ;;  %v323_v8 = vmul.f32 0.35355338, %v317_v3 }
  0xd6   :  { %965 = vst.msk [vmem:[%s1589_s3 + $0xc] sm:$0xf] %vm99_vm2, %v1089_v2  ;;  %v241_v9 = vpop.f32.mrf.mxu0  ;;  %v319_v12 = vpop.f32.mrf.mxu1  ;;  %v1078_v4 = vld [vmem:[%s1588_s2 + $0xb] sm:$0x1] }
  0xd7   :  { %v1090_v10 = vpack.c.bf16 %v245_v6, %v245_v6  ;;  %v242_v11 = vadd.f32 %v241_v9, %v191_v51  ;;  %v1092_v14 = vpack.c.bf16 %v323_v8, %v323_v8  ;;  %v320_v15 = vadd.f32 %v319_v12, %v269_v55 }
  0xd8   :  { %v1169_v16 = vpop.f32.mrf.mxu0  ;;  %v1177_v20 = vpop.f32.mrf.mxu1  ;;  %v647_v51 = vunpack.c.l.bf16 %v1042_v43  ;;  %v799_v9 = vunpack.c.l.bf16 %v1066_v1  ;;  %v875_v12 = vunpack.c.l.bf16 %v1078_v4 }
  0xd9   :  { %976 = vst.msk [vmem:[%s1589_s3 + $0x10] sm:$0xf] %vm99_vm2, %v1090_v10  ;;  %v246_v19 = vmul.f32 0.35355338, %v242_v11  ;;  %988 = vst.msk [vmem:[%s1589_s3 + $0x18] sm:$0xf] %vm99_vm2, %v1092_v14 }
  0xda   :  { %v324_v22 = vmul.f32 0.35355338, %v320_v15  ;;  %v394_v23 = vpop.f32.mrf.mxu0  ;;  %v470_v26 = vpop.f32.mrf.mxu1  ;;  %v651_v61 = vrot.slane %v647_v51, %v1446_v31 }
  0xdb   :  { %v1091_v24 = vpack.c.bf16 %v246_v19, %v246_v19  ;;  %v395_v25 = vadd.f32 %v394_v23, %v347_v13  ;;  %v471_v29 = vadd.f32 %v470_v26, %v423_v17  ;;  %v803_v19 = vrot.slane %v799_v9, %v1446_v31 }
  0xdc   :  { %v1093_v28 = vpack.c.bf16 %v324_v22, %v324_v22  ;;  %v1184_v30 = vpop.f32.mrf.mxu0  ;;  %v1192_v34 = vpop.f32.mrf.mxu1  ;;  %v879_v22 = vrot.slane %v875_v12, %v1446_v31 }
  0xdd   :  { %977 = vst.msk [vmem:[%s1589_s3 + $0x14] sm:$0xf] %vm99_vm2, %v1091_v24  ;;  %v1094_v33 = vpack.c.bf16 %v395_v25, %v395_v25  ;;  %v1096_v35 = vpack.c.bf16 %v471_v29, %v471_v29 }
  0xde   :  { %989 = vst.msk [vmem:[%s1589_s3 + $0x1c] sm:$0xf] %vm99_vm2, %v1093_v28  ;;  %v397_v36 = vpop.f32.mrf.mxu0  ;;  %v473_v38 = vpop.f32.mrf.mxu1 }
  0xdf   :  { %1000 = vst.msk [vmem:[%s1589_s3 + $0x20] sm:$0xf] %vm99_vm2, %v1094_v33  ;;  %v398_v37 = vadd.f32 %v397_v36, %v347_v13  ;;  %1012 = vst.msk [vmem:[%s1589_s3 + $0x28] sm:$0xf] %vm99_vm2, %v1096_v35  ;;  %v474_v40 = vadd.f32 %v473_v38, %v423_v17 }
  0xe0   :  { %v1185_v41 = vpop.f32.mrf.mxu0  ;;  %v1193_v45 = vpop.f32.mrf.mxu1 }
  0xe1   :  { %v1095_v44 = vpack.c.bf16 %v398_v37, %v398_v37  ;;  %v1097_v47 = vpack.c.bf16 %v474_v40, %v474_v40 }
  0xe2   :  { %v546_v48 = vpop.f32.mrf.mxu0  ;;  %v622_v50 = vpop.f32.mrf.mxu1 }
  0xe3   :  { %1001 = vst.msk [vmem:[%s1589_s3 + $0x24] sm:$0xf] %vm99_vm2, %v1095_v44  ;;  %v547_v49 = vadd.f32 %v546_v48, %v499_v39  ;;  %1013 = vst.msk [vmem:[%s1589_s3 + $0x2c] sm:$0xf] %vm99_vm2, %v1097_v47  ;;  %v623_v52 = vadd.f32 %v622_v50, %v575_v42 }
  0xe4   :  { %v1200_v53 = vpop.f32.mrf.mxu0  ;;  %v1208_v56 = vpop.f32.mrf.mxu1 }
  0xe5   :  { %v1098_v55 = vpack.c.bf16 %v547_v49, %v547_v49  ;;  %v1100_v57 = vpack.c.bf16 %v623_v52, %v623_v52 }
  0xe6   :  { %v549_v58 = vpop.f32.mrf.mxu0  ;;  %v625_v60 = vpop.f32.mrf.mxu1 }
  0xe7   :  { %1024 = vst.msk [vmem:[%s1589_s3 + $0x30] sm:$0xf] %vm99_vm2, %v1098_v55  ;;  %v550_v59 = vadd.f32 %v549_v58, %v499_v39  ;;  %1036 = vst.msk [vmem:[%s1589_s3 + $0x38] sm:$0xf] %vm99_vm2, %v1100_v57  ;;  %v626_v62 = vadd.f32 %v625_v60, %v575_v42 }
  0xe8   :  { %v1201_v63 = vpop.f32.mrf.mxu0  ;;  %v1209_v3 = vpop.f32.mrf.mxu1 }
  0xe9   :  { %v1099_v2 = vpack.c.bf16 %v550_v59, %v550_v59  ;;  %v1101_v5 = vpack.c.bf16 %v626_v62, %v626_v62 }
  0xea   :  { %v698_v6 = vpop.f32.mrf.mxu0  ;;  %v774_v8 = vpop.f32.mrf.mxu1 }
  0xeb   :  { %1025 = vst.msk [vmem:[%s1589_s3 + $0x34] sm:$0xf] %vm99_vm2, %v1099_v2  ;;  %v699_v7 = vadd.f32 %v698_v6, %v651_v61  ;;  %1037 = vst.msk [vmem:[%s1589_s3 + $0x3c] sm:$0xf] %vm99_vm2, %v1101_v5  ;;  %v775_v10 = vadd.f32 %v774_v8, %v727_v0 }
  0xec   :  { %v1216_v11 = vpop.f32.mrf.mxu0  ;;  %v1224_v14 = vpop.f32.mrf.mxu1 }
  0xed   :  { %v1102_v13 = vpack.c.bf16 %v699_v7, %v699_v7  ;;  %v1104_v15 = vpack.c.bf16 %v775_v10, %v775_v10 }
  0xee   :  { %v701_v16 = vpop.f32.mrf.mxu0  ;;  %v777_v18 = vpop.f32.mrf.mxu1 }
  0xef   :  { %1048 = vst.msk [vmem:[%s1589_s3 + $0x40] sm:$0xf] %vm99_vm2, %v1102_v13  ;;  %v702_v17 = vadd.f32 %v701_v16, %v651_v61  ;;  %1060 = vst.msk [vmem:[%s1589_s3 + $0x48] sm:$0xf] %vm99_vm2, %v1104_v15  ;;  %v778_v20 = vadd.f32 %v777_v18, %v727_v0 }
  0xf0   :  { %v1217_v21 = vpop.f32.mrf.mxu0  ;;  %v1225_v24 = vpop.f32.mrf.mxu1 }
  0xf1   :  { %v1103_v23 = vpack.c.bf16 %v702_v17, %v702_v17  ;;  %v1105_v25 = vpack.c.bf16 %v778_v20, %v778_v20 }
  0xf2   :  { %v850_v26 = vpop.f32.mrf.mxu0  ;;  %v926_v28 = vpop.f32.mrf.mxu1 }
  0xf3   :  { %1049 = vst.msk [vmem:[%s1589_s3 + $0x44] sm:$0xf] %vm99_vm2, %v1103_v23  ;;  %v851_v27 = vadd.f32 %v850_v26, %v803_v19  ;;  %1061 = vst.msk [vmem:[%s1589_s3 + $0x4c] sm:$0xf] %vm99_vm2, %v1105_v25  ;;  %v927_v29 = vadd.f32 %v926_v28, %v879_v22 }
  0xf4   :  { %v1232_v30 = vpop.f32.mrf.mxu0  ;;  %v1240_v31 = vpop.f32.mrf.mxu1 }
  0xf5   :  { %v1106_v32 = vpack.c.bf16 %v851_v27, %v851_v27  ;;  %v1108_v33 = vpack.c.bf16 %v927_v29, %v927_v29 }
  0xf6   :  { %v853_v34 = vpop.f32.mrf.mxu0  ;;  %v929_v36 = vpop.f32.mrf.mxu1 }
  0xf7   :  { %1072 = vst.msk [vmem:[%s1589_s3 + $0x50] sm:$0xf] %vm99_vm2, %v1106_v32  ;;  %v854_v35 = vadd.f32 %v853_v34, %v803_v19  ;;  %1084 = vst.msk [vmem:[%s1589_s3 + $0x58] sm:$0xf] %vm99_vm2, %v1108_v33  ;;  %v930_v37 = vadd.f32 %v929_v36, %v879_v22 }
  0xf8   :  { %v1233_v38 = vpop.f32.mrf.mxu0  ;;  %v1241_v40 = vpop.f32.mrf.mxu1 }
  0xf9   :  { %v1107_v39 = vpack.c.bf16 %v854_v35, %v854_v35  ;;  %v1109_v41 = vpack.c.bf16 %v930_v37, %v930_v37 }
  0xfb   :  { %1073 = vst.msk [vmem:[%s1589_s3 + $0x54] sm:$0xf] %vm99_vm2, %v1107_v39  ;;  %1085 = vst.msk [vmem:[%s1589_s3 + $0x5c] sm:$0xf] %vm99_vm2, %v1109_v41 }

// kernel: bert_for_ic_and_ner.15
= control target key start
LH: loop header
LB: loop body
LE: loop exit
PB: predicated region body
PF: predicated region fallthrough
CT: control target
= control target key end

     0   :  { %v328_v0 = vmov 0.0   ;;  %vm329_vm0 = vmmov 0   ;;  %vm56_vm1 = vcmask 261120   ;;  %v35_v8 = vlaneseq  ;;  %s419_s1 = inlined_call_operand.vmem [shape: bf16[32,64], index: 1, kind: input, shape index: {}]   ;;  %s420_s0 = inlined_call_operand.vmem [shape: bf16[16,32], index: 0, kind: input, shape index: {}]   ;;  %s421_s3 = inlined_call_operand.vmem [shape: bf16[64,32], index: 3, kind: input, shape index: {}]   ;;  %s422_s2 = inlined_call_operand.vmem [shape: bf16[1,64], index: 2, kind: input, shape index: {}]   ;;  %s423_s4 = inlined_call_operand.vmem [shape: bf16[1,32], index: 4, kind: input, shape index: {}]   ;;  %s424_s5 = inlined_call_operand.vmem [shape: f32[1,32], index: 5, kind: input, shape index: {}]   ;;  %s425_s6 = inlined_call_operand.vmem [shape: f32[1,32], index: 6, kind: input, shape index: {}]   ;;  %s426_s7 = inlined_call_operand.vmem [shape: bf16[16,32], index: 7, kind: output, shape index: {}]  }
   0x1   :  { %290 = vmatprep.subr.bf16.mxu0 %v328_v0  ;;  %v312_v1 = vld [vmem:[%s419_s1 + $0x8] sm:$0xff]   ;;  %294 = vmatprep.mubr.msk.bf16.mxu0 %vm329_vm0, %v328_v0  ;;  %v313_v2 = vld [vmem:[%s419_s1] sm:$0xff]   ;;  %v315_v4 = vld [vmem:[%s421_s3 + $0x18] sm:$0xff]   ;;  %vm158_vm2 = vcmask 523264   ;;  %vm260_vm3 = vcmask 257024  }
   0x2   :  { %298 = vmatprep.subr.bf16.mxu1 %v328_v0  ;;  %306 = vmatprep.mubr.msk.bf16.mxu1 %vm329_vm0, %v328_v0  ;;  %v379_v3 = vld [vmem:[%s420_s0] sm:$0xff]   ;;  %v316_v5 = vld [vmem:[%s421_s3 + $0x10] sm:$0xff]   ;;  %v317_v6 = vld [vmem:[%s421_s3 + $0x8] sm:$0xff]   ;;  %v36_v9 = vshrl.u32 %v35_v8, 7 }
   0x3   :  { %291 = vmatpush3.bf16.msra.mxu0 %v312_v1  ;;  %299 = vmatpush3.bf16.msra.mxu1 %v315_v4  ;;  %v318_v7 = vld [vmem:[%s421_s3] sm:$0xff]   ;;  %v203_v42 = vunpack.c.l.bf16 %v379_v3  ;;  %v204_v47 = vunpack.c.h.bf16 %v379_v3 }
   0x4   :  { %292 = vmatprep.subr.bf16.mxu0 %v328_v0  ;;  %300 = vmatprep.subr.bf16.mxu1 %v328_v0  ;;  %v33_v10 = vld [vmem:[%s422_s2] sm:$0x1]  ;;  %v37_v12 = vsub.s32 0, %v36_v9 }
   0x5   :  { %v34_v11 = vunpack.c.l.bf16 %v33_v10  ;;  %v128_v39 = vld [vmem:[%s423_s4] sm:$0x1] }
   0x6   :  { %v129_v40 = vunpack.c.l.bf16 %v128_v39  ;;  %v277_v9 = vld [vmem:[%s425_s6] ss:$0 sm:$0xff] }
   0x7   :  { %293 = vmatpush3.bf16.msra.mxu0 %v313_v2  ;;  %301 = vmatpush3.bf16.msra.mxu1 %v316_v5  ;;  %v38_v13 = vrot.slane %v34_v11, %v37_v12 }
   0x8   :  { %302 = vmatprep.subr.bf16.mxu1 %v328_v0  ;;  %v133_v41 = vrot.slane %v129_v40, %v37_v12 }
   0xa   :  { %295 = vmatmul.mubr.msk.bf16.vlgmr.msra.gmra.mxu0 %vm56_vm1, %v379_v3 }
   0xb   :  { %303 = vmatpush3.bf16.msra.mxu1 %v317_v6 }
   0xc   :  { %304 = vmatprep.subr.bf16.mxu1 %v328_v0 }
   0xf   :  { %305 = vmatpush3.bf16.msra.mxu1 %v318_v7  ;;  %v276_v7 = vld [vmem:[%s424_s5] ss:$0 sm:$0xff] }
  0xca   :  { %v94_v14 = vpop.f32.mrf.mxu0 }
  0xcb   :  { %v95_v15 = vadd.f32 %v94_v14, %v38_v13 }
  0xcc   :  { %v296_v16 = vpop.f32.mrf.mxu0 }
  0xcd   :  { %v101_v17 = vmul.f32 %v95_v15, %v95_v15 }
  0xce   :  { %v97_v18 = vpop.f32.mrf.mxu0 }
  0xcf   :  { %v103_v19 = vmul.f32 %v101_v17, %v95_v15  ;;  %v98_v20 = vadd.f32 %v97_v18, %v38_v13 }
  0xd0   :  { %v297_v21 = vpop.f32.mrf.mxu0 }
  0xd1   :  { %v105_v22 = vmul.f32 0.044715, %v103_v19  ;;  %v102_v23 = vmul.f32 %v98_v20, %v98_v20 }
  0xd3   :  { %v107_v24 = vadd.f32 %v105_v22, %v95_v15  ;;  %v104_v25 = vmul.f32 %v102_v23, %v98_v20 }
  0xd5   :  { %v109_v26 = vmul.f32 0.7978846, %v107_v24  ;;  %v106_v27 = vmul.f32 0.044715, %v104_v25 }
  0xd7   :  { %320 = vtanh.f32 %v109_v26  ;;  %v108_v28 = vadd.f32 %v106_v27, %v98_v20 }
  0xd9   :  { %v110_v29 = vmul.f32 0.7978846, %v108_v28 }
  0xdb   :  { %322 = vtanh.f32 %v110_v29 }
  0xe4   :  { %v321_v30 = vpop.eup %320 }
  0xe5   :  { %v113_v31 = vadd.f32 1.0, %v321_v30 }
  0xe7   :  { %v115_v33 = vmul.f32 0.5, %v113_v31 }
  0xe8   :  { %v323_v32 = vpop.eup %322 }
  0xe9   :  { %v114_v34 = vadd.f32 1.0, %v323_v32  ;;  %v117_v36 = vmul.f32 %v115_v33, %v95_v15 }
  0xeb   :  { %v116_v35 = vmul.f32 0.5, %v114_v34 }
  0xed   :  { %v118_v37 = vmul.f32 %v116_v35, %v98_v20 }
  0xef   :  { %v119_v38 = vpack.c.bf16 %v118_v37, %v117_v36 }
  0xf1   :  { %307 = vmatmul.mubr.msk.bf16.vlgmr.msra.gmra.mxu1 %vm158_vm2, %v119_v38 }
 0x1b1   :  { %v196_v43 = vpop.f32.mrf.mxu1 }
 0x1b2   :  { %v197_v44 = vadd.f32 %v196_v43, %v133_v41 }
 0x1b3   :  { %v308_v45 = vpop.f32.mrf.mxu1 }
 0x1b4   :  { %v205_v46 = vadd.f32 %v203_v42, %v197_v44 }
 0x1b5   :  { %v199_v48 = vpop.f32.mrf.mxu1 }
 0x1b6   :  { %v200_v49 = vadd.f32 %v199_v48, %v133_v41  ;;  %v209_v50 = vsel %vm56_vm1, %v205_v46, 0.0 }
 0x1b7   :  { %210 = vadd.xlane.f32.xlu0 %v209_v50  ;;  %v309_v51 = vpop.f32.mrf.mxu1 }
 0x1b8   :  { %v206_v52 = vadd.f32 %v204_v47, %v200_v49 }
 0x1ba   :  { %v212_v53 = vsel %vm56_vm1, %v206_v52, 0.0 }
 0x1bb   :  { %213 = vadd.xlane.f32.xlu0 %v212_v53 }
 0x240   :  { %v211_v54 = vpop.xlane.xlu0 %210 }
 0x241   :  { %v216_v55 = vmul.f32 0.03125, %v211_v54 }
 0x243   :  { %v218_v56 = vsub.f32 %v205_v46, %v216_v55 }
 0x244   :  { %v214_v57 = vpop.xlane.xlu0 %213 }
 0x245   :  { %v217_v58 = vmul.f32 0.03125, %v214_v57  ;;  %v220_v59 = vmul.f32 %v218_v56, %v218_v56 }
 0x247   :  { %v219_v60 = vsub.f32 %v206_v52, %v217_v58  ;;  %v222_v61 = vsel %vm56_vm1, %v220_v59, 0.0 }
 0x248   :  { %223 = vadd.xlane.f32.xlu1 %v222_v61 }
 0x249   :  { %v221_v62 = vmul.f32 %v219_v60, %v219_v60 }
 0x24b   :  { %v225_v63 = vsel %vm56_vm1, %v221_v62, 0.0 }
 0x24c   :  { %226 = vadd.xlane.f32.xlu1 %v225_v63 }
 0x2d1   :  { %v224_v0 = vpop.xlane.xlu1 %223 }
 0x2d2   :  { %v228_v1 = vmul.f32 0.03125, %v224_v0 }
 0x2d4   :  { %v230_v2 = vadd.f32 1e-12, %v228_v1 }
 0x2d5   :  { %v227_v3 = vpop.xlane.xlu1 %226 }
 0x2d6   :  { %324 = vrsqrt.f32 %v230_v2  ;;  %v229_v4 = vmul.f32 0.03125, %v227_v3 }
 0x2d8   :  { %v231_v5 = vadd.f32 1e-12, %v229_v4 }
 0x2da   :  { %326 = vrsqrt.f32 %v231_v5 }
 0x2e3   :  { %v325_v6 = vpop.eup %324 }
 0x2e4   :  { %v234_v8 = vmul.f32 %v325_v6, %v218_v56 }
 0x2e6   :  { %v242_v10 = vmul.f32 %v276_v7, %v234_v8 }
 0x2e7   :  { %v327_v11 = vpop.eup %326 }
 0x2e8   :  { %v250_v12 = vadd.f32 %v277_v9, %v242_v10  ;;  %v235_v13 = vmul.f32 %v327_v11, %v219_v60 }
 0x2ea   :  { %v280_v14 = vpack.c.bf16 %v250_v12, %v250_v12  ;;  %v243_v15 = vmul.f32 %v276_v7, %v235_v13 }
 0x2ec   :  { %261 = vst.msk [vmem:[%s426_s7] sm:$0xf] %vm260_vm3, %v280_v14  ;;  %v251_v16 = vadd.f32 %v277_v9, %v243_v15 }
 0x2ee   :  { %v281_v17 = vpack.c.bf16 %v251_v16, %v251_v16 }
 0x2f0   :  { %262 = vst.msk [vmem:[%s426_s7 + $0x4] sm:$0xf] %vm260_vm3, %v281_v17 }

// kernel: bert_for_ic_and_ner.20
= control target key start
LH: loop header
LB: loop body
LE: loop exit
PB: predicated region body
PF: predicated region fallthrough
CT: control target
= control target key end

     0   :  { %v678_v0 = vmov 0.0   ;;  %vm679_vm0 = vmmov 0   ;;  %vm80_vm1 = vcmask 261120   ;;  %v59_v6 = vlaneseq  ;;  %s873_s1 = inlined_call_operand.vmem [shape: bf16[32,32], index: 1, kind: input, shape index: {}]   ;;  %s874_s0 = inlined_call_operand.vmem [shape: bf16[16,32], index: 0, kind: input, shape index: {}]   ;;  %s875_s3 = inlined_call_operand.vmem [shape: bf16[32,32], index: 3, kind: input, shape index: {}]   ;;  %s876_s2 = inlined_call_operand.vmem [shape: bf16[1,32], index: 2, kind: input, shape index: {}]   ;;  %s877_s5 = inlined_call_operand.vmem [shape: bf16[32,32], index: 5, kind: input, shape index: {}]   ;;  %s878_s4 = inlined_call_operand.vmem [shape: bf16[1,32], index: 4, kind: input, shape index: {}]   ;;  %s879_s7 = inlined_call_operand.vmem [shape: bf16[32,32], index: 7, kind: input, shape index: {}]   ;;  %s880_s6 = inlined_call_operand.vmem [shape: bf16[1,32], index: 6, kind: input, shape index: {}]   ;;  %s881_s9 = inlined_call_operand.vmem [shape: bf16[32,32], index: 9, kind: input, shape index: {}]   ;;  %s882_s8 = inlined_call_operand.vmem [shape: bf16[1,32], index: 8, kind: input, shape index: {}]   ;;  %s883_s11 = inlined_call_operand.vmem [shape: bf16[32,32], index: 11, kind: input, shape index: {}]   ;;  %s884_s10 = inlined_call_operand.vmem [shape: bf16[1,32], index: 10, kind: input, shape index: {}]   ;;  %s885_s13 = inlined_call_operand.vmem [shape: bf16[32,128], index: 13, kind: input, shape index: {}]   ;;  %s886_s12 = inlined_call_operand.vmem [shape: bf16[1,32], index: 12, kind: input, shape index: {}]   ;;  %s887_s14 = inlined_call_operand.vmem [shape: bf16[1,128], index: 14, kind: input, shape index: {}]   ;;  %s888_s15 = inlined_call_operand.vmem [shape: bf16[16,128], index: 15, kind: output, shape index: {}]  }
   0x1   :  { %605 = vmatprep.subr.bf16.mxu0 %v678_v0  ;;  %v663_v1 = vld [vmem:[%s873_s1 + $0x8] sm:$0xff]   ;;  %609 = vmatprep.mubr.msk.bf16.mxu0 %vm679_vm0, %v678_v0  ;;  %v664_v2 = vld [vmem:[%s873_s1] sm:$0xff]  }
   0x2   :  { %613 = vmatprep.subr.bf16.mxu1 %v678_v0  ;;  %617 = vmatprep.mubr.msk.bf16.mxu1 %vm679_vm0, %v678_v0  ;;  %v665_v3 = vld [vmem:[%s874_s0] sm:$0xff]   ;;  %v666_v4 = vld [vmem:[%s875_s3 + $0x8] sm:$0xff]   ;;  %v60_v7 = vshrl.u32 %v59_v6, 7 }
   0x3   :  { %606 = vmatpush3.bf16.msra.mxu0 %v663_v1  ;;  %614 = vmatpush3.bf16.msra.mxu1 %v666_v4  ;;  %v667_v5 = vld [vmem:[%s875_s3] sm:$0xff]   ;;  %v668_v21 = vld [vmem:[%s877_s5 + $0x8] sm:$0xff]  }
   0x4   :  { %607 = vmatprep.subr.bf16.mxu0 %v678_v0  ;;  %615 = vmatprep.subr.bf16.mxu1 %v678_v0  ;;  %v57_v8 = vld [vmem:[%s876_s2] sm:$0x1]  ;;  %v791_v10 = vsub.s32 0, %v60_v7  ;;  %v670_v35 = vld [vmem:[%s879_s7 + $0x8] sm:$0xff]  }
   0x5   :  { %v58_v9 = vunpack.c.l.bf16 %v57_v8  ;;  %v669_v22 = vld [vmem:[%s877_s5] sm:$0xff]   ;;  %v672_v49 = vld [vmem:[%s881_s9 + $0x8] sm:$0xff]  }
   0x6   :  { %v132_v23 = vld [vmem:[%s878_s4] sm:$0x1]  ;;  %v674_v63 = vld [vmem:[%s883_s11 + $0x8] sm:$0xff]  }
   0x7   :  { %608 = vmatpush3.bf16.msra.mxu0 %v664_v2  ;;  %616 = vmatpush3.bf16.msra.mxu1 %v667_v5  ;;  %v62_v11 = vrot.slane %v58_v9, %v791_v10  ;;  %v133_v24 = vunpack.c.l.bf16 %v132_v23  ;;  %v671_v36 = vld [vmem:[%s879_s7] sm:$0xff]  }
   0x8   :  { %621 = vmatprep.subr.bf16.mxu0 %v678_v0  ;;  %629 = vmatprep.subr.bf16.mxu1 %v678_v0  ;;  %v201_v37 = vld [vmem:[%s880_s6] sm:$0x1] }
   0x9   :  { %v137_v25 = vrot.slane %v133_v24, %v791_v10  ;;  %v202_v38 = vunpack.c.l.bf16 %v201_v37  ;;  %v673_v50 = vld [vmem:[%s881_s9] sm:$0xff]  }
   0xa   :  { %610 = vmatmul.mubr.msk.bf16.vlgmr.msra.gmra.mxu0 %vm80_vm1, %v665_v3  ;;  %v270_v51 = vld [vmem:[%s882_s8] sm:$0x1] }
   0xb   :  { %625 = vmatprep.mubr.msk.bf16.mxu0 %vm679_vm0, %v678_v0  ;;  %622 = vmatpush3.bf16.msra.mxu0 %v668_v21  ;;  %v206_v39 = vrot.slane %v202_v38, %v791_v10  ;;  %v271_v52 = vunpack.c.l.bf16 %v270_v51  ;;  %v675_v1 = vld [vmem:[%s883_s11] sm:$0xff]  }
   0xc   :  { %623 = vmatprep.subr.bf16.mxu0 %v678_v0  ;;  %v339_v2 = vld [vmem:[%s884_s10] sm:$0x1] }
   0xd   :  { %v275_v53 = vrot.slane %v271_v52, %v791_v10  ;;  %v340_v3 = vunpack.c.l.bf16 %v339_v2 }
   0xf   :  { %624 = vmatpush3.bf16.msra.mxu0 %v669_v22  ;;  %v344_v4 = vrot.slane %v340_v3, %v791_v10 }
  0x10   :  { %637 = vmatprep.subr.bf16.mxu0 %v678_v0 }
  0xca   :  { %v118_v12 = vpop.f32.mrf.mxu0 }
  0xcb   :  { %v119_v14 = vadd.f32 %v118_v12, %v62_v11 }
  0xcc   :  { %v611_v13 = vpop.f32.mrf.mxu0 }
  0xcd   :  { %v125_v18 = vmax.f32 %v119_v14, 0.0 }
  0xce   :  { %v121_v15 = vpop.f32.mrf.mxu0 }
  0xcf   :  { %v122_v16 = vadd.f32 %v121_v15, %v62_v11  ;;  %v676_v15 = vld [vmem:[%s885_s13 + $0x8] sm:$0xff]  }
  0xd0   :  { %v612_v17 = vpop.f32.mrf.mxu0 }
  0xd1   :  { %v126_v19 = vmax.f32 %v122_v16, 0.0  ;;  %v677_v16 = vld [vmem:[%s885_s13] sm:$0xff]  }
  0xd2   :  { %v408_v17 = vld [vmem:[%s886_s12] sm:$0x1] }
  0xd3   :  { %v127_v20 = vpack.c.bf16 %v126_v19, %v125_v18  ;;  %v409_v18 = vunpack.c.l.bf16 %v408_v17 }
  0xd5   :  { %618 = vmatmul.mubr.msk.bf16.vlgmr.msra.gmra.mxu1 %vm80_vm1, %v127_v20  ;;  %v413_v19 = vrot.slane %v409_v18, %v791_v10 }
  0xd6   :  { %633 = vmatprep.mubr.msk.bf16.mxu1 %vm679_vm0, %v678_v0  ;;  %630 = vmatpush3.bf16.msra.mxu1 %v670_v35 }
  0xd7   :  { %631 = vmatprep.subr.bf16.mxu1 %v678_v0 }
  0xda   :  { %632 = vmatpush3.bf16.msra.mxu1 %v671_v36 }
  0xdb   :  { %645 = vmatprep.subr.bf16.mxu1 %v678_v0 }
 0x195   :  { %v187_v26 = vpop.f32.mrf.mxu1 }
 0x196   :  { %v188_v28 = vadd.f32 %v187_v26, %v137_v25 }
 0x197   :  { %v619_v27 = vpop.f32.mrf.mxu1 }
 0x198   :  { %v194_v32 = vmax.f32 %v188_v28, 0.0  ;;  %v477_v28 = vld [vmem:[%s887_s14] sm:$0x1] }
 0x199   :  { %v190_v29 = vpop.f32.mrf.mxu1 }
 0x19a   :  { %v191_v30 = vadd.f32 %v190_v29, %v137_v25  ;;  %v478_v29 = vunpack.c.l.bf16 %v477_v28 }
 0x19b   :  { %v620_v31 = vpop.f32.mrf.mxu1 }
 0x19c   :  { %v195_v33 = vmax.f32 %v191_v30, 0.0  ;;  %v482_v31 = vrot.slane %v478_v29, %v791_v10 }
 0x19e   :  { %v196_v34 = vpack.c.bf16 %v195_v33, %v194_v32 }
 0x1a0   :  { %626 = vmatmul.mubr.msk.bf16.vlgmr.msra.gmra.mxu0 %vm80_vm1, %v196_v34 }
 0x1a1   :  { %641 = vmatprep.mubr.msk.bf16.mxu0 %vm679_vm0, %v678_v0  ;;  %638 = vmatpush3.bf16.msra.mxu0 %v672_v49 }
 0x1a2   :  { %639 = vmatprep.subr.bf16.mxu0 %v678_v0 }
 0x1a5   :  { %640 = vmatpush3.bf16.msra.mxu0 %v673_v50 }
 0x1a6   :  { %653 = vmatprep.subr.bf16.mxu0 %v678_v0 }
 0x260   :  { %v256_v40 = vpop.f32.mrf.mxu0 }
 0x261   :  { %v257_v42 = vadd.f32 %v256_v40, %v206_v39 }
 0x262   :  { %v627_v41 = vpop.f32.mrf.mxu0 }
 0x263   :  { %v263_v46 = vmax.f32 %v257_v42, 0.0 }
 0x264   :  { %v259_v43 = vpop.f32.mrf.mxu0 }
 0x265   :  { %v260_v44 = vadd.f32 %v259_v43, %v206_v39 }
 0x266   :  { %v628_v45 = vpop.f32.mrf.mxu0 }
 0x267   :  { %v264_v47 = vmax.f32 %v260_v44, 0.0 }
 0x269   :  { %v265_v48 = vpack.c.bf16 %v264_v47, %v263_v46 }
 0x26b   :  { %634 = vmatmul.mubr.msk.bf16.vlgmr.msra.gmra.mxu1 %vm80_vm1, %v265_v48 }
 0x26c   :  { %649 = vmatprep.mubr.msk.bf16.mxu1 %vm679_vm0, %v678_v0  ;;  %646 = vmatpush3.bf16.msra.mxu1 %v674_v63 }
 0x26d   :  { %647 = vmatprep.subr.bf16.mxu1 %v678_v0 }
 0x270   :  { %648 = vmatpush3.bf16.msra.mxu1 %v675_v1 }
 0x32b   :  { %v325_v54 = vpop.f32.mrf.mxu1 }
 0x32c   :  { %v326_v56 = vadd.f32 %v325_v54, %v275_v53 }
 0x32d   :  { %v635_v55 = vpop.f32.mrf.mxu1 }
 0x32e   :  { %v332_v60 = vmax.f32 %v326_v56, 0.0 }
 0x32f   :  { %v328_v57 = vpop.f32.mrf.mxu1 }
 0x330   :  { %v329_v58 = vadd.f32 %v328_v57, %v275_v53 }
 0x331   :  { %v636_v59 = vpop.f32.mrf.mxu1 }
 0x332   :  { %v333_v61 = vmax.f32 %v329_v58, 0.0 }
 0x334   :  { %v334_v62 = vpack.c.bf16 %v333_v61, %v332_v60 }
 0x336   :  { %642 = vmatmul.mubr.msk.bf16.vlgmr.msra.gmra.mxu0 %vm80_vm1, %v334_v62 }
 0x337   :  { %657 = vmatprep.mubr.msk.bf16.mxu0 %vm679_vm0, %v678_v0  ;;  %654 = vmatpush3.bf16.msra.mxu0 %v676_v15 }
 0x338   :  { %655 = vmatprep.subr.bf16.mxu0 %v678_v0 }
 0x33b   :  { %656 = vmatpush3.bf16.msra.mxu0 %v677_v16 }
 0x3f6   :  { %v394_v5 = vpop.f32.mrf.mxu0 }
 0x3f7   :  { %v395_v7 = vadd.f32 %v394_v5, %v344_v4 }
 0x3f8   :  { %v643_v6 = vpop.f32.mrf.mxu0 }
 0x3f9   :  { %v401_v12 = vmax.f32 %v395_v7, 0.0 }
 0x3fa   :  { %v397_v8 = vpop.f32.mrf.mxu0 }
 0x3fb   :  { %v398_v9 = vadd.f32 %v397_v8, %v344_v4 }
 0x3fc   :  { %v644_v11 = vpop.f32.mrf.mxu0 }
 0x3fd   :  { %v402_v13 = vmax.f32 %v398_v9, 0.0 }
 0x3ff   :  { %v403_v14 = vpack.c.bf16 %v402_v13, %v401_v12 }
 0x401   :  { %650 = vmatmul.mubr.msk.bf16.vlgmr.msra.gmra.mxu1 %vm80_vm1, %v403_v14 }
 0x4c1   :  { %v463_v20 = vpop.f32.mrf.mxu1 }
 0x4c2   :  { %v464_v22 = vadd.f32 %v463_v20, %v413_v19 }
 0x4c3   :  { %v651_v21 = vpop.f32.mrf.mxu1 }
 0x4c4   :  { %v470_v26 = vmax.f32 %v464_v22, 0.0 }
 0x4c5   :  { %v466_v23 = vpop.f32.mrf.mxu1 }
 0x4c6   :  { %v467_v24 = vadd.f32 %v466_v23, %v413_v19 }
 0x4c7   :  { %v652_v25 = vpop.f32.mrf.mxu1 }
 0x4c8   :  { %v471_v0 = vmax.f32 %v467_v24, 0.0 }
 0x4ca   :  { %v472_v27 = vpack.c.bf16 %v471_v0, %v470_v26 }
 0x4cc   :  { %658 = vmatmul.mubr.msk.bf16.vlgmr.msra.gmra.mxu0 %vm80_vm1, %v472_v27 }
 0x58c   :  { %v532_v30 = vpop.f32.mrf.mxu0 }
 0x58d   :  { %v533_v34 = vadd.f32 %v532_v30, %v482_v31 }
 0x58e   :  { %v659_v32 = vpop.f32.mrf.mxu0 }
 0x590   :  { %v535_v33 = vpop.f32.mrf.mxu0 }
 0x591   :  { %v536_v35 = vadd.f32 %v535_v33, %v482_v31 }
 0x592   :  { %v660_v36 = vpop.f32.mrf.mxu0 }
 0x593   :  { %v582_v37 = vpack.c.bf16 %v536_v35, %v533_v34 }
 0x595   :  { %583 = vst [vmem:[%s888_s15] sm:$0xff] %v582_v37  }

</bundles_post_ra>
